<compile_context>
chip_gen: v5e
topology: v5e:2x2
jax: 0.10.0
libtpu: 0.0.40
codegen_flags: <defaults>
</compile_context>

<pallas_src>
import functools

import numpy as np

import jax
import jax.numpy as jnp
from jax.experimental import pallas as pl
from jax.experimental.pallas import tpu as pltpu


# ----------------------------- Pallas kernel -------------------------------
def _generator_kernel(*refs, metas):
    """Fully-fused Generator forward.

    refs = (x2d, [wb_l, ah_l, (p_l, q_l if bn)] * n_layers ..., out2d)
    Activations are 2-D: rows = n*H + h, cols = w*C + c.
    """
    x = refs[0][...]
    o_ref = refs[-1]
    idx = 1
    for (kernel_size, use_bn, inv_count) in metas:
        wb_ref = refs[idx]
        ah_ref = refs[idx + 1]
        idx += 2
        # ConvTranspose2d:  out = sum_ky  AH[ky] @ (X @ WB[ky])
        acc = None
        for ky in range(kernel_size):
            y = jnp.dot(x, wb_ref[ky], preferred_element_type=jnp.float32)
            t = jnp.dot(ah_ref[ky], y, preferred_element_type=jnp.float32)
            acc = t if acc is None else acc + t
        if use_bn:
            p_ref = refs[idx]
            q_ref = refs[idx + 1]
            idx += 2
            # Train-mode BatchNorm (biased variance, gamma=1, beta=0) + ReLU.
            s1 = jnp.sum(acc, axis=0, keepdims=True)          # (1, Wo*Co)
            s2 = jnp.sum(acc * acc, axis=0, keepdims=True)    # (1, Wo*Co)
            ch_mean = jnp.dot(s1, p_ref[...],
                              preferred_element_type=jnp.float32) * inv_count
            ch_ex2 = jnp.dot(s2, p_ref[...],
                             preferred_element_type=jnp.float32) * inv_count
            var = ch_ex2 - ch_mean * ch_mean                  # E[x^2] - mean^2
            scale = jax.lax.rsqrt(var + 1e-5)                 # (1, Co)
            scale_cols = jnp.dot(scale, q_ref[...],
                                 preferred_element_type=jnp.float32)
            shift_cols = jnp.dot(ch_mean * scale, q_ref[...],
                                 preferred_element_type=jnp.float32)
            acc = jnp.maximum(acc * scale_cols - shift_cols, 0.0)
        else:
            acc = jnp.tanh(acc)
        x = acc
    o_ref[...] = x


# --------------------------- parameter packing ------------------------------
def _layer_cfg(channels_noise, channels_img, features_g):
    # (C_in, C_out, kernel, stride, padding, batchnorm)
    return [
        (channels_noise, features_g * 16, 4, 1, 0, True),
        (features_g * 16, features_g * 8, 3, 2, 1, True),
        (features_g * 8, features_g * 4, 4, 2, 1, True),
        (features_g * 4, features_g * 2, 4, 2, 1, True),
        (features_g * 2, channels_img, 3, 1, 1, False),
    ]


def init_generator_params(key, channels_noise, channels_img, features_g):
    """Deterministic synthetic init; PyTorch weight layout (C_in, C_out, KH, KW)."""
    cfg = _layer_cfg(channels_noise, channels_img, features_g)
    keys = jax.random.split(key, len(cfg))
    params = []
    for kk, (ci, co, k, s, p, bn) in zip(keys, cfg):
        w = 0.05 * jax.random.normal(kk, (ci, co, k, k), jnp.float32)
        params.append((w, k, s, p, bn))
    return params


def pack_generator_params(params, batch, in_hw):
    """Build all constant matrices consumed by the fused kernel (init time only)."""
    n = batch
    hi, wi = in_hw
    consts = []
    metas = []
    co = None
    for (w, k, s, p, bn) in params:
        w = np.asarray(w, np.float32)
        ci, co = int(w.shape[0]), int(w.shape[1])
        pe = k - 1 - p                                   # effective conv padding
        ho = (hi - 1) * s - 2 * p + k
        wo = (wi - 1) * s - 2 * p + k
        wf = w[:, :, ::-1, ::-1]                          # spatially flipped
        # WB[ky]: (Wi*Ci, Wo*Co) banded block-Toeplitz (W-axis im2col + weights)
        wb = np.zeros((k, wi * ci, wo * co), np.float32)
        for ky in range(k):
            for iw in range(wi):
                for ox in range(wo):
                    kx = pe + s * iw - ox
                    if 0 <= kx < k:
                        wb[ky, iw * ci:(iw + 1) * ci,
                           ox * co:(ox + 1) * co] = wf[:, :, ky, kx]
        # AH[ky]: (N*Ho, N*Hi) 0/1 row gather (H-axis dilation + pad + im2col)
        ah = np.zeros((k, n * ho, n * hi), np.float32)
        for ky in range(k):
            for oy in range(ho):
                r = oy + ky - pe
                if r >= 0 and r % s == 0 and r // s < hi:
                    for b in range(n):
                        ah[ky, b * ho + oy, b * hi + r // s] = 1.0
        consts += [jnp.asarray(wb), jnp.asarray(ah)]
        if bn:
            pool = np.tile(np.eye(co, dtype=np.float32), (wo, 1))   # (Wo*Co, Co)
            consts += [jnp.asarray(pool),
                       jnp.asarray(np.ascontiguousarray(pool.T))]   # (Co, Wo*Co)
        metas.append((k, bn, 1.0 / float(n * ho * wo)))
        hi, wi = ho, wo
    return tuple(consts), tuple(metas), (hi, wi, co)


# ------------------------------ forward pass --------------------------------
@functools.partial(jax.jit, static_argnums=(2, 3))
def generator_forward(x_nchw, consts, metas, out_hwc):
    n, c_in, h_in, w_in = x_nchw.shape
    ho, wo, co = out_hwc
    x2d = jnp.transpose(x_nchw, (0, 2, 3, 1)).reshape(n * h_in, w_in * c_in)
    out2d = pl.pallas_call(
        functools.partial(_generator_kernel, metas=metas),
        out_shape=jax.ShapeDtypeStruct((n * ho, wo * co), jnp.float32),
        in_specs=[pl.BlockSpec(memory_space=pltpu.MemorySpace.VMEM)]
                 * (1 + len(consts)),
        out_specs=pl.BlockSpec(memory_space=pltpu.MemorySpace.VMEM),
    )(x2d, *consts)
    return jnp.transpose(out2d.reshape(n, ho, wo, co), (0, 3, 1, 2))


# --------------------------- pure-JAX reference ------------------------------
def generator_forward_ref(x_nchw, params):
    h = x_nchw
    for (w, k, s, p, bn) in params:
        wc = jnp.transpose(w[:, :, ::-1, ::-1], (1, 0, 2, 3))   # OIHW
        h = jax.lax.conv_general_dilated(
            h, wc, window_strides=(1, 1),
            padding=[(k - 1 - p, k - 1 - p)] * 2,
            lhs_dilation=(s, s),
            dimension_numbers=("NCHW", "OIHW", "NCHW"))
        if bn:
            mean = h.mean(axis=(0, 2, 3), keepdims=True)
            var = h.var(axis=(0, 2, 3), keepdims=True)
            h = jnp.maximum((h - mean) * jax.lax.rsqrt(var + 1e-5), 0.0)
        else:
            h = jnp.tanh(h)
    return h


if __name__ == "__main__":
    channels_noise, channels_img, features_g = 8, 1, 4
    key = jax.random.PRNGKey(0)
    kx, kw = jax.random.split(key)

    params = init_generator_params(kw, channels_noise, channels_img, features_g)
    n = 2
    x = jax.random.normal(kx, (n, channels_noise, 1, 1), jnp.float32)

    consts, metas, out_hwc = pack_generator_params(params, batch=n, in_hw=(1, 1))

    out = generator_forward(x, consts, metas, out_hwc)
    out = jax.block_until_ready(out)

    assert out.shape == (n, channels_img, 28, 28), out.shape
    ref = generator_forward_ref(x, params)
    err = float(jnp.max(jnp.abs(out - ref)))
    assert err < 2e-3, f"max abs err {err}"

    print("KERNEL_OK")
</pallas_src>

<mosaic_0001>
module attributes {stable_mosaic.version = 11 : i64} {
  func.func @_generator_kernel(%arg0: memref<2x8xf32, #tpu.memory_space<vmem>>, %arg1: memref<4x8x256xf32, #tpu.memory_space<vmem>>, %arg2: memref<4x8x2xf32, #tpu.memory_space<vmem>>, %arg3: memref<256x64xf32, #tpu.memory_space<vmem>>, %arg4: memref<64x256xf32, #tpu.memory_space<vmem>>, %arg5: memref<3x256x224xf32, #tpu.memory_space<vmem>>, %arg6: memref<3x14x8xf32, #tpu.memory_space<vmem>>, %arg7: memref<224x32xf32, #tpu.memory_space<vmem>>, %arg8: memref<32x224xf32, #tpu.memory_space<vmem>>, %arg9: memref<4x224x224xf32, #tpu.memory_space<vmem>>, %arg10: memref<4x28x14xf32, #tpu.memory_space<vmem>>, %arg11: memref<224x16xf32, #tpu.memory_space<vmem>>, %arg12: memref<16x224xf32, #tpu.memory_space<vmem>>, %arg13: memref<4x224x224xf32, #tpu.memory_space<vmem>>, %arg14: memref<4x56x28xf32, #tpu.memory_space<vmem>>, %arg15: memref<224x8xf32, #tpu.memory_space<vmem>>, %arg16: memref<8x224xf32, #tpu.memory_space<vmem>>, %arg17: memref<3x224x28xf32, #tpu.memory_space<vmem>>, %arg18: memref<3x56x56xf32, #tpu.memory_space<vmem>>, %arg19: memref<56x28xf32, #tpu.memory_space<vmem>>) attributes {dimension_semantics = [], scalar_prefetch = 0 : i64, scratch_operands = 0 : i64, tpu.core_type = #tpu.core_type<tc>} {
    %c0 = arith.constant 0 : index
    %c0_0 = arith.constant 0 : index
    %0 = vector.load %arg0[%c0, %c0_0] : memref<2x8xf32, #tpu.memory_space<vmem>>, vector<2x8xf32>
    %c0_1 = arith.constant 0 : index
    %c0_2 = arith.constant 0 : index
    %c0_3 = arith.constant 0 : index
    %1 = vector.load %arg1[%c0_1, %c0_2, %c0_3] : memref<4x8x256xf32, #tpu.memory_space<vmem>>, vector<1x8x256xf32>
    %2 = vector.shape_cast %1 : vector<1x8x256xf32> to vector<8x256xf32>
    %cst = arith.constant dense<0.000000e+00> : vector<2x256xf32>
    %3 = tpu.matmul %0, %2, %cst {dimension_numbers = #tpu.dot_dimension_numbers<[1], [0], [0], [1], [0, 0, 1, 1], [], []>} : vector<2x8xf32>, vector<8x256xf32>, vector<2x256xf32> -> vector<2x256xf32>
    %c0_4 = arith.constant 0 : index
    %c0_5 = arith.constant 0 : index
    %c0_6 = arith.constant 0 : index
    %4 = vector.load %arg2[%c0_4, %c0_5, %c0_6] : memref<4x8x2xf32, #tpu.memory_space<vmem>>, vector<1x8x2xf32>
    %5 = vector.shape_cast %4 : vector<1x8x2xf32> to vector<8x2xf32>
    %cst_7 = arith.constant dense<0.000000e+00> : vector<8x256xf32>
    %6 = tpu.matmul %5, %3, %cst_7 {dimension_numbers = #tpu.dot_dimension_numbers<[1], [0], [0], [1], [0, 0, 1, 1], [], []>} : vector<8x2xf32>, vector<2x256xf32>, vector<8x256xf32> -> vector<8x256xf32>
    %c1 = arith.constant 1 : index
    %c0_8 = arith.constant 0 : index
    %c0_9 = arith.constant 0 : index
    %7 = vector.load %arg1[%c1, %c0_8, %c0_9] : memref<4x8x256xf32, #tpu.memory_space<vmem>>, vector<1x8x256xf32>
    %8 = vector.shape_cast %7 : vector<1x8x256xf32> to vector<8x256xf32>
    %cst_10 = arith.constant dense<0.000000e+00> : vector<2x256xf32>
    %9 = tpu.matmul %0, %8, %cst_10 {dimension_numbers = #tpu.dot_dimension_numbers<[1], [0], [0], [1], [0, 0, 1, 1], [], []>} : vector<2x8xf32>, vector<8x256xf32>, vector<2x256xf32> -> vector<2x256xf32>
    %c1_11 = arith.constant 1 : index
    %c0_12 = arith.constant 0 : index
    %c0_13 = arith.constant 0 : index
    %10 = vector.load %arg2[%c1_11, %c0_12, %c0_13] : memref<4x8x2xf32, #tpu.memory_space<vmem>>, vector<1x8x2xf32>
    %11 = vector.shape_cast %10 : vector<1x8x2xf32> to vector<8x2xf32>
    %cst_14 = arith.constant dense<0.000000e+00> : vector<8x256xf32>
    %12 = tpu.matmul %11, %9, %cst_14 {dimension_numbers = #tpu.dot_dimension_numbers<[1], [0], [0], [1], [0, 0, 1, 1], [], []>} : vector<8x2xf32>, vector<2x256xf32>, vector<8x256xf32> -> vector<8x256xf32>
    %13 = arith.addf %6, %12 : vector<8x256xf32>
    %c2 = arith.constant 2 : index
    %c0_15 = arith.constant 0 : index
    %c0_16 = arith.constant 0 : index
    %14 = vector.load %arg1[%c2, %c0_15, %c0_16] : memref<4x8x256xf32, #tpu.memory_space<vmem>>, vector<1x8x256xf32>
    %15 = vector.shape_cast %14 : vector<1x8x256xf32> to vector<8x256xf32>
    %cst_17 = arith.constant dense<0.000000e+00> : vector<2x256xf32>
    %16 = tpu.matmul %0, %15, %cst_17 {dimension_numbers = #tpu.dot_dimension_numbers<[1], [0], [0], [1], [0, 0, 1, 1], [], []>} : vector<2x8xf32>, vector<8x256xf32>, vector<2x256xf32> -> vector<2x256xf32>
    %c2_18 = arith.constant 2 : index
    %c0_19 = arith.constant 0 : index
    %c0_20 = arith.constant 0 : index
    %17 = vector.load %arg2[%c2_18, %c0_19, %c0_20] : memref<4x8x2xf32, #tpu.memory_space<vmem>>, vector<1x8x2xf32>
    %18 = vector.shape_cast %17 : vector<1x8x2xf32> to vector<8x2xf32>
    %cst_21 = arith.constant dense<0.000000e+00> : vector<8x256xf32>
    %19 = tpu.matmul %18, %16, %cst_21 {dimension_numbers = #tpu.dot_dimension_numbers<[1], [0], [0], [1], [0, 0, 1, 1], [], []>} : vector<8x2xf32>, vector<2x256xf32>, vector<8x256xf32> -> vector<8x256xf32>
    %20 = arith.addf %13, %19 : vector<8x256xf32>
    %c3 = arith.constant 3 : index
    %c0_22 = arith.constant 0 : index
    %c0_23 = arith.constant 0 : index
    %21 = vector.load %arg1[%c3, %c0_22, %c0_23] : memref<4x8x256xf32, #tpu.memory_space<vmem>>, vector<1x8x256xf32>
    %22 = vector.shape_cast %21 : vector<1x8x256xf32> to vector<8x256xf32>
    %cst_24 = arith.constant dense<0.000000e+00> : vector<2x256xf32>
    %23 = tpu.matmul %0, %22, %cst_24 {dimension_numbers = #tpu.dot_dimension_numbers<[1], [0], [0], [1], [0, 0, 1, 1], [], []>} : vector<2x8xf32>, vector<8x256xf32>, vector<2x256xf32> -> vector<2x256xf32>
    %c3_25 = arith.constant 3 : index
    %c0_26 = arith.constant 0 : index
    %c0_27 = arith.constant 0 : index
    %24 = vector.load %arg2[%c3_25, %c0_26, %c0_27] : memref<4x8x2xf32, #tpu.memory_space<vmem>>, vector<1x8x2xf32>
    %25 = vector.shape_cast %24 : vector<1x8x2xf32> to vector<8x2xf32>
    %cst_28 = arith.constant dense<0.000000e+00> : vector<8x256xf32>
    %26 = tpu.matmul %25, %23, %cst_28 {dimension_numbers = #tpu.dot_dimension_numbers<[1], [0], [0], [1], [0, 0, 1, 1], [], []>} : vector<8x2xf32>, vector<2x256xf32>, vector<8x256xf32> -> vector<8x256xf32>
    %27 = arith.addf %20, %26 : vector<8x256xf32>
    %cst_29 = arith.constant dense<0.000000e+00> : vector<256xf32>
    %28 = vector.multi_reduction <add>, %27, %cst_29 [0] : vector<8x256xf32> to vector<256xf32>
    %29 = vector.shape_cast %28 : vector<256xf32> to vector<1x256xf32>
    %30 = arith.mulf %27, %27 : vector<8x256xf32>
    %cst_30 = arith.constant dense<0.000000e+00> : vector<256xf32>
    %31 = vector.multi_reduction <add>, %30, %cst_30 [0] : vector<8x256xf32> to vector<256xf32>
    %32 = vector.shape_cast %31 : vector<256xf32> to vector<1x256xf32>
    %c0_31 = arith.constant 0 : index
    %c0_32 = arith.constant 0 : index
    %33 = vector.load %arg3[%c0_31, %c0_32] : memref<256x64xf32, #tpu.memory_space<vmem>>, vector<256x64xf32>
    %cst_33 = arith.constant dense<0.000000e+00> : vector<1x64xf32>
    %34 = tpu.matmul %29, %33, %cst_33 {dimension_numbers = #tpu.dot_dimension_numbers<[1], [0], [0], [1], [0, 0, 1, 1], [], []>} : vector<1x256xf32>, vector<256x64xf32>, vector<1x64xf32> -> vector<1x64xf32>
    %cst_34 = arith.constant 3.125000e-02 : f32
    %35 = vector.broadcast %cst_34 : f32 to vector<1x64xf32>
    %36 = arith.mulf %34, %35 : vector<1x64xf32>
    %c0_35 = arith.constant 0 : index
    %c0_36 = arith.constant 0 : index
    %37 = vector.load %arg3[%c0_35, %c0_36] : memref<256x64xf32, #tpu.memory_space<vmem>>, vector<256x64xf32>
    %cst_37 = arith.constant dense<0.000000e+00> : vector<1x64xf32>
    %38 = tpu.matmul %32, %37, %cst_37 {dimension_numbers = #tpu.dot_dimension_numbers<[1], [0], [0], [1], [0, 0, 1, 1], [], []>} : vector<1x256xf32>, vector<256x64xf32>, vector<1x64xf32> -> vector<1x64xf32>
    %cst_38 = arith.constant 3.125000e-02 : f32
    %39 = vector.broadcast %cst_38 : f32 to vector<1x64xf32>
    %40 = arith.mulf %38, %39 : vector<1x64xf32>
    %41 = arith.mulf %36, %36 : vector<1x64xf32>
    %42 = arith.subf %40, %41 : vector<1x64xf32>
    %cst_39 = arith.constant 9.99999974E-6 : f32
    %43 = vector.broadcast %cst_39 : f32 to vector<1x64xf32>
    %44 = arith.addf %42, %43 : vector<1x64xf32>
    %45 = math.rsqrt %44 : vector<1x64xf32>
    %c0_40 = arith.constant 0 : index
    %c0_41 = arith.constant 0 : index
    %46 = vector.load %arg4[%c0_40, %c0_41] : memref<64x256xf32, #tpu.memory_space<vmem>>, vector<64x256xf32>
    %cst_42 = arith.constant dense<0.000000e+00> : vector<1x256xf32>
    %47 = tpu.matmul %45, %46, %cst_42 {dimension_numbers = #tpu.dot_dimension_numbers<[1], [0], [0], [1], [0, 0, 1, 1], [], []>} : vector<1x64xf32>, vector<64x256xf32>, vector<1x256xf32> -> vector<1x256xf32>
    %48 = arith.mulf %36, %45 : vector<1x64xf32>
    %c0_43 = arith.constant 0 : index
    %c0_44 = arith.constant 0 : index
    %49 = vector.load %arg4[%c0_43, %c0_44] : memref<64x256xf32, #tpu.memory_space<vmem>>, vector<64x256xf32>
    %cst_45 = arith.constant dense<0.000000e+00> : vector<1x256xf32>
    %50 = tpu.matmul %48, %49, %cst_45 {dimension_numbers = #tpu.dot_dimension_numbers<[1], [0], [0], [1], [0, 0, 1, 1], [], []>} : vector<1x64xf32>, vector<64x256xf32>, vector<1x256xf32> -> vector<1x256xf32>
    %51 = vector.broadcast %47 : vector<1x256xf32> to vector<8x256xf32>
    %52 = arith.mulf %27, %51 : vector<8x256xf32>
    %53 = vector.broadcast %50 : vector<1x256xf32> to vector<8x256xf32>
    %54 = arith.subf %52, %53 : vector<8x256xf32>
    %cst_46 = arith.constant 0.000000e+00 : f32
    %55 = vector.broadcast %cst_46 : f32 to vector<8x256xf32>
    %56 = arith.maximumf %54, %55 : vector<8x256xf32>
    %c0_47 = arith.constant 0 : index
    %c0_48 = arith.constant 0 : index
    %c0_49 = arith.constant 0 : index
    %57 = vector.load %arg5[%c0_47, %c0_48, %c0_49] : memref<3x256x224xf32, #tpu.memory_space<vmem>>, vector<1x256x224xf32>
    %58 = vector.shape_cast %57 : vector<1x256x224xf32> to vector<256x224xf32>
    %cst_50 = arith.constant dense<0.000000e+00> : vector<8x224xf32>
    %59 = tpu.matmul %56, %58, %cst_50 {dimension_numbers = #tpu.dot_dimension_numbers<[1], [0], [0], [1], [0, 0, 1, 1], [], []>} : vector<8x256xf32>, vector<256x224xf32>, vector<8x224xf32> -> vector<8x224xf32>
    %c0_51 = arith.constant 0 : index
    %c0_52 = arith.constant 0 : index
    %c0_53 = arith.constant 0 : index
    %60 = vector.load %arg6[%c0_51, %c0_52, %c0_53] : memref<3x14x8xf32, #tpu.memory_space<vmem>>, vector<1x14x8xf32>
    %61 = vector.shape_cast %60 : vector<1x14x8xf32> to vector<14x8xf32>
    %cst_54 = arith.constant dense<0.000000e+00> : vector<14x224xf32>
    %62 = tpu.matmul %61, %59, %cst_54 {dimension_numbers = #tpu.dot_dimension_numbers<[1], [0], [0], [1], [0, 0, 1, 1], [], []>} : vector<14x8xf32>, vector<8x224xf32>, vector<14x224xf32> -> vector<14x224xf32>
    %c1_55 = arith.constant 1 : index
    %c0_56 = arith.constant 0 : index
    %c0_57 = arith.constant 0 : index
    %63 = vector.load %arg5[%c1_55, %c0_56, %c0_57] : memref<3x256x224xf32, #tpu.memory_space<vmem>>, vector<1x256x224xf32>
    %64 = vector.shape_cast %63 : vector<1x256x224xf32> to vector<256x224xf32>
    %cst_58 = arith.constant dense<0.000000e+00> : vector<8x224xf32>
    %65 = tpu.matmul %56, %64, %cst_58 {dimension_numbers = #tpu.dot_dimension_numbers<[1], [0], [0], [1], [0, 0, 1, 1], [], []>} : vector<8x256xf32>, vector<256x224xf32>, vector<8x224xf32> -> vector<8x224xf32>
    %c1_59 = arith.constant 1 : index
    %c0_60 = arith.constant 0 : index
    %c0_61 = arith.constant 0 : index
    %66 = vector.load %arg6[%c1_59, %c0_60, %c0_61] : memref<3x14x8xf32, #tpu.memory_space<vmem>>, vector<1x14x8xf32>
    %67 = vector.shape_cast %66 : vector<1x14x8xf32> to vector<14x8xf32>
    %cst_62 = arith.constant dense<0.000000e+00> : vector<14x224xf32>
    %68 = tpu.matmul %67, %65, %cst_62 {dimension_numbers = #tpu.dot_dimension_numbers<[1], [0], [0], [1], [0, 0, 1, 1], [], []>} : vector<14x8xf32>, vector<8x224xf32>, vector<14x224xf32> -> vector<14x224xf32>
    %69 = arith.addf %62, %68 : vector<14x224xf32>
    %c2_63 = arith.constant 2 : index
    %c0_64 = arith.constant 0 : index
    %c0_65 = arith.constant 0 : index
    %70 = vector.load %arg5[%c2_63, %c0_64, %c0_65] : memref<3x256x224xf32, #tpu.memory_space<vmem>>, vector<1x256x224xf32>
    %71 = vector.shape_cast %70 : vector<1x256x224xf32> to vector<256x224xf32>
    %cst_66 = arith.constant dense<0.000000e+00> : vector<8x224xf32>
    %72 = tpu.matmul %56, %71, %cst_66 {dimension_numbers = #tpu.dot_dimension_numbers<[1], [0], [0], [1], [0, 0, 1, 1], [], []>} : vector<8x256xf32>, vector<256x224xf32>, vector<8x224xf32> -> vector<8x224xf32>
    %c2_67 = arith.constant 2 : index
    %c0_68 = arith.constant 0 : index
    %c0_69 = arith.constant 0 : index
    %73 = vector.load %arg6[%c2_67, %c0_68, %c0_69] : memref<3x14x8xf32, #tpu.memory_space<vmem>>, vector<1x14x8xf32>
    %74 = vector.shape_cast %73 : vector<1x14x8xf32> to vector<14x8xf32>
    %cst_70 = arith.constant dense<0.000000e+00> : vector<14x224xf32>
    %75 = tpu.matmul %74, %72, %cst_70 {dimension_numbers = #tpu.dot_dimension_numbers<[1], [0], [0], [1], [0, 0, 1, 1], [], []>} : vector<14x8xf32>, vector<8x224xf32>, vector<14x224xf32> -> vector<14x224xf32>
    %76 = arith.addf %69, %75 : vector<14x224xf32>
    %cst_71 = arith.constant dense<0.000000e+00> : vector<224xf32>
    %77 = vector.multi_reduction <add>, %76, %cst_71 [0] : vector<14x224xf32> to vector<224xf32>
    %78 = vector.shape_cast %77 : vector<224xf32> to vector<1x224xf32>
    %79 = arith.mulf %76, %76 : vector<14x224xf32>
    %cst_72 = arith.constant dense<0.000000e+00> : vector<224xf32>
    %80 = vector.multi_reduction <add>, %79, %cst_72 [0] : vector<14x224xf32> to vector<224xf32>
    %81 = vector.shape_cast %80 : vector<224xf32> to vector<1x224xf32>
    %c0_73 = arith.constant 0 : index
    %c0_74 = arith.constant 0 : index
    %82 = vector.load %arg7[%c0_73, %c0_74] : memref<224x32xf32, #tpu.memory_space<vmem>>, vector<224x32xf32>
    %cst_75 = arith.constant dense<0.000000e+00> : vector<1x32xf32>
    %83 = tpu.matmul %78, %82, %cst_75 {dimension_numbers = #tpu.dot_dimension_numbers<[1], [0], [0], [1], [0, 0, 1, 1], [], []>} : vector<1x224xf32>, vector<224x32xf32>, vector<1x32xf32> -> vector<1x32xf32>
    %cst_76 = arith.constant 0.0102040814 : f32
    %84 = vector.broadcast %cst_76 : f32 to vector<1x32xf32>
    %85 = arith.mulf %83, %84 : vector<1x32xf32>
    %c0_77 = arith.constant 0 : index
    %c0_78 = arith.constant 0 : index
    %86 = vector.load %arg7[%c0_77, %c0_78] : memref<224x32xf32, #tpu.memory_space<vmem>>, vector<224x32xf32>
    %cst_79 = arith.constant dense<0.000000e+00> : vector<1x32xf32>
    %87 = tpu.matmul %81, %86, %cst_79 {dimension_numbers = #tpu.dot_dimension_numbers<[1], [0], [0], [1], [0, 0, 1, 1], [], []>} : vector<1x224xf32>, vector<224x32xf32>, vector<1x32xf32> -> vector<1x32xf32>
    %cst_80 = arith.constant 0.0102040814 : f32
    %88 = vector.broadcast %cst_80 : f32 to vector<1x32xf32>
    %89 = arith.mulf %87, %88 : vector<1x32xf32>
    %90 = arith.mulf %85, %85 : vector<1x32xf32>
    %91 = arith.subf %89, %90 : vector<1x32xf32>
    %cst_81 = arith.constant 9.99999974E-6 : f32
    %92 = vector.broadcast %cst_81 : f32 to vector<1x32xf32>
    %93 = arith.addf %91, %92 : vector<1x32xf32>
    %94 = math.rsqrt %93 : vector<1x32xf32>
    %c0_82 = arith.constant 0 : index
    %c0_83 = arith.constant 0 : index
    %95 = vector.load %arg8[%c0_82, %c0_83] : memref<32x224xf32, #tpu.memory_space<vmem>>, vector<32x224xf32>
    %cst_84 = arith.constant dense<0.000000e+00> : vector<1x224xf32>
    %96 = tpu.matmul %94, %95, %cst_84 {dimension_numbers = #tpu.dot_dimension_numbers<[1], [0], [0], [1], [0, 0, 1, 1], [], []>} : vector<1x32xf32>, vector<32x224xf32>, vector<1x224xf32> -> vector<1x224xf32>
    %97 = arith.mulf %85, %94 : vector<1x32xf32>
    %c0_85 = arith.constant 0 : index
    %c0_86 = arith.constant 0 : index
    %98 = vector.load %arg8[%c0_85, %c0_86] : memref<32x224xf32, #tpu.memory_space<vmem>>, vector<32x224xf32>
    %cst_87 = arith.constant dense<0.000000e+00> : vector<1x224xf32>
    %99 = tpu.matmul %97, %98, %cst_87 {dimension_numbers = #tpu.dot_dimension_numbers<[1], [0], [0], [1], [0, 0, 1, 1], [], []>} : vector<1x32xf32>, vector<32x224xf32>, vector<1x224xf32> -> vector<1x224xf32>
    %100 = vector.broadcast %96 : vector<1x224xf32> to vector<14x224xf32>
    %101 = arith.mulf %76, %100 : vector<14x224xf32>
    %102 = vector.broadcast %99 : vector<1x224xf32> to vector<14x224xf32>
    %103 = arith.subf %101, %102 : vector<14x224xf32>
    %cst_88 = arith.constant 0.000000e+00 : f32
    %104 = vector.broadcast %cst_88 : f32 to vector<14x224xf32>
    %105 = arith.maximumf %103, %104 : vector<14x224xf32>
    %c0_89 = arith.constant 0 : index
    %c0_90 = arith.constant 0 : index
    %c0_91 = arith.constant 0 : index
    %106 = vector.load %arg9[%c0_89, %c0_90, %c0_91] : memref<4x224x224xf32, #tpu.memory_space<vmem>>, vector<1x224x224xf32>
    %107 = vector.shape_cast %106 : vector<1x224x224xf32> to vector<224x224xf32>
    %cst_92 = arith.constant dense<0.000000e+00> : vector<14x224xf32>
    %108 = tpu.matmul %105, %107, %cst_92 {dimension_numbers = #tpu.dot_dimension_numbers<[1], [0], [0], [1], [0, 0, 1, 1], [], []>} : vector<14x224xf32>, vector<224x224xf32>, vector<14x224xf32> -> vector<14x224xf32>
    %c0_93 = arith.constant 0 : index
    %c0_94 = arith.constant 0 : index
    %c0_95 = arith.constant 0 : index
    %109 = vector.load %arg10[%c0_93, %c0_94, %c0_95] : memref<4x28x14xf32, #tpu.memory_space<vmem>>, vector<1x28x14xf32>
    %110 = vector.shape_cast %109 : vector<1x28x14xf32> to vector<28x14xf32>
    %cst_96 = arith.constant dense<0.000000e+00> : vector<28x224xf32>
    %111 = tpu.matmul %110, %108, %cst_96 {dimension_numbers = #tpu.dot_dimension_numbers<[1], [0], [0], [1], [0, 0, 1, 1], [], []>} : vector<28x14xf32>, vector<14x224xf32>, vector<28x224xf32> -> vector<28x224xf32>
    %c1_97 = arith.constant 1 : index
    %c0_98 = arith.constant 0 : index
    %c0_99 = arith.constant 0 : index
    %112 = vector.load %arg9[%c1_97, %c0_98, %c0_99] : memref<4x224x224xf32, #tpu.memory_space<vmem>>, vector<1x224x224xf32>
    %113 = vector.shape_cast %112 : vector<1x224x224xf32> to vector<224x224xf32>
    %cst_100 = arith.constant dense<0.000000e+00> : vector<14x224xf32>
    %114 = tpu.matmul %105, %113, %cst_100 {dimension_numbers = #tpu.dot_dimension_numbers<[1], [0], [0], [1], [0, 0, 1, 1], [], []>} : vector<14x224xf32>, vector<224x224xf32>, vector<14x224xf32> -> vector<14x224xf32>
    %c1_101 = arith.constant 1 : index
    %c0_102 = arith.constant 0 : index
    %c0_103 = arith.constant 0 : index
    %115 = vector.load %arg10[%c1_101, %c0_102, %c0_103] : memref<4x28x14xf32, #tpu.memory_space<vmem>>, vector<1x28x14xf32>
    %116 = vector.shape_cast %115 : vector<1x28x14xf32> to vector<28x14xf32>
    %cst_104 = arith.constant dense<0.000000e+00> : vector<28x224xf32>
    %117 = tpu.matmul %116, %114, %cst_104 {dimension_numbers = #tpu.dot_dimension_numbers<[1], [0], [0], [1], [0, 0, 1, 1], [], []>} : vector<28x14xf32>, vector<14x224xf32>, vector<28x224xf32> -> vector<28x224xf32>
    %118 = arith.addf %111, %117 : vector<28x224xf32>
    %c2_105 = arith.constant 2 : index
    %c0_106 = arith.constant 0 : index
    %c0_107 = arith.constant 0 : index
    %119 = vector.load %arg9[%c2_105, %c0_106, %c0_107] : memref<4x224x224xf32, #tpu.memory_space<vmem>>, vector<1x224x224xf32>
    %120 = vector.shape_cast %119 : vector<1x224x224xf32> to vector<224x224xf32>
    %cst_108 = arith.constant dense<0.000000e+00> : vector<14x224xf32>
    %121 = tpu.matmul %105, %120, %cst_108 {dimension_numbers = #tpu.dot_dimension_numbers<[1], [0], [0], [1], [0, 0, 1, 1], [], []>} : vector<14x224xf32>, vector<224x224xf32>, vector<14x224xf32> -> vector<14x224xf32>
    %c2_109 = arith.constant 2 : index
    %c0_110 = arith.constant 0 : index
    %c0_111 = arith.constant 0 : index
    %122 = vector.load %arg10[%c2_109, %c0_110, %c0_111] : memref<4x28x14xf32, #tpu.memory_space<vmem>>, vector<1x28x14xf32>
    %123 = vector.shape_cast %122 : vector<1x28x14xf32> to vector<28x14xf32>
    %cst_112 = arith.constant dense<0.000000e+00> : vector<28x224xf32>
    %124 = tpu.matmul %123, %121, %cst_112 {dimension_numbers = #tpu.dot_dimension_numbers<[1], [0], [0], [1], [0, 0, 1, 1], [], []>} : vector<28x14xf32>, vector<14x224xf32>, vector<28x224xf32> -> vector<28x224xf32>
    %125 = arith.addf %118, %124 : vector<28x224xf32>
    %c3_113 = arith.constant 3 : index
    %c0_114 = arith.constant 0 : index
    %c0_115 = arith.constant 0 : index
    %126 = vector.load %arg9[%c3_113, %c0_114, %c0_115] : memref<4x224x224xf32, #tpu.memory_space<vmem>>, vector<1x224x224xf32>
    %127 = vector.shape_cast %126 : vector<1x224x224xf32> to vector<224x224xf32>
    %cst_116 = arith.constant dense<0.000000e+00> : vector<14x224xf32>
    %128 = tpu.matmul %105, %127, %cst_116 {dimension_numbers = #tpu.dot_dimension_numbers<[1], [0], [0], [1], [0, 0, 1, 1], [], []>} : vector<14x224xf32>, vector<224x224xf32>, vector<14x224xf32> -> vector<14x224xf32>
    %c3_117 = arith.constant 3 : index
    %c0_118 = arith.constant 0 : index
    %c0_119 = arith.constant 0 : index
    %129 = vector.load %arg10[%c3_117, %c0_118, %c0_119] : memref<4x28x14xf32, #tpu.memory_space<vmem>>, vector<1x28x14xf32>
    %130 = vector.shape_cast %129 : vector<1x28x14xf32> to vector<28x14xf32>
    %cst_120 = arith.constant dense<0.000000e+00> : vector<28x224xf32>
    %131 = tpu.matmul %130, %128, %cst_120 {dimension_numbers = #tpu.dot_dimension_numbers<[1], [0], [0], [1], [0, 0, 1, 1], [], []>} : vector<28x14xf32>, vector<14x224xf32>, vector<28x224xf32> -> vector<28x224xf32>
    %132 = arith.addf %125, %131 : vector<28x224xf32>
    %cst_121 = arith.constant dense<0.000000e+00> : vector<224xf32>
    %133 = vector.multi_reduction <add>, %132, %cst_121 [0] : vector<28x224xf32> to vector<224xf32>
    %134 = vector.shape_cast %133 : vector<224xf32> to vector<1x224xf32>
    %135 = arith.mulf %132, %132 : vector<28x224xf32>
    %cst_122 = arith.constant dense<0.000000e+00> : vector<224xf32>
    %136 = vector.multi_reduction <add>, %135, %cst_122 [0] : vector<28x224xf32> to vector<224xf32>
    %137 = vector.shape_cast %136 : vector<224xf32> to vector<1x224xf32>
    %c0_123 = arith.constant 0 : index
    %c0_124 = arith.constant 0 : index
    %138 = vector.load %arg11[%c0_123, %c0_124] : memref<224x16xf32, #tpu.memory_space<vmem>>, vector<224x16xf32>
    %cst_125 = arith.constant dense<0.000000e+00> : vector<1x16xf32>
    %139 = tpu.matmul %134, %138, %cst_125 {dimension_numbers = #tpu.dot_dimension_numbers<[1], [0], [0], [1], [0, 0, 1, 1], [], []>} : vector<1x224xf32>, vector<224x16xf32>, vector<1x16xf32> -> vector<1x16xf32>
    %cst_126 = arith.constant 0.00255102036 : f32
    %140 = vector.broadcast %cst_126 : f32 to vector<1x16xf32>
    %141 = arith.mulf %139, %140 : vector<1x16xf32>
    %c0_127 = arith.constant 0 : index
    %c0_128 = arith.constant 0 : index
    %142 = vector.load %arg11[%c0_127, %c0_128] : memref<224x16xf32, #tpu.memory_space<vmem>>, vector<224x16xf32>
    %cst_129 = arith.constant dense<0.000000e+00> : vector<1x16xf32>
    %143 = tpu.matmul %137, %142, %cst_129 {dimension_numbers = #tpu.dot_dimension_numbers<[1], [0], [0], [1], [0, 0, 1, 1], [], []>} : vector<1x224xf32>, vector<224x16xf32>, vector<1x16xf32> -> vector<1x16xf32>
    %cst_130 = arith.constant 0.00255102036 : f32
    %144 = vector.broadcast %cst_130 : f32 to vector<1x16xf32>
    %145 = arith.mulf %143, %144 : vector<1x16xf32>
    %146 = arith.mulf %141, %141 : vector<1x16xf32>
    %147 = arith.subf %145, %146 : vector<1x16xf32>
    %cst_131 = arith.constant 9.99999974E-6 : f32
    %148 = vector.broadcast %cst_131 : f32 to vector<1x16xf32>
    %149 = arith.addf %147, %148 : vector<1x16xf32>
    %150 = math.rsqrt %149 : vector<1x16xf32>
    %c0_132 = arith.constant 0 : index
    %c0_133 = arith.constant 0 : index
    %151 = vector.load %arg12[%c0_132, %c0_133] : memref<16x224xf32, #tpu.memory_space<vmem>>, vector<16x224xf32>
    %cst_134 = arith.constant dense<0.000000e+00> : vector<1x224xf32>
    %152 = tpu.matmul %150, %151, %cst_134 {dimension_numbers = #tpu.dot_dimension_numbers<[1], [0], [0], [1], [0, 0, 1, 1], [], []>} : vector<1x16xf32>, vector<16x224xf32>, vector<1x224xf32> -> vector<1x224xf32>
    %153 = arith.mulf %141, %150 : vector<1x16xf32>
    %c0_135 = arith.constant 0 : index
    %c0_136 = arith.constant 0 : index
    %154 = vector.load %arg12[%c0_135, %c0_136] : memref<16x224xf32, #tpu.memory_space<vmem>>, vector<16x224xf32>
    %cst_137 = arith.constant dense<0.000000e+00> : vector<1x224xf32>
    %155 = tpu.matmul %153, %154, %cst_137 {dimension_numbers = #tpu.dot_dimension_numbers<[1], [0], [0], [1], [0, 0, 1, 1], [], []>} : vector<1x16xf32>, vector<16x224xf32>, vector<1x224xf32> -> vector<1x224xf32>
    %156 = vector.broadcast %152 : vector<1x224xf32> to vector<28x224xf32>
    %157 = arith.mulf %132, %156 : vector<28x224xf32>
    %158 = vector.broadcast %155 : vector<1x224xf32> to vector<28x224xf32>
    %159 = arith.subf %157, %158 : vector<28x224xf32>
    %cst_138 = arith.constant 0.000000e+00 : f32
    %160 = vector.broadcast %cst_138 : f32 to vector<28x224xf32>
    %161 = arith.maximumf %159, %160 : vector<28x224xf32>
    %c0_139 = arith.constant 0 : index
    %c0_140 = arith.constant 0 : index
    %c0_141 = arith.constant 0 : index
    %162 = vector.load %arg13[%c0_139, %c0_140, %c0_141] : memref<4x224x224xf32, #tpu.memory_space<vmem>>, vector<1x224x224xf32>
    %163 = vector.shape_cast %162 : vector<1x224x224xf32> to vector<224x224xf32>
    %cst_142 = arith.constant dense<0.000000e+00> : vector<28x224xf32>
    %164 = tpu.matmul %161, %163, %cst_142 {dimension_numbers = #tpu.dot_dimension_numbers<[1], [0], [0], [1], [0, 0, 1, 1], [], []>} : vector<28x224xf32>, vector<224x224xf32>, vector<28x224xf32> -> vector<28x224xf32>
    %c0_143 = arith.constant 0 : index
    %c0_144 = arith.constant 0 : index
    %c0_145 = arith.constant 0 : index
    %165 = vector.load %arg14[%c0_143, %c0_144, %c0_145] : memref<4x56x28xf32, #tpu.memory_space<vmem>>, vector<1x56x28xf32>
    %166 = vector.shape_cast %165 : vector<1x56x28xf32> to vector<56x28xf32>
    %cst_146 = arith.constant dense<0.000000e+00> : vector<56x224xf32>
    %167 = tpu.matmul %166, %164, %cst_146 {dimension_numbers = #tpu.dot_dimension_numbers<[1], [0], [0], [1], [0, 0, 1, 1], [], []>} : vector<56x28xf32>, vector<28x224xf32>, vector<56x224xf32> -> vector<56x224xf32>
    %c1_147 = arith.constant 1 : index
    %c0_148 = arith.constant 0 : index
    %c0_149 = arith.constant 0 : index
    %168 = vector.load %arg13[%c1_147, %c0_148, %c0_149] : memref<4x224x224xf32, #tpu.memory_space<vmem>>, vector<1x224x224xf32>
    %169 = vector.shape_cast %168 : vector<1x224x224xf32> to vector<224x224xf32>
    %cst_150 = arith.constant dense<0.000000e+00> : vector<28x224xf32>
    %170 = tpu.matmul %161, %169, %cst_150 {dimension_numbers = #tpu.dot_dimension_numbers<[1], [0], [0], [1], [0, 0, 1, 1], [], []>} : vector<28x224xf32>, vector<224x224xf32>, vector<28x224xf32> -> vector<28x224xf32>
    %c1_151 = arith.constant 1 : index
    %c0_152 = arith.constant 0 : index
    %c0_153 = arith.constant 0 : index
    %171 = vector.load %arg14[%c1_151, %c0_152, %c0_153] : memref<4x56x28xf32, #tpu.memory_space<vmem>>, vector<1x56x28xf32>
    %172 = vector.shape_cast %171 : vector<1x56x28xf32> to vector<56x28xf32>
    %cst_154 = arith.constant dense<0.000000e+00> : vector<56x224xf32>
    %173 = tpu.matmul %172, %170, %cst_154 {dimension_numbers = #tpu.dot_dimension_numbers<[1], [0], [0], [1], [0, 0, 1, 1], [], []>} : vector<56x28xf32>, vector<28x224xf32>, vector<56x224xf32> -> vector<56x224xf32>
    %174 = arith.addf %167, %173 : vector<56x224xf32>
    %c2_155 = arith.constant 2 : index
    %c0_156 = arith.constant 0 : index
    %c0_157 = arith.constant 0 : index
    %175 = vector.load %arg13[%c2_155, %c0_156, %c0_157] : memref<4x224x224xf32, #tpu.memory_space<vmem>>, vector<1x224x224xf32>
    %176 = vector.shape_cast %175 : vector<1x224x224xf32> to vector<224x224xf32>
    %cst_158 = arith.constant dense<0.000000e+00> : vector<28x224xf32>
    %177 = tpu.matmul %161, %176, %cst_158 {dimension_numbers = #tpu.dot_dimension_numbers<[1], [0], [0], [1], [0, 0, 1, 1], [], []>} : vector<28x224xf32>, vector<224x224xf32>, vector<28x224xf32> -> vector<28x224xf32>
    %c2_159 = arith.constant 2 : index
    %c0_160 = arith.constant 0 : index
    %c0_161 = arith.constant 0 : index
    %178 = vector.load %arg14[%c2_159, %c0_160, %c0_161] : memref<4x56x28xf32, #tpu.memory_space<vmem>>, vector<1x56x28xf32>
    %179 = vector.shape_cast %178 : vector<1x56x28xf32> to vector<56x28xf32>
    %cst_162 = arith.constant dense<0.000000e+00> : vector<56x224xf32>
    %180 = tpu.matmul %179, %177, %cst_162 {dimension_numbers = #tpu.dot_dimension_numbers<[1], [0], [0], [1], [0, 0, 1, 1], [], []>} : vector<56x28xf32>, vector<28x224xf32>, vector<56x224xf32> -> vector<56x224xf32>
    %181 = arith.addf %174, %180 : vector<56x224xf32>
    %c3_163 = arith.constant 3 : index
    %c0_164 = arith.constant 0 : index
    %c0_165 = arith.constant 0 : index
    %182 = vector.load %arg13[%c3_163, %c0_164, %c0_165] : memref<4x224x224xf32, #tpu.memory_space<vmem>>, vector<1x224x224xf32>
    %183 = vector.shape_cast %182 : vector<1x224x224xf32> to vector<224x224xf32>
    %cst_166 = arith.constant dense<0.000000e+00> : vector<28x224xf32>
    %184 = tpu.matmul %161, %183, %cst_166 {dimension_numbers = #tpu.dot_dimension_numbers<[1], [0], [0], [1], [0, 0, 1, 1], [], []>} : vector<28x224xf32>, vector<224x224xf32>, vector<28x224xf32> -> vector<28x224xf32>
    %c3_167 = arith.constant 3 : index
    %c0_168 = arith.constant 0 : index
    %c0_169 = arith.constant 0 : index
    %185 = vector.load %arg14[%c3_167, %c0_168, %c0_169] : memref<4x56x28xf32, #tpu.memory_space<vmem>>, vector<1x56x28xf32>
    %186 = vector.shape_cast %185 : vector<1x56x28xf32> to vector<56x28xf32>
    %cst_170 = arith.constant dense<0.000000e+00> : vector<56x224xf32>
    %187 = tpu.matmul %186, %184, %cst_170 {dimension_numbers = #tpu.dot_dimension_numbers<[1], [0], [0], [1], [0, 0, 1, 1], [], []>} : vector<56x28xf32>, vector<28x224xf32>, vector<56x224xf32> -> vector<56x224xf32>
    %188 = arith.addf %181, %187 : vector<56x224xf32>
    %cst_171 = arith.constant dense<0.000000e+00> : vector<224xf32>
    %189 = vector.multi_reduction <add>, %188, %cst_171 [0] : vector<56x224xf32> to vector<224xf32>
    %190 = vector.shape_cast %189 : vector<224xf32> to vector<1x224xf32>
    %191 = arith.mulf %188, %188 : vector<56x224xf32>
    %cst_172 = arith.constant dense<0.000000e+00> : vector<224xf32>
    %192 = vector.multi_reduction <add>, %191, %cst_172 [0] : vector<56x224xf32> to vector<224xf32>
    %193 = vector.shape_cast %192 : vector<224xf32> to vector<1x224xf32>
    %c0_173 = arith.constant 0 : index
    %c0_174 = arith.constant 0 : index
    %194 = vector.load %arg15[%c0_173, %c0_174] : memref<224x8xf32, #tpu.memory_space<vmem>>, vector<224x8xf32>
    %cst_175 = arith.constant dense<0.000000e+00> : vector<1x8xf32>
    %195 = tpu.matmul %190, %194, %cst_175 {dimension_numbers = #tpu.dot_dimension_numbers<[1], [0], [0], [1], [0, 0, 1, 1], [], []>} : vector<1x224xf32>, vector<224x8xf32>, vector<1x8xf32> -> vector<1x8xf32>
    %cst_176 = arith.constant 6.37755089E-4 : f32
    %196 = vector.broadcast %cst_176 : f32 to vector<1x8xf32>
    %197 = arith.mulf %195, %196 : vector<1x8xf32>
    %c0_177 = arith.constant 0 : index
    %c0_178 = arith.constant 0 : index
    %198 = vector.load %arg15[%c0_177, %c0_178] : memref<224x8xf32, #tpu.memory_space<vmem>>, vector<224x8xf32>
    %cst_179 = arith.constant dense<0.000000e+00> : vector<1x8xf32>
    %199 = tpu.matmul %193, %198, %cst_179 {dimension_numbers = #tpu.dot_dimension_numbers<[1], [0], [0], [1], [0, 0, 1, 1], [], []>} : vector<1x224xf32>, vector<224x8xf32>, vector<1x8xf32> -> vector<1x8xf32>
    %cst_180 = arith.constant 6.37755089E-4 : f32
    %200 = vector.broadcast %cst_180 : f32 to vector<1x8xf32>
    %201 = arith.mulf %199, %200 : vector<1x8xf32>
    %202 = arith.mulf %197, %197 : vector<1x8xf32>
    %203 = arith.subf %201, %202 : vector<1x8xf32>
    %cst_181 = arith.constant 9.99999974E-6 : f32
    %204 = vector.broadcast %cst_181 : f32 to vector<1x8xf32>
    %205 = arith.addf %203, %204 : vector<1x8xf32>
    %206 = math.rsqrt %205 : vector<1x8xf32>
    %c0_182 = arith.constant 0 : index
    %c0_183 = arith.constant 0 : index
    %207 = vector.load %arg16[%c0_182, %c0_183] : memref<8x224xf32, #tpu.memory_space<vmem>>, vector<8x224xf32>
    %cst_184 = arith.constant dense<0.000000e+00> : vector<1x224xf32>
    %208 = tpu.matmul %206, %207, %cst_184 {dimension_numbers = #tpu.dot_dimension_numbers<[1], [0], [0], [1], [0, 0, 1, 1], [], []>} : vector<1x8xf32>, vector<8x224xf32>, vector<1x224xf32> -> vector<1x224xf32>
    %209 = arith.mulf %197, %206 : vector<1x8xf32>
    %c0_185 = arith.constant 0 : index
    %c0_186 = arith.constant 0 : index
    %210 = vector.load %arg16[%c0_185, %c0_186] : memref<8x224xf32, #tpu.memory_space<vmem>>, vector<8x224xf32>
    %cst_187 = arith.constant dense<0.000000e+00> : vector<1x224xf32>
    %211 = tpu.matmul %209, %210, %cst_187 {dimension_numbers = #tpu.dot_dimension_numbers<[1], [0], [0], [1], [0, 0, 1, 1], [], []>} : vector<1x8xf32>, vector<8x224xf32>, vector<1x224xf32> -> vector<1x224xf32>
    %212 = vector.broadcast %208 : vector<1x224xf32> to vector<56x224xf32>
    %213 = arith.mulf %188, %212 : vector<56x224xf32>
    %214 = vector.broadcast %211 : vector<1x224xf32> to vector<56x224xf32>
    %215 = arith.subf %213, %214 : vector<56x224xf32>
    %cst_188 = arith.constant 0.000000e+00 : f32
    %216 = vector.broadcast %cst_188 : f32 to vector<56x224xf32>
    %217 = arith.maximumf %215, %216 : vector<56x224xf32>
    %c0_189 = arith.constant 0 : index
    %c0_190 = arith.constant 0 : index
    %c0_191 = arith.constant 0 : index
    %218 = vector.load %arg17[%c0_189, %c0_190, %c0_191] : memref<3x224x28xf32, #tpu.memory_space<vmem>>, vector<1x224x28xf32>
    %219 = vector.shape_cast %218 : vector<1x224x28xf32> to vector<224x28xf32>
    %cst_192 = arith.constant dense<0.000000e+00> : vector<56x28xf32>
    %220 = tpu.matmul %217, %219, %cst_192 {dimension_numbers = #tpu.dot_dimension_numbers<[1], [0], [0], [1], [0, 0, 1, 1], [], []>} : vector<56x224xf32>, vector<224x28xf32>, vector<56x28xf32> -> vector<56x28xf32>
    %c0_193 = arith.constant 0 : index
    %c0_194 = arith.constant 0 : index
    %c0_195 = arith.constant 0 : index
    %221 = vector.load %arg18[%c0_193, %c0_194, %c0_195] : memref<3x56x56xf32, #tpu.memory_space<vmem>>, vector<1x56x56xf32>
    %222 = vector.shape_cast %221 : vector<1x56x56xf32> to vector<56x56xf32>
    %cst_196 = arith.constant dense<0.000000e+00> : vector<56x28xf32>
    %223 = tpu.matmul %222, %220, %cst_196 {dimension_numbers = #tpu.dot_dimension_numbers<[1], [0], [0], [1], [0, 0, 1, 1], [], []>} : vector<56x56xf32>, vector<56x28xf32>, vector<56x28xf32> -> vector<56x28xf32>
    %c1_197 = arith.constant 1 : index
    %c0_198 = arith.constant 0 : index
    %c0_199 = arith.constant 0 : index
    %224 = vector.load %arg17[%c1_197, %c0_198, %c0_199] : memref<3x224x28xf32, #tpu.memory_space<vmem>>, vector<1x224x28xf32>
    %225 = vector.shape_cast %224 : vector<1x224x28xf32> to vector<224x28xf32>
    %cst_200 = arith.constant dense<0.000000e+00> : vector<56x28xf32>
    %226 = tpu.matmul %217, %225, %cst_200 {dimension_numbers = #tpu.dot_dimension_numbers<[1], [0], [0], [1], [0, 0, 1, 1], [], []>} : vector<56x224xf32>, vector<224x28xf32>, vector<56x28xf32> -> vector<56x28xf32>
    %c1_201 = arith.constant 1 : index
    %c0_202 = arith.constant 0 : index
    %c0_203 = arith.constant 0 : index
    %227 = vector.load %arg18[%c1_201, %c0_202, %c0_203] : memref<3x56x56xf32, #tpu.memory_space<vmem>>, vector<1x56x56xf32>
    %228 = vector.shape_cast %227 : vector<1x56x56xf32> to vector<56x56xf32>
    %cst_204 = arith.constant dense<0.000000e+00> : vector<56x28xf32>
    %229 = tpu.matmul %228, %226, %cst_204 {dimension_numbers = #tpu.dot_dimension_numbers<[1], [0], [0], [1], [0, 0, 1, 1], [], []>} : vector<56x56xf32>, vector<56x28xf32>, vector<56x28xf32> -> vector<56x28xf32>
    %230 = arith.addf %223, %229 : vector<56x28xf32>
    %c2_205 = arith.constant 2 : index
    %c0_206 = arith.constant 0 : index
    %c0_207 = arith.constant 0 : index
    %231 = vector.load %arg17[%c2_205, %c0_206, %c0_207] : memref<3x224x28xf32, #tpu.memory_space<vmem>>, vector<1x224x28xf32>
    %232 = vector.shape_cast %231 : vector<1x224x28xf32> to vector<224x28xf32>
    %cst_208 = arith.constant dense<0.000000e+00> : vector<56x28xf32>
    %233 = tpu.matmul %217, %232, %cst_208 {dimension_numbers = #tpu.dot_dimension_numbers<[1], [0], [0], [1], [0, 0, 1, 1], [], []>} : vector<56x224xf32>, vector<224x28xf32>, vector<56x28xf32> -> vector<56x28xf32>
    %c2_209 = arith.constant 2 : index
    %c0_210 = arith.constant 0 : index
    %c0_211 = arith.constant 0 : index
    %234 = vector.load %arg18[%c2_209, %c0_210, %c0_211] : memref<3x56x56xf32, #tpu.memory_space<vmem>>, vector<1x56x56xf32>
    %235 = vector.shape_cast %234 : vector<1x56x56xf32> to vector<56x56xf32>
    %cst_212 = arith.constant dense<0.000000e+00> : vector<56x28xf32>
    %236 = tpu.matmul %235, %233, %cst_212 {dimension_numbers = #tpu.dot_dimension_numbers<[1], [0], [0], [1], [0, 0, 1, 1], [], []>} : vector<56x56xf32>, vector<56x28xf32>, vector<56x28xf32> -> vector<56x28xf32>
    %237 = arith.addf %230, %236 : vector<56x28xf32>
    %238 = math.tanh %237 : vector<56x28xf32>
    %c0_213 = arith.constant 0 : index
    %c0_214 = arith.constant 0 : index
    %239 = vector.load %arg19[%c0_213, %c0_214] : memref<56x28xf32, #tpu.memory_space<vmem>>, vector<56x28xf32>
    tpu.vector_store %arg19[%c0_213, %c0_214], %238 {strides = array<i32>} : memref<56x28xf32, #tpu.memory_space<vmem>>, vector<56x28xf32>,
    return
  }
}

</mosaic_0001>

<bundles_post_ra>
// kernel: generator_forward.1
= control target key start
LH: loop header
LB: loop body
LE: loop exit
PB: predicated region body
PF: predicated region fallthrough
CT: control target
= control target key end

     0   :  { %s9939_s0 = inlined_call_operand.vmem [shape: f32[2,8], index: 0, kind: input, shape index: {}]   ;;  %s9940_s1 = inlined_call_operand.hbm [shape: f32[4,8,256], index: 1, kind: input, shape index: {}]   ;;  %s9941_s2 = inlined_call_operand.vmem [shape: f32[4,8,2], index: 2, kind: input, shape index: {}]   ;;  %s9942_s3 = inlined_call_operand.vmem [shape: f32[256,64], index: 3, kind: input, shape index: {}]   ;;  %s9943_s4 = inlined_call_operand.hbm [shape: f32[64,256], index: 4, kind: input, shape index: {}]   ;;  %s9944_s5 = inlined_call_operand.vmem [shape: f32[3,256,224], index: 5, kind: input, shape index: {}]   ;;  %s9945_s6 = inlined_call_operand.vmem [shape: f32[3,14,8], index: 6, kind: input, shape index: {}]   ;;  %s9946_s7 = inlined_call_operand.vmem [shape: f32[224,32], index: 7, kind: input, shape index: {}]   ;;  %s9947_s8 = inlined_call_operand.hbm [shape: f32[32,224], index: 8, kind: input, shape index: {}]   ;;  %s9948_s9 = inlined_call_operand.vmem [shape: f32[4,224,224], index: 9, kind: input, shape index: {}]   ;;  %s9949_s10 = inlined_call_operand.vmem [shape: f32[4,28,14], index: 10, kind: input, shape index: {}]   ;;  %s9950_s11 = inlined_call_operand.vmem [shape: f32[224,16], index: 11, kind: input, shape index: {}]   ;;  %s9951_s12 = inlined_call_operand.hbm [shape: f32[16,224], index: 12, kind: input, shape index: {}]   ;;  %s9952_s13 = inlined_call_operand.vmem [shape: f32[4,224,224], index: 13, kind: input, shape index: {}]   ;;  %s9953_s14 = inlined_call_operand.vmem [shape: f32[4,56,28], index: 14, kind: input, shape index: {}]   ;;  %s9954_s15 = inlined_call_operand.vmem [shape: f32[224,8], index: 15, kind: input, shape index: {}]   ;;  %s9955_s16 = inlined_call_operand.hbm [shape: f32[8,224], index: 16, kind: input, shape index: {}]   ;;  %s9956_s17 = inlined_call_operand.vmem [shape: f32[3,224,28], index: 17, kind: input, shape index: {}]   ;;  %s9957_s18 = inlined_call_operand.vmem [shape: f32[3,56,56], index: 18, kind: input, shape index: {}]   ;;  %s9958_s19 = inlined_call_operand.hbm [shape: f32[56,28], index: 19, kind: output, shape index: {}]  }
   0x1   :  { %9961 = sst [smem:[#allocation22_spill]] %s9939_s0 }
   0x2   :  { %9962 = sst [smem:[#allocation23_spill]] %s9940_s1 }
   0x3   :  { %9963 = sst [smem:[#allocation24_spill]] %s9941_s2 }
   0x4   :  { %9964 = sst [smem:[#allocation25_spill]] %s9942_s3 }
   0x5   :  { %9965 = sst [smem:[#allocation26_spill]] %s9958_s19 }
   0x6   :  { %24 = vsyncpa [#allocation3], 0 }
   0x7   :  { %25 = vsyncpa [#allocation6], 0 }
   0x8   :  { %26 = vsyncpa [#allocation9], 0 }
   0x9   :  { %27 = vsyncpa [#allocation4], 0  ;;  %s51_s20 = sshll.u32 %s9943_s4, 4  ;;  %s6024_s21 = smov [#allocation5]   ;;  %s52_s20 = int_to_ptr.hbm [resolvable:$true] %s51_s20 }
   0xa   :  { %s53_s1 = sshll.u32 %s6024_s21, 4  ;;  %s89_s23 = sshll.u32 %s9951_s12, 4  ;;  %s54_s1 = int_to_ptr.vmem [resolvable:$true] %s53_s1  ;;  %s90_s23 = int_to_ptr.hbm [resolvable:$true] %s89_s23 }
   0xb   :  { %s6025_s24 = smov 256   ;;  %s6026_s25 = smov 16  }
   0xc   :  { %59 = dma.hbm_to_vmem [thread:$0]  %s52_s20, 2048, %s54_s1, [#allocation6], %s6025_s24, %s6025_s24, %s6026_s25  }
   0xd   :  { %s6027_s3 = smov [#allocation8]   ;;  %s9966_s29 = sld [smem:[#allocation23_spill]] }
   0xe   :  { %s91_s26 = sshll.u32 %s6027_s3, 4  ;;  %s70_s30 = sshll.u32 %s9947_s8, 4  ;;  %s92_s26 = int_to_ptr.vmem [resolvable:$true] %s91_s26  ;;  %s71_s30 = int_to_ptr.hbm [resolvable:$true] %s70_s30 }
   0xf   :  { %97 = dma.hbm_to_vmem [thread:$0]  %s90_s23, 512, %s92_s26, [#allocation9], %s6025_s24, %s6025_s24, %s6026_s25  }
  0x10   :  { %s6028_s21 = smov [#allocation2]   ;;  %s6029_s12 = smov [#allocation7]  }
  0x11   :  { %s36_s22 = sshll.u32 %s6028_s21, 4  ;;  %s72_s20 = sshll.u32 %s6029_s12, 4  ;;  %s37_s22 = int_to_ptr.vmem [resolvable:$true] %s36_s22  ;;  %s73_s20 = int_to_ptr.vmem [resolvable:$true] %s72_s20 }
  0x12   :  { %s109_s3 = sshll.u32 %s9955_s16, 4  ;;  %s6030_s27 = smov [#allocation10]   ;;  %s110_s3 = int_to_ptr.hbm [resolvable:$true] %s109_s3 }
  0x13   :  { %s34_s19 = sshll.u32 %s9966_s29, 4  ;;  %s111_s23 = sshll.u32 %s6030_s27, 4  ;;  %s35_s19 = int_to_ptr.hbm [resolvable:$true] %s34_s19  ;;  %s112_s23 = int_to_ptr.vmem [resolvable:$true] %s111_s23 }
  0x14   :  { %42 = dma.hbm_to_vmem [thread:$0]  %s35_s19, 1024, %s37_s22, [#allocation3], %s6025_s24, %s6025_s24, %s6026_s25  }
  0x15   :  { %78 = dma.hbm_to_vmem [thread:$0]  %s71_s30, 1024, %s73_s20, [#allocation6], %s6025_s24, %s6025_s24, %s6026_s25  }
  0x16   :  { %114 = dma.hbm_to_vmem [thread:$0]  %s110_s3, 256, %s112_s23, [#allocation9]  }
  0x17   :  { %6016 = dma.done.wait [#allocation3], 1024  }
  0x18   :  { %6017 = vsyncadd [#allocation3], 4294966272 }
  0x19   :  { %6018 = dma.done.wait [#allocation6], 3072  }
  0x1a   :  { %6019 = vsyncadd [#allocation6], 4294964224 }
  0x1b   :  { %6020 = dma.done.wait [#allocation9], 768  }
  0x1c   :  { %6021 = vsyncadd [#allocation9], 4294966528  ;;  %v140_v0 = vld [vmem:[#allocation2] sm:$0xff]  ;;  %v141_v1 = vld [vmem:[#allocation2 + $0x8] sm:$0xff]  ;;  %vm142_vm0 = vcmask 64512   ;;  %s9967_s19 = sld [smem:[#allocation22_spill]] }
  0x1d   :  { %v188_v2 = vld [vmem:[#allocation2 + $0x10] sm:$0xff]  ;;  %161 = vmatpush.msra.mxu0 %v140_v0  ;;  %181 = vmatpush.msra.mxu1 %v141_v1  ;;  %v189_v3 = vld [vmem:[#allocation2 + $0x18] sm:$0xff]  ;;  %vm236_vm1 = vcmask 1041408   ;;  %s9968_s26 = sld [smem:[#allocation24_spill]]  ;;  %vm232_vm2 = vcmask 15360   ;;  %v333_v11 = vld [vmem:[#allocation2 + $0x20] sm:$0xff] }
  0x1e   :  { %205 = vmatpush.msra.mxu2 %v188_v2  ;;  %225 = vmatpush.msra.mxu3 %v189_v3  ;;  %v334_v12 = vld [vmem:[#allocation2 + $0x28] sm:$0xff]  ;;  %v429_v13 = vld [vmem:[#allocation2 + $0x30] sm:$0xff]  ;;  %v430_v14 = vld [vmem:[#allocation2 + $0x38] sm:$0xff]  ;;  %s9969_s30 = sld [smem:[#allocation25_spill]]  ;;  %vm693_vm5 = vcmask 523264   ;;  %vm1402_vm7 = vcmask 785408  }
  0x1f   :  { %vm1404_vm8 = vcmask 783360   ;;  %vm1393_vm9 = vcmask 1045504   ;;  %vm1571_vm12 = vcmask 261120   ;;  %vm1987_vm14 = vcmask 113664   ;;  %s9982_s3 = sld [smem:[#allocation26_spill]]  ;;  %s6032_s23 = smov 128  }
  0x20   :  { %vm2618_vm15 = vcmask 1043456  }
  0x22   :  { %v139_v4 = vld [vmem:[%s9967_s19] sm:$0x3] }
  0x23   :  { %5014 = vmatmul.msk.f32.vlgmr.msra.gmra.mxu0 %vm142_vm0, %v139_v4  ;;  %5015 = vmatmul.msk.f32.vlgmr.msra.gmra.mxu1 %vm142_vm0, %v139_v4  ;;  %v186_v5 = vld [vmem:[%s9968_s26] sm:$0xff]  ;;  %v5018_v8 = vld [vmem:[%s9968_s26 + $0x8] sm:$0xff]  ;;  %v5029_v25 = vld [vmem:[%s9968_s26 + $0x10] sm:$0xff] }
  0x24   :  { %5016 = vmatmul.msk.f32.vlgmr.msra.gmra.mxu2 %vm142_vm0, %v139_v4  ;;  %5017 = vmatmul.msk.f32.vlgmr.msra.gmra.mxu3 %vm142_vm0, %v139_v4  ;;  %v565_v15 = vld [vmem:[%s9969_s30 + $0x78] sm:$0xff]  ;;  %v564_v17 = vld [vmem:[%s9969_s30 + $0x70] sm:$0xff]  ;;  %v563_v19 = vld [vmem:[%s9969_s30 + $0x68] sm:$0xff] }
  0x25   :  { %v581_v16 = vld [vmem:[%s9969_s30 + $0xf8] sm:$0xff]  ;;  %v580_v18 = vld [vmem:[%s9969_s30 + $0xf0] sm:$0xff]  ;;  %v579_v20 = vld [vmem:[%s9969_s30 + $0xe8] sm:$0xff]  ;;  %s4999_s27 = sshll.u32 %s9982_s3, 4  ;;  %s5000_s27 = int_to_ptr.hbm [resolvable:$true] %s4999_s27 }
  0x26   :  { %v562_v21 = vld [vmem:[%s9969_s30 + $0x60] sm:$0xff]  ;;  %v5036_v28 = vld [vmem:[%s9968_s26 + $0x18] sm:$0xff]  ;;  %v560_v33 = vld [vmem:[%s9969_s30 + $0x50] sm:$0xff] }
  0x27   :  { %v578_v22 = vld [vmem:[%s9969_s30 + $0xe0] sm:$0xff]  ;;  %v561_v31 = vld [vmem:[%s9969_s30 + $0x58] sm:$0xff]  ;;  %v576_v34 = vld [vmem:[%s9969_s30 + $0xd0] sm:$0xff] }
  0x28   :  { %v577_v32 = vld [vmem:[%s9969_s30 + $0xd8] sm:$0xff]  ;;  %v559_v35 = vld [vmem:[%s9969_s30 + $0x48] sm:$0xff]  ;;  %v558_v37 = vld [vmem:[%s9969_s30 + $0x40] sm:$0xff] }
  0x29   :  { %v575_v36 = vld [vmem:[%s9969_s30 + $0xc8] sm:$0xff]  ;;  %v574_v38 = vld [vmem:[%s9969_s30 + $0xc0] sm:$0xff]  ;;  %v557_v39 = vld [vmem:[%s9969_s30 + $0x38] sm:$0xff] }
  0x2a   :  { %v573_v40 = vld [vmem:[%s9969_s30 + $0xb8] sm:$0xff]  ;;  %v556_v41 = vld [vmem:[%s9969_s30 + $0x30] sm:$0xff]  ;;  %v555_v43 = vld [vmem:[%s9969_s30 + $0x28] sm:$0xff] }
  0x2b   :  { %v572_v42 = vld [vmem:[%s9969_s30 + $0xb0] sm:$0xff]  ;;  %v571_v44 = vld [vmem:[%s9969_s30 + $0xa8] sm:$0xff]  ;;  %v554_v45 = vld [vmem:[%s9969_s30 + $0x20] sm:$0xff] }
  0x2c   :  { %v570_v46 = vld [vmem:[%s9969_s30 + $0xa0] sm:$0xff]  ;;  %v553_v47 = vld [vmem:[%s9969_s30 + $0x18] sm:$0xff]  ;;  %v552_v49 = vld [vmem:[%s9969_s30 + $0x10] sm:$0xff] }
  0x2d   :  { %v569_v48 = vld [vmem:[%s9969_s30 + $0x98] sm:$0xff]  ;;  %v568_v50 = vld [vmem:[%s9969_s30 + $0x90] sm:$0xff]  ;;  %v551_v51 = vld [vmem:[%s9969_s30 + $0x8] sm:$0xff] }
  0x2e   :  { %v567_v52 = vld [vmem:[%s9969_s30 + $0x88] sm:$0xff]  ;;  %v550_v53 = vld [vmem:[%s9969_s30] sm:$0xff] }
  0x2f   :  { %v566_v54 = vld [vmem:[%s9969_s30 + $0x80] sm:$0xff]  ;;  %s6033_s30 = smov 8  }
  0xa0   :  { %v163_v6 = vpop.f32.mrf.mxu0  ;;  %v183_v7 = vpop.f32.mrf.mxu1 }
  0xa1   :  { %5023 = vmatpush.msk.msrb.mxu2 %vm236_vm1, %v163_v6  ;;  %5025 = vmatpush.msk.msrb.mxu3 %vm236_vm1, %v183_v7 }
  0xa2   :  { %5024 = vmatmul.msk.f32.vlgmr.msrb.gmra.mxu2 %vm232_vm2, %v186_v5  ;;  %5026 = vmatmul.msk.f32.vlgmr.msrb.gmra.mxu3 %vm232_vm2, %v186_v5 }
  0xa7   :  { %v207_v9 = vpop.f32.mrf.mxu2  ;;  %v227_v10 = vpop.f32.mrf.mxu3 }
  0xa8   :  { %5019 = vmatpush.msk.msrb.mxu0 %vm236_vm1, %v207_v9  ;;  %5021 = vmatpush.msk.msrb.mxu1 %vm236_vm1, %v227_v10 }
  0xa9   :  { %5020 = vmatmul.msk.f32.vlgmr.msrb.gmra.mxu0 %vm232_vm2, %v5018_v8  ;;  %5022 = vmatmul.msk.f32.vlgmr.msrb.gmra.mxu1 %vm232_vm2, %v5018_v8 }
  0xaa   :  { %350 = vmatpush.msra.mxu0 %v333_v11  ;;  %370 = vmatpush.msra.mxu1 %v334_v12 }
  0xac   :  { %446 = vmatpush.msrb.mxu0 %v429_v13  ;;  %466 = vmatpush.msrb.mxu1 %v430_v14 }
  0xb1   :  { %5027 = vmatmul.msk.f32.vlgmr.msra.gmra.mxu0 %vm142_vm0, %v139_v4  ;;  %5028 = vmatmul.msk.f32.vlgmr.msra.gmra.mxu1 %vm142_vm0, %v139_v4 }
  0xb2   :  { %582 = vmatpush.msra.mxu0 %v565_v15  ;;  %602 = vmatpush.msra.mxu1 %v581_v16 }
  0xb4   :  { %583 = vmatpush.msra.mxu0 %v564_v17  ;;  %603 = vmatpush.msra.mxu1 %v580_v18 }
  0xb6   :  { %584 = vmatpush.msra.mxu0 %v563_v19  ;;  %604 = vmatpush.msra.mxu1 %v579_v20 }
  0xb8   :  { %585 = vmatpush.msra.mxu0 %v562_v21  ;;  %605 = vmatpush.msra.mxu1 %v578_v22 }
  0xb9   :  { %5034 = vmatmul.msk.f32.vlgmr.msrb.gmra.mxu0 %vm142_vm0, %v139_v4  ;;  %5035 = vmatmul.msk.f32.vlgmr.msrb.gmra.mxu1 %vm142_vm0, %v139_v4 }
  0xba   :  { %586 = vmatpush.msra.mxu0 %v561_v31  ;;  %606 = vmatpush.msra.mxu1 %v577_v32 }
  0xbc   :  { %587 = vmatpush.msra.mxu0 %v560_v33  ;;  %607 = vmatpush.msra.mxu1 %v576_v34 }
  0xbe   :  { %588 = vmatpush.msra.mxu0 %v559_v35  ;;  %608 = vmatpush.msra.mxu1 %v575_v36 }
  0xc0   :  { %589 = vmatpush.msra.mxu0 %v558_v37  ;;  %609 = vmatpush.msra.mxu1 %v574_v38 }
  0xc2   :  { %590 = vmatpush.msra.mxu0 %v557_v39  ;;  %610 = vmatpush.msra.mxu1 %v573_v40 }
  0xc4   :  { %591 = vmatpush.msra.mxu0 %v556_v41  ;;  %611 = vmatpush.msra.mxu1 %v572_v42 }
  0xc6   :  { %592 = vmatpush.msra.mxu0 %v555_v43  ;;  %612 = vmatpush.msra.mxu1 %v571_v44 }
  0xc8   :  { %593 = vmatpush.msra.mxu0 %v554_v45  ;;  %613 = vmatpush.msra.mxu1 %v570_v46 }
  0xca   :  { %594 = vmatpush.msra.mxu0 %v553_v47  ;;  %614 = vmatpush.msra.mxu1 %v569_v48 }
  0xcc   :  { %595 = vmatpush.msra.mxu0 %v552_v49  ;;  %615 = vmatpush.msra.mxu1 %v568_v50 }
  0xce   :  { %596 = vmatpush.msra.mxu0 %v551_v51  ;;  %616 = vmatpush.msra.mxu1 %v567_v52 }
  0xd0   :  { %597 = vmatpush.msra.mxu0 %v550_v53  ;;  %617 = vmatpush.msra.mxu1 %v566_v54 }
 0x125   :  { %v309_v55 = vpop.f32.mrf.mxu2  ;;  %v329_v56 = vpop.f32.mrf.mxu3 }
 0x126   :  { %v6198_v23 = vpop.f32.mrf.mxu0  ;;  %v6200_v24 = vpop.f32.mrf.mxu1 }
 0x127   :  { %v310_v59 = vadd.f32 %v309_v55, %v6198_v23  ;;  %v330_v60 = vadd.f32 %v329_v56, %v6200_v24  ;;  %v820_v55 = vld [vmem:[%s9944_s5 + $0xe8] sm:$0xff] }
 0x128   :  { %v852_v56 = vld [vmem:[%s9944_s5 + $0x1e8] sm:$0xff] }
 0x12e   :  { %v352_v26 = vpop.f32.mrf.mxu0  ;;  %v372_v27 = vpop.f32.mrf.mxu1 }
 0x12f   :  { %5030 = vmatpush.msk.msra.mxu2 %vm236_vm1, %v352_v26  ;;  %5032 = vmatpush.msk.msra.mxu3 %vm236_vm1, %v372_v27 }
 0x130   :  { %5031 = vmatmul.msk.f32.vlgmr.msra.gmra.mxu2 %vm232_vm2, %v5029_v25  ;;  %5033 = vmatmul.msk.f32.vlgmr.msra.gmra.mxu3 %vm232_vm2, %v5029_v25 }
 0x136   :  { %v448_v29 = vpop.f32.mrf.mxu0  ;;  %v468_v30 = vpop.f32.mrf.mxu1 }
 0x137   :  { %5037 = vmatpush.msk.msrb.mxu2 %vm236_vm1, %v448_v29  ;;  %5039 = vmatpush.msk.msrb.mxu3 %vm236_vm1, %v468_v30  ;;  %v691_v29 = vld [vmem:[#allocation5 + $0x70] sm:$0xff]  ;;  %v692_v30 = vld [vmem:[#allocation5 + $0x78] sm:$0xff]  ;;  %vm2632_vm1 = vcmask 781312  }
 0x138   :  { %5038 = vmatmul.msk.f32.vlgmr.msrb.gmra.mxu2 %vm232_vm2, %v5036_v28  ;;  %5040 = vmatmul.msk.f32.vlgmr.msrb.gmra.mxu3 %vm232_vm2, %v5036_v28 }
 0x139   :  { %623 = vmatpush.msra.mxu2 %v565_v15  ;;  %643 = vmatpush.msra.mxu3 %v581_v16 }
 0x13a   :  { %705 = vmatpush.msrb.mxu0 %v691_v29  ;;  %725 = vmatpush.msrb.mxu1 %v692_v30 }
 0x13b   :  { %624 = vmatpush.msra.mxu2 %v564_v17  ;;  %644 = vmatpush.msra.mxu3 %v580_v18 }
 0x13d   :  { %625 = vmatpush.msra.mxu2 %v563_v19  ;;  %645 = vmatpush.msra.mxu3 %v579_v20 }
 0x13f   :  { %626 = vmatpush.msra.mxu2 %v562_v21  ;;  %646 = vmatpush.msra.mxu3 %v578_v22 }
 0x141   :  { %627 = vmatpush.msra.mxu2 %v561_v31  ;;  %647 = vmatpush.msra.mxu3 %v577_v32  ;;  %v689_v31 = vld [vmem:[#allocation5 + $0x60] sm:$0xff]  ;;  %v690_v32 = vld [vmem:[#allocation5 + $0x68] sm:$0xff] }
 0x142   :  { %706 = vmatpush.msrb.mxu0 %v689_v31  ;;  %726 = vmatpush.msrb.mxu1 %v690_v32 }
 0x143   :  { %628 = vmatpush.msra.mxu2 %v560_v33  ;;  %648 = vmatpush.msra.mxu3 %v576_v34  ;;  %v687_v33 = vld [vmem:[#allocation5 + $0x50] sm:$0xff]  ;;  %v688_v34 = vld [vmem:[#allocation5 + $0x58] sm:$0xff] }
 0x144   :  { %707 = vmatpush.msrb.mxu0 %v687_v33  ;;  %727 = vmatpush.msrb.mxu1 %v688_v34 }
 0x145   :  { %629 = vmatpush.msra.mxu2 %v559_v35  ;;  %649 = vmatpush.msra.mxu3 %v575_v36  ;;  %v685_v35 = vld [vmem:[#allocation5 + $0x40] sm:$0xff]  ;;  %v686_v36 = vld [vmem:[#allocation5 + $0x48] sm:$0xff] }
 0x146   :  { %708 = vmatpush.msrb.mxu0 %v685_v35  ;;  %728 = vmatpush.msrb.mxu1 %v686_v36 }
 0x147   :  { %630 = vmatpush.msra.mxu2 %v558_v37  ;;  %650 = vmatpush.msra.mxu3 %v574_v38  ;;  %v683_v37 = vld [vmem:[#allocation5 + $0x30] sm:$0xff]  ;;  %v684_v38 = vld [vmem:[#allocation5 + $0x38] sm:$0xff] }
 0x148   :  { %709 = vmatpush.msrb.mxu0 %v683_v37  ;;  %729 = vmatpush.msrb.mxu1 %v684_v38 }
 0x149   :  { %631 = vmatpush.msra.mxu2 %v557_v39  ;;  %651 = vmatpush.msra.mxu3 %v573_v40  ;;  %v681_v39 = vld [vmem:[#allocation5 + $0x20] sm:$0xff]  ;;  %v682_v40 = vld [vmem:[#allocation5 + $0x28] sm:$0xff] }
 0x14a   :  { %710 = vmatpush.msrb.mxu0 %v681_v39  ;;  %730 = vmatpush.msrb.mxu1 %v682_v40 }
 0x14b   :  { %632 = vmatpush.msra.mxu2 %v556_v41  ;;  %652 = vmatpush.msra.mxu3 %v572_v42  ;;  %v679_v41 = vld [vmem:[#allocation5 + $0x10] sm:$0xff]  ;;  %v680_v42 = vld [vmem:[#allocation5 + $0x18] sm:$0xff] }
 0x14c   :  { %711 = vmatpush.msrb.mxu0 %v679_v41  ;;  %731 = vmatpush.msrb.mxu1 %v680_v42 }
 0x14d   :  { %633 = vmatpush.msra.mxu2 %v555_v43  ;;  %653 = vmatpush.msra.mxu3 %v571_v44  ;;  %v677_v43 = vld [vmem:[#allocation5] sm:$0xff]  ;;  %v678_v44 = vld [vmem:[#allocation5 + $0x8] sm:$0xff] }
 0x14e   :  { %712 = vmatpush.msrb.mxu0 %v677_v43  ;;  %732 = vmatpush.msrb.mxu1 %v678_v44 }
 0x14f   :  { %634 = vmatpush.msra.mxu2 %v554_v45  ;;  %654 = vmatpush.msra.mxu3 %v570_v46 }
 0x151   :  { %635 = vmatpush.msra.mxu2 %v553_v47  ;;  %655 = vmatpush.msra.mxu3 %v569_v48  ;;  %v821_v48 = vld [vmem:[%s9944_s5 + $0xf0] sm:$0xff] }
 0x153   :  { %636 = vmatpush.msra.mxu2 %v552_v49  ;;  %656 = vmatpush.msra.mxu3 %v568_v50  ;;  %v853_v49 = vld [vmem:[%s9944_s5 + $0x1f0] sm:$0xff]  ;;  %v822_v50 = vld [vmem:[%s9944_s5 + $0xf8] sm:$0xff] }
 0x155   :  { %637 = vmatpush.msra.mxu2 %v551_v51  ;;  %657 = vmatpush.msra.mxu3 %v567_v52  ;;  %v854_v51 = vld [vmem:[%s9944_s5 + $0x1f8] sm:$0xff]  ;;  %v819_v52 = vld [vmem:[%s9944_s5 + $0xe0] sm:$0xff] }
 0x157   :  { %638 = vmatpush.msra.mxu2 %v550_v53  ;;  %658 = vmatpush.msra.mxu3 %v566_v54  ;;  %v851_v53 = vld [vmem:[%s9944_s5 + $0x1e0] sm:$0xff] }
 0x159   :  { %749 = vmatpush.msrb.mxu2 %v691_v29  ;;  %769 = vmatpush.msrb.mxu3 %v692_v30  ;;  %v838_v29 = vld [vmem:[%s9944_s5 + $0x178] sm:$0xff]  ;;  %v803_v30 = vld [vmem:[%s9944_s5 + $0x60] sm:$0xff] }
 0x15b   :  { %750 = vmatpush.msrb.mxu2 %v689_v31  ;;  %770 = vmatpush.msrb.mxu3 %v690_v32  ;;  %v835_v31 = vld [vmem:[%s9944_s5 + $0x160] sm:$0xff]  ;;  %v804_v32 = vld [vmem:[%s9944_s5 + $0x68] sm:$0xff] }
 0x15d   :  { %751 = vmatpush.msrb.mxu2 %v687_v33  ;;  %771 = vmatpush.msrb.mxu3 %v688_v34  ;;  %v836_v33 = vld [vmem:[%s9944_s5 + $0x168] sm:$0xff] }
 0x15f   :  { %752 = vmatpush.msrb.mxu2 %v685_v35  ;;  %772 = vmatpush.msrb.mxu3 %v686_v36  ;;  %v801_v35 = vld [vmem:[%s9944_s5 + $0x50] sm:$0xff] }
 0x160   :  { %v833_v36 = vld [vmem:[%s9944_s5 + $0x150] sm:$0xff] }
 0x161   :  { %753 = vmatpush.msrb.mxu2 %v683_v37  ;;  %773 = vmatpush.msrb.mxu3 %v684_v38  ;;  %v802_v38 = vld [vmem:[%s9944_s5 + $0x58] sm:$0xff] }
 0x163   :  { %754 = vmatpush.msrb.mxu2 %v681_v39  ;;  %774 = vmatpush.msrb.mxu3 %v682_v40  ;;  %v834_v39 = vld [vmem:[%s9944_s5 + $0x158] sm:$0xff]  ;;  %v799_v40 = vld [vmem:[%s9944_s5 + $0x40] sm:$0xff] }
 0x165   :  { %755 = vmatpush.msrb.mxu2 %v679_v41  ;;  %775 = vmatpush.msrb.mxu3 %v680_v42  ;;  %v831_v41 = vld [vmem:[%s9944_s5 + $0x140] sm:$0xff] }
 0x167   :  { %756 = vmatpush.msrb.mxu2 %v677_v43  ;;  %776 = vmatpush.msrb.mxu3 %v678_v44  ;;  %v800_v43 = vld [vmem:[%s9944_s5 + $0x48] sm:$0xff] }
 0x168   :  { %v832_v44 = vld [vmem:[%s9944_s5 + $0x148] sm:$0xff] }
 0x1b3   :  { %v403_v57 = vpop.f32.mrf.mxu2  ;;  %v423_v58 = vpop.f32.mrf.mxu3 }
 0x1b4   :  { %v426_v61 = vadd.f32 %v403_v57, %v310_v59  ;;  %v427_v62 = vadd.f32 %v423_v58, %v330_v60  ;;  %v817_v57 = vld [vmem:[%s9944_s5 + $0xd0] sm:$0xff] }
 0x1b5   :  { %v849_v60 = vld [vmem:[%s9944_s5 + $0x1d0] sm:$0xff] }
 0x1bb   :  { %v499_v63 = vpop.f32.mrf.mxu2  ;;  %v519_v0 = vpop.f32.mrf.mxu3 }
 0x1bc   :  { %v6290_v1 = vadd.f32 %v499_v63, %v426_v61  ;;  %v6292_v2 = vadd.f32 %v519_v0, %v427_v62  ;;  %v818_v61 = vld [vmem:[%s9944_s5 + $0xd8] sm:$0xff]  ;;  %v815_v0 = vld [vmem:[%s9944_s5 + $0xc0] sm:$0xff] }
 0x1bd   :  { %v850_v62 = vld [vmem:[%s9944_s5 + $0x1d8] sm:$0xff] }
 0x1be   :  { %v524_v3 = vrot.slane %v6290_v1, 4  ;;  %v536_v4 = vmul.f32 %v6290_v1, %v6290_v1  ;;  %v530_v5 = vrot.slane %v6292_v2, 4  ;;  %v537_v6 = vmul.f32 %v6292_v2, %v6292_v2 }
 0x1c0   :  { %v525_v7 = vadd.f32 %v524_v3, %v6290_v1  ;;  %v538_v8 = vrot.slane %v536_v4, 4  ;;  %v531_v9 = vadd.f32 %v530_v5, %v6292_v2  ;;  %v544_v10 = vrot.slane %v537_v6, 4  ;;  %v847_v3 = vld [vmem:[%s9944_s5 + $0x1c0] sm:$0xff]  ;;  %v848_v5 = vld [vmem:[%s9944_s5 + $0x1c8] sm:$0xff] }
 0x1c2   :  { %v526_v11 = vrot.slane %v525_v7, 2  ;;  %v532_v12 = vrot.slane %v531_v9, 2  ;;  %v539_v13 = vadd.f32 %v538_v8, %v536_v4  ;;  %v545_v14 = vadd.f32 %v544_v10, %v537_v6  ;;  %v816_v4 = vld [vmem:[%s9944_s5 + $0xc8] sm:$0xff]  ;;  %v813_v8 = vld [vmem:[%s9944_s5 + $0xb0] sm:$0xff]  ;;  %v814_v10 = vld [vmem:[%s9944_s5 + $0xb8] sm:$0xff] }
 0x1c4   :  { %v527_v15 = vadd.f32 %v526_v11, %v525_v7  ;;  %v533_v16 = vadd.f32 %v532_v12, %v531_v9  ;;  %v540_v17 = vrot.slane %v539_v13, 2  ;;  %v546_v18 = vrot.slane %v545_v14, 2  ;;  %v845_v9 = vld [vmem:[%s9944_s5 + $0x1b0] sm:$0xff]  ;;  %v846_v11 = vld [vmem:[%s9944_s5 + $0x1b8] sm:$0xff] }
 0x1c6   :  { %v528_v19 = vrot.slane %v527_v15, 1  ;;  %v534_v20 = vrot.slane %v533_v16, 1  ;;  %v541_v21 = vadd.f32 %v540_v17, %v539_v13  ;;  %v547_v22 = vadd.f32 %v546_v18, %v545_v14  ;;  %v811_v13 = vld [vmem:[%s9944_s5 + $0xa0] sm:$0xff]  ;;  %v809_v18 = vld [vmem:[%s9944_s5 + $0x90] sm:$0xff] }
 0x1c7   :  { %v843_v14 = vld [vmem:[%s9944_s5 + $0x1a0] sm:$0xff] }
 0x1c8   :  { %v529_v23 = vadd.f32 %v528_v19, %v527_v15  ;;  %v535_v24 = vadd.f32 %v534_v20, %v533_v16  ;;  %v542_v25 = vrot.slane %v541_v21, 1  ;;  %v548_v26 = vrot.slane %v547_v22, 1  ;;  %v812_v15 = vld [vmem:[%s9944_s5 + $0xa8] sm:$0xff]  ;;  %v841_v19 = vld [vmem:[%s9944_s5 + $0x190] sm:$0xff]  ;;  %v810_v20 = vld [vmem:[%s9944_s5 + $0x98] sm:$0xff] }
 0x1c9   :  { %v844_v16 = vld [vmem:[%s9944_s5 + $0x1a8] sm:$0xff] }
 0x1ca   :  { %598 = vmatmul.f32.vlgmr.msra.gmra.mxu0 %v529_v23  ;;  %618 = vmatmul.f32.vlgmr.msra.gmra.mxu1 %v535_v24  ;;  %v543_v27 = vadd.f32 %v542_v25, %v541_v21  ;;  %v549_v28 = vadd.f32 %v548_v26, %v547_v22  ;;  %v842_v21 = vld [vmem:[%s9944_s5 + $0x198] sm:$0xff]  ;;  %v807_v22 = vld [vmem:[%s9944_s5 + $0x80] sm:$0xff]  ;;  %v808_v24 = vld [vmem:[%s9944_s5 + $0x88] sm:$0xff] }
 0x1cb   :  { %855 = vmatpush.msra.mxu0 %v821_v48  ;;  %875 = vmatpush.msra.mxu1 %v853_v49  ;;  %v839_v23 = vld [vmem:[%s9944_s5 + $0x180] sm:$0xff]  ;;  %v840_v25 = vld [vmem:[%s9944_s5 + $0x188] sm:$0xff]  ;;  %v805_v26 = vld [vmem:[%s9944_s5 + $0x70] sm:$0xff] }
 0x1cc   :  { %639 = vmatmul.f32.vlgmr.msra.gmra.mxu2 %v543_v27  ;;  %659 = vmatmul.f32.vlgmr.msra.gmra.mxu3 %v549_v28  ;;  %v837_v27 = vld [vmem:[%s9944_s5 + $0x170] sm:$0xff]  ;;  %v806_v28 = vld [vmem:[%s9944_s5 + $0x78] sm:$0xff] }
 0x1cd   :  { %895 = vmatpush.msra.mxu2 %v822_v50  ;;  %915 = vmatpush.msra.mxu3 %v854_v51  ;;  %v798_v48 = vld [vmem:[%s9944_s5 + $0x38] sm:$0xff]  ;;  %v795_v50 = vld [vmem:[%s9944_s5 + $0x20] sm:$0xff] }
 0x1ce   :  { %856 = vmatpush.msra.mxu0 %v819_v52  ;;  %876 = vmatpush.msra.mxu1 %v851_v53  ;;  %v830_v49 = vld [vmem:[%s9944_s5 + $0x138] sm:$0xff]  ;;  %v827_v51 = vld [vmem:[%s9944_s5 + $0x120] sm:$0xff]  ;;  %v796_v53 = vld [vmem:[%s9944_s5 + $0x28] sm:$0xff] }
 0x1cf   :  { %896 = vmatpush.msra.mxu2 %v820_v55  ;;  %916 = vmatpush.msra.mxu3 %v852_v56  ;;  %v828_v55 = vld [vmem:[%s9944_s5 + $0x128] sm:$0xff]  ;;  %v793_v56 = vld [vmem:[%s9944_s5 + $0x10] sm:$0xff] }
 0x1d0   :  { %857 = vmatpush.msra.mxu0 %v817_v57  ;;  %877 = vmatpush.msra.mxu1 %v849_v60  ;;  %v825_v57 = vld [vmem:[%s9944_s5 + $0x110] sm:$0xff]  ;;  %v826_v60 = vld [vmem:[%s9944_s5 + $0x118] sm:$0xff] }
 0x1d1   :  { %897 = vmatpush.msra.mxu2 %v818_v61  ;;  %917 = vmatpush.msra.mxu3 %v850_v62 }
 0x1d2   :  { %858 = vmatpush.msra.mxu0 %v815_v0  ;;  %878 = vmatpush.msra.mxu1 %v847_v3  ;;  %v823_v0 = vld [vmem:[%s9944_s5 + $0x100] sm:$0xff]  ;;  %v792_v3 = vld [vmem:[%s9944_s5 + $0x8] sm:$0xff] }
 0x1d3   :  { %898 = vmatpush.msra.mxu2 %v816_v4  ;;  %918 = vmatpush.msra.mxu3 %v848_v5  ;;  %v5075_v4 = vld [vmem:[%s9944_s5 + $0x2f0] sm:$0xff] }
 0x1d4   :  { %859 = vmatpush.msra.mxu0 %v813_v8  ;;  %879 = vmatpush.msra.mxu1 %v845_v9  ;;  %v5107_v5 = vld [vmem:[%s9944_s5 + $0x3f0] sm:$0xff]  ;;  %v5073_v8 = vld [vmem:[%s9944_s5 + $0x2e0] sm:$0xff] }
 0x1d5   :  { %899 = vmatpush.msra.mxu2 %v814_v10  ;;  %919 = vmatpush.msra.mxu3 %v846_v11  ;;  %v5105_v9 = vld [vmem:[%s9944_s5 + $0x3e0] sm:$0xff]  ;;  %v5074_v10 = vld [vmem:[%s9944_s5 + $0x2e8] sm:$0xff] }
 0x1d6   :  { %860 = vmatpush.msra.mxu0 %v811_v13  ;;  %880 = vmatpush.msra.mxu1 %v843_v14  ;;  %v5106_v11 = vld [vmem:[%s9944_s5 + $0x3e8] sm:$0xff]  ;;  %v5103_v13 = vld [vmem:[%s9944_s5 + $0x3d0] sm:$0xff]  ;;  %v5072_v14 = vld [vmem:[%s9944_s5 + $0x2d8] sm:$0xff] }
 0x1d7   :  { %900 = vmatpush.msra.mxu2 %v812_v15  ;;  %920 = vmatpush.msra.mxu3 %v844_v16  ;;  %v5104_v15 = vld [vmem:[%s9944_s5 + $0x3d8] sm:$0xff]  ;;  %v5069_v16 = vld [vmem:[%s9944_s5 + $0x2c0] sm:$0xff] }
 0x1d8   :  { %861 = vmatpush.msra.mxu0 %v809_v18  ;;  %881 = vmatpush.msra.mxu1 %v841_v19  ;;  %v5070_v18 = vld [vmem:[%s9944_s5 + $0x2c8] sm:$0xff] }
 0x1d9   :  { %901 = vmatpush.msra.mxu2 %v810_v20  ;;  %921 = vmatpush.msra.mxu3 %v842_v21  ;;  %v5102_v19 = vld [vmem:[%s9944_s5 + $0x3c8] sm:$0xff]  ;;  %v5067_v20 = vld [vmem:[%s9944_s5 + $0x2b0] sm:$0xff] }
 0x1da   :  { %862 = vmatpush.msra.mxu0 %v807_v22  ;;  %882 = vmatpush.msra.mxu1 %v839_v23  ;;  %v5099_v21 = vld [vmem:[%s9944_s5 + $0x3b0] sm:$0xff]  ;;  %v5068_v22 = vld [vmem:[%s9944_s5 + $0x2b8] sm:$0xff] }
 0x1db   :  { %902 = vmatpush.msra.mxu2 %v808_v24  ;;  %922 = vmatpush.msra.mxu3 %v840_v25  ;;  %v5100_v23 = vld [vmem:[%s9944_s5 + $0x3b8] sm:$0xff]  ;;  %v5065_v24 = vld [vmem:[%s9944_s5 + $0x2a0] sm:$0xff] }
 0x1dc   :  { %863 = vmatpush.msra.mxu0 %v805_v26  ;;  %883 = vmatpush.msra.mxu1 %v837_v27  ;;  %v5097_v25 = vld [vmem:[%s9944_s5 + $0x3a0] sm:$0xff]  ;;  %v5066_v26 = vld [vmem:[%s9944_s5 + $0x2a8] sm:$0xff] }
 0x1dd   :  { %903 = vmatpush.msra.mxu2 %v806_v28  ;;  %923 = vmatpush.msra.mxu3 %v838_v29  ;;  %v5098_v27 = vld [vmem:[%s9944_s5 + $0x3a8] sm:$0xff]  ;;  %v5063_v28 = vld [vmem:[%s9944_s5 + $0x290] sm:$0xff] }
 0x1de   :  { %864 = vmatpush.msra.mxu0 %v803_v30  ;;  %884 = vmatpush.msra.mxu1 %v835_v31  ;;  %v5095_v29 = vld [vmem:[%s9944_s5 + $0x390] sm:$0xff]  ;;  %v5064_v30 = vld [vmem:[%s9944_s5 + $0x298] sm:$0xff] }
 0x1df   :  { %904 = vmatpush.msra.mxu2 %v804_v32  ;;  %924 = vmatpush.msra.mxu3 %v836_v33  ;;  %v5096_v31 = vld [vmem:[%s9944_s5 + $0x398] sm:$0xff]  ;;  %v5061_v32 = vld [vmem:[%s9944_s5 + $0x280] sm:$0xff] }
 0x1e0   :  { %865 = vmatpush.msra.mxu0 %v801_v35  ;;  %885 = vmatpush.msra.mxu1 %v833_v36  ;;  %v5093_v33 = vld [vmem:[%s9944_s5 + $0x380] sm:$0xff]  ;;  %v5094_v35 = vld [vmem:[%s9944_s5 + $0x388] sm:$0xff]  ;;  %v5059_v36 = vld [vmem:[%s9944_s5 + $0x270] sm:$0xff] }
 0x1e1   :  { %905 = vmatpush.msra.mxu2 %v802_v38  ;;  %925 = vmatpush.msra.mxu3 %v834_v39  ;;  %v5060_v38 = vld [vmem:[%s9944_s5 + $0x278] sm:$0xff] }
 0x1e2   :  { %866 = vmatpush.msra.mxu0 %v799_v40  ;;  %886 = vmatpush.msra.mxu1 %v831_v41  ;;  %v5092_v39 = vld [vmem:[%s9944_s5 + $0x378] sm:$0xff]  ;;  %v5057_v40 = vld [vmem:[%s9944_s5 + $0x260] sm:$0xff] }
 0x1e3   :  { %906 = vmatpush.msra.mxu2 %v800_v43  ;;  %926 = vmatpush.msra.mxu3 %v832_v44  ;;  %v5089_v41 = vld [vmem:[%s9944_s5 + $0x360] sm:$0xff]  ;;  %v5090_v43 = vld [vmem:[%s9944_s5 + $0x368] sm:$0xff]  ;;  %v5055_v44 = vld [vmem:[%s9944_s5 + $0x250] sm:$0xff] }
 0x1e5   :  { %907 = vmatpush.msra.mxu2 %v798_v48  ;;  %927 = vmatpush.msra.mxu3 %v830_v49  ;;  %v5053_v48 = vld [vmem:[%s9944_s5 + $0x240] sm:$0xff] }
 0x1e6   :  { %v5085_v49 = vld [vmem:[%s9944_s5 + $0x340] sm:$0xff] }
 0x1e7   :  { %908 = vmatpush.msra.mxu2 %v796_v53  ;;  %928 = vmatpush.msra.mxu3 %v828_v55  ;;  %v5083_v53 = vld [vmem:[%s9944_s5 + $0x330] sm:$0xff]  ;;  %v5052_v55 = vld [vmem:[%s9944_s5 + $0x238] sm:$0xff] }
 0x1e9   :  { %929 = vmatpush.msra.mxu3 %v826_v60  ;;  %v5082_v60 = vld [vmem:[%s9944_s5 + $0x328] sm:$0xff] }
 0x247   :  { %v599_v45 = vpop.f32.mrf.mxu0  ;;  %v619_v46 = vpop.f32.mrf.mxu1 }
 0x248   :  { %v620_v47 = vadd.f32 %v619_v46, %v599_v45  ;;  %v797_v45 = vld [vmem:[%s9944_s5 + $0x30] sm:$0xff] }
 0x249   :  { %v829_v46 = vld [vmem:[%s9944_s5 + $0x130] sm:$0xff]  ;;  %867 = vmatpush.msra.mxu0 %v797_v45 }
 0x24a   :  { %v6320_v54 = vmul.f32 0.03125, %v620_v47  ;;  %887 = vmatpush.msra.mxu1 %v829_v46  ;;  %v5087_v45 = vld [vmem:[%s9944_s5 + $0x350] sm:$0xff]  ;;  %v5056_v46 = vld [vmem:[%s9944_s5 + $0x258] sm:$0xff] }
 0x24b   :  { %868 = vmatpush.msra.mxu0 %v795_v50  ;;  %v5054_v50 = vld [vmem:[%s9944_s5 + $0x248] sm:$0xff] }
 0x24c   :  { %v664_v6 = vmul.f32 %v6320_v54, %v6320_v54  ;;  %888 = vmatpush.msra.mxu1 %v827_v51  ;;  %v5086_v51 = vld [vmem:[%s9944_s5 + $0x348] sm:$0xff] }
 0x24d   :  { %869 = vmatpush.msra.mxu0 %v793_v56  ;;  %v5084_v56 = vld [vmem:[%s9944_s5 + $0x338] sm:$0xff] }
 0x24e   :  { %889 = vmatpush.msra.mxu1 %v825_v57  ;;  %v5049_v57 = vld [vmem:[%s9944_s5 + $0x220] sm:$0xff] }
 0x24f   :  { %v640_v58 = vpop.f32.mrf.mxu2  ;;  %v660_v59 = vpop.f32.mrf.mxu3 }
 0x250   :  { %v661_v63 = vadd.f32 %v660_v59, %v640_v58  ;;  %v794_v59 = vld [vmem:[%s9944_s5 + $0x18] sm:$0xff]  ;;  %890 = vmatpush.msra.mxu1 %v823_v0 }
 0x251   :  { %909 = vmatpush.msra.mxu2 %v794_v59  ;;  %v5050_v59 = vld [vmem:[%s9944_s5 + $0x228] sm:$0xff]  ;;  %v5080_v0 = vld [vmem:[%s9944_s5 + $0x318] sm:$0xff] }
 0x252   :  { %v663_v7 = vmul.f32 0.03125, %v661_v63  ;;  %v791_v63 = vld [vmem:[%s9944_s5] sm:$0xff] }
 0x253   :  { %870 = vmatpush.msra.mxu0 %v791_v63  ;;  %910 = vmatpush.msra.mxu2 %v792_v3  ;;  %v5048_v63 = vld [vmem:[%s9944_s5 + $0x218] sm:$0xff]  ;;  %v5045_v3 = vld [vmem:[%s9944_s5 + $0x200] sm:$0xff] }
 0x254   :  { %v665_v12 = vsub.f32 %v663_v7, %v664_v6  ;;  %v5076_v6 = vld [vmem:[%s9944_s5 + $0x2f8] sm:$0xff] }
 0x255   :  { %v5108_v7 = vld [vmem:[%s9944_s5 + $0x3f8] sm:$0xff] }
 0x256   :  { %v6378_v17 = vadd.f32 1e-05, %v665_v12  ;;  %v5071_v12 = vld [vmem:[%s9944_s5 + $0x2d0] sm:$0xff] }
 0x258   :  { %5850 = vrsqrt.f32 %v6378_v17  ;;  %vm673_vm4 = vweird.f32 %v6378_v17 }
 0x25e   :  { %v5851_v34 = vpop.eup %5850 }
 0x25f   :  { %v668_v37 = vmul.f32 %v5851_v34, %v6378_v17  ;;  %vm674_vm3 = vweird.f32 %v5851_v34  ;;  %v5101_v17 = vld [vmem:[%s9944_s5 + $0x3c0] sm:$0xff] }
 0x260   :  { %vm675_vm6 = vmor %vm673_vm4, %vm674_vm3  ;;  %vm2805_vm4 = vcmask 130048  }
 0x261   :  { %v669_v42 = vmul.f32 %v5851_v34, %v668_v37  ;;  %v5091_v37 = vld [vmem:[%s9944_s5 + $0x370] sm:$0xff] }
 0x263   :  { %v670_v47 = vmul.f32 0.5, %v669_v42  ;;  %v5058_v42 = vld [vmem:[%s9944_s5 + $0x268] sm:$0xff] }
 0x265   :  { %v671_v52 = vsub.f32 1.5, %v670_v47  ;;  %v5088_v47 = vld [vmem:[%s9944_s5 + $0x358] sm:$0xff] }
 0x267   :  { %v672_v58 = vmul.f32 %v5851_v34, %v671_v52  ;;  %v5051_v52 = vld [vmem:[%s9944_s5 + $0x230] sm:$0xff] }
 0x269   :  { %v676_v61 = vsel %vm675_vm6, %v5851_v34, %v672_v58  ;;  %v5062_v34 = vld [vmem:[%s9944_s5 + $0x288] sm:$0xff]  ;;  %v5081_v58 = vld [vmem:[%s9944_s5 + $0x320] sm:$0xff]  ;;  %vm3293_vm6 = vcmask 228352  }
 0x26a   :  { %5041 = vmatmul.msk.f32.vlgmr.msrb.gmra.mxu0 %vm693_vm5, %v676_v61  ;;  %v737_v62 = vmul.f32 %v676_v61, %v6320_v54  ;;  %5042 = vmatmul.msk.f32.vlgmr.msrb.gmra.mxu1 %vm693_vm5, %v676_v61  ;;  %v824_v54 = vld [vmem:[%s9944_s5 + $0x108] sm:$0xff]  ;;  %v5047_v61 = vld [vmem:[%s9944_s5 + $0x210] sm:$0xff] }
 0x26b   :  { %930 = vmatpush.msra.mxu3 %v824_v54  ;;  %1002 = vmatpush.msrb.mxu0 %v5075_v4  ;;  %v5077_v54 = vld [vmem:[%s9944_s5 + $0x300] sm:$0xff]  ;;  %v5046_v4 = vld [vmem:[%s9944_s5 + $0x208] sm:$0xff] }
 0x26c   :  { %5043 = vmatmul.msk.f32.vlgmr.msrb.gmra.mxu2 %vm693_vm5, %v737_v62  ;;  %5044 = vmatmul.msk.f32.vlgmr.msrb.gmra.mxu3 %vm693_vm5, %v737_v62  ;;  %v5079_v62 = vld [vmem:[%s9944_s5 + $0x310] sm:$0xff] }
 0x26d   :  { %1022 = vmatpush.msrb.mxu1 %v5107_v5  ;;  %1042 = vmatpush.msrb.mxu2 %v5076_v6  ;;  %v5078_v5 = vld [vmem:[%s9944_s5 + $0x308] sm:$0xff] }
 0x26e   :  { %1062 = vmatpush.msrb.mxu3 %v5108_v7  ;;  %1003 = vmatpush.msrb.mxu0 %v5073_v8 }
 0x26f   :  { %1023 = vmatpush.msrb.mxu1 %v5105_v9  ;;  %1043 = vmatpush.msrb.mxu2 %v5074_v10 }
 0x270   :  { %1063 = vmatpush.msrb.mxu3 %v5106_v11  ;;  %1004 = vmatpush.msrb.mxu0 %v5071_v12 }
 0x271   :  { %1024 = vmatpush.msrb.mxu1 %v5103_v13  ;;  %1044 = vmatpush.msrb.mxu2 %v5072_v14 }
 0x272   :  { %1064 = vmatpush.msrb.mxu3 %v5104_v15  ;;  %1005 = vmatpush.msrb.mxu0 %v5069_v16 }
 0x273   :  { %1025 = vmatpush.msrb.mxu1 %v5101_v17  ;;  %1045 = vmatpush.msrb.mxu2 %v5070_v18 }
 0x274   :  { %1065 = vmatpush.msrb.mxu3 %v5102_v19  ;;  %1006 = vmatpush.msrb.mxu0 %v5067_v20 }
 0x275   :  { %1026 = vmatpush.msrb.mxu1 %v5099_v21  ;;  %1046 = vmatpush.msrb.mxu2 %v5068_v22  ;;  %v5150_v21 = vld [vmem:[%s9944_s5 + $0x4f8] sm:$0xff]  ;;  %v6720_v22 = vld [vmem:[%s9945_s6] sm:$0xff] }
 0x276   :  { %1066 = vmatpush.msrb.mxu3 %v5100_v23  ;;  %1007 = vmatpush.msrb.mxu0 %v5065_v24  ;;  %v5148_v23 = vld [vmem:[%s9944_s5 + $0x4e8] sm:$0xff]  ;;  %v5146_v24 = vld [vmem:[%s9944_s5 + $0x4d8] sm:$0xff] }
 0x277   :  { %1027 = vmatpush.msrb.mxu1 %v5097_v25  ;;  %1047 = vmatpush.msrb.mxu2 %v5066_v26 }
 0x278   :  { %1067 = vmatpush.msrb.mxu3 %v5098_v27  ;;  %1008 = vmatpush.msrb.mxu0 %v5063_v28  ;;  %v5144_v27 = vld [vmem:[%s9944_s5 + $0x4c8] sm:$0xff] }
 0x279   :  { %1028 = vmatpush.msrb.mxu1 %v5095_v29  ;;  %1048 = vmatpush.msrb.mxu2 %v5064_v30 }
 0x27a   :  { %1068 = vmatpush.msrb.mxu3 %v5096_v31  ;;  %1009 = vmatpush.msrb.mxu0 %v5061_v32  ;;  %v5182_v31 = vld [vmem:[%s9944_s5 + $0x5f8] sm:$0xff] }
 0x27b   :  { %1029 = vmatpush.msrb.mxu1 %v5093_v33  ;;  %1049 = vmatpush.msrb.mxu2 %v5062_v34  ;;  %v5149_v33 = vld [vmem:[%s9944_s5 + $0x4f0] sm:$0xff]  ;;  %v5142_v34 = vld [vmem:[%s9944_s5 + $0x4b8] sm:$0xff] }
 0x27c   :  { %1069 = vmatpush.msrb.mxu3 %v5094_v35  ;;  %1010 = vmatpush.msrb.mxu0 %v5059_v36  ;;  %v5180_v35 = vld [vmem:[%s9944_s5 + $0x5e8] sm:$0xff]  ;;  %v6748_v36 = vld [vmem:[%s9945_s6 + $0x10] sm:$0xff] }
 0x27d   :  { %1030 = vmatpush.msrb.mxu1 %v5091_v37  ;;  %1050 = vmatpush.msrb.mxu2 %v5060_v38  ;;  %v5147_v37 = vld [vmem:[%s9944_s5 + $0x4e0] sm:$0xff]  ;;  %v5140_v38 = vld [vmem:[%s9944_s5 + $0x4a8] sm:$0xff] }
 0x27e   :  { %1070 = vmatpush.msrb.mxu3 %v5092_v39  ;;  %1011 = vmatpush.msrb.mxu0 %v5057_v40  ;;  %v5178_v39 = vld [vmem:[%s9944_s5 + $0x5d8] sm:$0xff]  ;;  %v6762_v40 = vld [vmem:[%s9945_s6 + $0x8] sm:$0x3f] }
 0x27f   :  { %1031 = vmatpush.msrb.mxu1 %v5089_v41  ;;  %1051 = vmatpush.msrb.mxu2 %v5058_v42  ;;  %v5145_v41 = vld [vmem:[%s9944_s5 + $0x4d0] sm:$0xff]  ;;  %v5138_v42 = vld [vmem:[%s9944_s5 + $0x498] sm:$0xff] }
 0x280   :  { %1071 = vmatpush.msrb.mxu3 %v5090_v43  ;;  %1012 = vmatpush.msrb.mxu0 %v5055_v44  ;;  %v5176_v43 = vld [vmem:[%s9944_s5 + $0x5c8] sm:$0xff] }
 0x281   :  { %1032 = vmatpush.msrb.mxu1 %v5087_v45  ;;  %1052 = vmatpush.msrb.mxu2 %v5056_v46  ;;  %v5143_v46 = vld [vmem:[%s9944_s5 + $0x4c0] sm:$0xff] }
 0x282   :  { %1072 = vmatpush.msrb.mxu3 %v5088_v47  ;;  %1013 = vmatpush.msrb.mxu0 %v5053_v48  ;;  %v5181_v48 = vld [vmem:[%s9944_s5 + $0x5f0] sm:$0xff] }
 0x283   :  { %1033 = vmatpush.msrb.mxu1 %v5085_v49  ;;  %1053 = vmatpush.msrb.mxu2 %v5054_v50  ;;  %v5136_v49 = vld [vmem:[%s9944_s5 + $0x488] sm:$0xff]  ;;  %v5174_v50 = vld [vmem:[%s9944_s5 + $0x5b8] sm:$0xff] }
 0x284   :  { %1073 = vmatpush.msrb.mxu3 %v5086_v51  ;;  %1014 = vmatpush.msrb.mxu0 %v5051_v52  ;;  %v5141_v51 = vld [vmem:[%s9944_s5 + $0x4b0] sm:$0xff]  ;;  %v5179_v52 = vld [vmem:[%s9944_s5 + $0x5e0] sm:$0xff] }
 0x285   :  { %1034 = vmatpush.msrb.mxu1 %v5083_v53  ;;  %1054 = vmatpush.msrb.mxu2 %v5052_v55  ;;  %v5134_v53 = vld [vmem:[%s9944_s5 + $0x478] sm:$0xff]  ;;  %v5172_v55 = vld [vmem:[%s9944_s5 + $0x5a8] sm:$0xff] }
 0x286   :  { %1074 = vmatpush.msrb.mxu3 %v5084_v56  ;;  %1015 = vmatpush.msrb.mxu0 %v5049_v57  ;;  %v5139_v56 = vld [vmem:[%s9944_s5 + $0x4a0] sm:$0xff]  ;;  %v5177_v57 = vld [vmem:[%s9944_s5 + $0x5d0] sm:$0xff] }
 0x287   :  { %1035 = vmatpush.msrb.mxu1 %v5081_v58  ;;  %1055 = vmatpush.msrb.mxu2 %v5050_v59  ;;  %v5132_v58 = vld [vmem:[%s9944_s5 + $0x468] sm:$0xff]  ;;  %v5170_v59 = vld [vmem:[%s9944_s5 + $0x598] sm:$0xff] }
 0x288   :  { %1075 = vmatpush.msrb.mxu3 %v5082_v60  ;;  %1016 = vmatpush.msrb.mxu0 %v5047_v61  ;;  %v5137_v60 = vld [vmem:[%s9944_s5 + $0x490] sm:$0xff]  ;;  %v5175_v61 = vld [vmem:[%s9944_s5 + $0x5c0] sm:$0xff] }
 0x289   :  { %1036 = vmatpush.msrb.mxu1 %v5079_v62  ;;  %1056 = vmatpush.msrb.mxu2 %v5048_v63  ;;  %v5130_v62 = vld [vmem:[%s9944_s5 + $0x458] sm:$0xff]  ;;  %v5168_v63 = vld [vmem:[%s9944_s5 + $0x588] sm:$0xff] }
 0x28a   :  { %1076 = vmatpush.msrb.mxu3 %v5080_v0  ;;  %1017 = vmatpush.msrb.mxu0 %v5045_v3  ;;  %v5135_v0 = vld [vmem:[%s9944_s5 + $0x480] sm:$0xff]  ;;  %v5173_v3 = vld [vmem:[%s9944_s5 + $0x5b0] sm:$0xff] }
 0x28b   :  { %1037 = vmatpush.msrb.mxu1 %v5077_v54  ;;  %1057 = vmatpush.msrb.mxu2 %v5046_v4  ;;  %v5128_v54 = vld [vmem:[%s9944_s5 + $0x448] sm:$0xff]  ;;  %v5166_v4 = vld [vmem:[%s9944_s5 + $0x578] sm:$0xff] }
 0x28c   :  { %1077 = vmatpush.msrb.mxu3 %v5078_v5  ;;  %v5133_v5 = vld [vmem:[%s9944_s5 + $0x470] sm:$0xff] }
 0x2e7   :  { %v714_v6 = vpop.f32.mrf.mxu0  ;;  %v734_v7 = vpop.f32.mrf.mxu1 }
 0x2e8   :  { %v781_v8 = vperm.slane %v714_v6, 0  ;;  %v782_v9 = vperm.slane %v734_v7, 0  ;;  %v5171_v6 = vld [vmem:[%s9944_s5 + $0x5a0] sm:$0xff]  ;;  %v5126_v7 = vld [vmem:[%s9944_s5 + $0x438] sm:$0xff] }
 0x2ea   :  { %v783_v12 = vmul.f32 %v781_v8, %v6290_v1  ;;  %v784_v13 = vmul.f32 %v782_v9, %v6292_v2  ;;  %v5164_v8 = vld [vmem:[%s9944_s5 + $0x568] sm:$0xff]  ;;  %v5131_v9 = vld [vmem:[%s9944_s5 + $0x460] sm:$0xff] }
 0x2ef   :  { %v758_v10 = vpop.f32.mrf.mxu2  ;;  %v778_v11 = vpop.f32.mrf.mxu3 }
 0x2f0   :  { %v785_v14 = vperm.slane %v758_v10, 0  ;;  %v786_v15 = vperm.slane %v778_v11, 0  ;;  %v5169_v10 = vld [vmem:[%s9944_s5 + $0x590] sm:$0xff]  ;;  %v5124_v11 = vld [vmem:[%s9944_s5 + $0x428] sm:$0xff] }
 0x2f2   :  { %v787_v16 = vsub.f32 %v783_v12, %v785_v14  ;;  %v788_v17 = vsub.f32 %v784_v13, %v786_v15  ;;  %v5162_v12 = vld [vmem:[%s9944_s5 + $0x558] sm:$0xff]  ;;  %v5129_v13 = vld [vmem:[%s9944_s5 + $0x450] sm:$0xff]  ;;  %v5167_v14 = vld [vmem:[%s9944_s5 + $0x580] sm:$0xff] }
 0x2f3   :  { %v5122_v15 = vld [vmem:[%s9944_s5 + $0x418] sm:$0xff] }
 0x2f4   :  { %v6702_v18 = vmax.f32 %v787_v16, 0.0  ;;  %v6704_v19 = vmax.f32 %v788_v17, 0.0  ;;  %v5160_v16 = vld [vmem:[%s9944_s5 + $0x548] sm:$0xff]  ;;  %v5127_v17 = vld [vmem:[%s9944_s5 + $0x440] sm:$0xff] }
 0x2f6   :  { %871 = vmatmul.f32.vlgmr.msra.gmra.mxu0 %v6702_v18  ;;  %891 = vmatmul.f32.vlgmr.msra.gmra.mxu1 %v6704_v19 }
 0x2f7   :  { %911 = vmatmul.f32.vlgmr.msra.gmra.mxu2 %v6702_v18  ;;  %931 = vmatmul.f32.vlgmr.msra.gmra.mxu3 %v6704_v19 }
 0x2fe   :  { %1018 = vmatmul.f32.vlgmr.msrb.gmra.mxu0 %v6702_v18  ;;  %1038 = vmatmul.f32.vlgmr.msrb.gmra.mxu1 %v6704_v19 }
 0x2ff   :  { %1058 = vmatmul.f32.vlgmr.msrb.gmra.mxu2 %v6702_v18  ;;  %1078 = vmatmul.f32.vlgmr.msrb.gmra.mxu3 %v6704_v19 }
 0x373   :  { %v872_v1 = vpop.f32.mrf.mxu0  ;;  %v892_v2 = vpop.f32.mrf.mxu1 }
 0x374   :  { %v893_v20 = vadd.f32 %v892_v2, %v872_v1  ;;  %v5165_v1 = vld [vmem:[%s9944_s5 + $0x570] sm:$0xff]  ;;  %v5120_v2 = vld [vmem:[%s9944_s5 + $0x408] sm:$0xff] }
 0x376   :  { %1158 = vmatpush.msra.mxu2 %v893_v20  ;;  %v5158_v20 = vld [vmem:[%s9944_s5 + $0x538] sm:$0xff] }
 0x377   :  { %5115 = vmatmul.msk.f32.vlgmr.msra.gmra.mxu2 %vm142_vm0, %v6720_v22 }
 0x378   :  { %1294 = vmatpush.msrb.mxu2 %v5150_v21  ;;  %v5110_v21 = vld [vmem:[%s9945_s6 + $0x18] sm:$0x3f] }
 0x37a   :  { %1295 = vmatpush.msrb.mxu2 %v5148_v23  ;;  %v912_v25 = vpop.f32.mrf.mxu2  ;;  %v932_v26 = vpop.f32.mrf.mxu3  ;;  %v5163_v23 = vld [vmem:[%s9944_s5 + $0x560] sm:$0xff] }
 0x37b   :  { %v933_v28 = vadd.f32 %v932_v26, %v912_v25  ;;  %v1019_v29 = vpop.f32.mrf.mxu0  ;;  %v1039_v30 = vpop.f32.mrf.mxu1  ;;  %v5123_v25 = vld [vmem:[%s9944_s5 + $0x420] sm:$0xff]  ;;  %v5161_v26 = vld [vmem:[%s9944_s5 + $0x550] sm:$0xff] }
 0x37c   :  { %1296 = vmatpush.msrb.mxu2 %v5146_v24  ;;  %v1040_v32 = vadd.f32 %v1039_v30, %v1019_v29  ;;  %v5156_v24 = vld [vmem:[%s9944_s5 + $0x528] sm:$0xff]  ;;  %v5159_v29 = vld [vmem:[%s9944_s5 + $0x540] sm:$0xff] }
 0x37d   :  { %1181 = vmatpush.msra.mxu3 %v933_v28  ;;  %v5121_v28 = vld [vmem:[%s9944_s5 + $0x410] sm:$0xff]  ;;  %v5152_v30 = vld [vmem:[%s9944_s5 + $0x508] sm:$0xff] }
 0x37e   :  { %1297 = vmatpush.msrb.mxu2 %v5144_v27  ;;  %1106 = vmatpush.msra.mxu0 %v1040_v32  ;;  %v5154_v27 = vld [vmem:[%s9944_s5 + $0x518] sm:$0xff]  ;;  %v5157_v32 = vld [vmem:[%s9944_s5 + $0x530] sm:$0xff] }
 0x37f   :  { %1314 = vmatpush.msrb.mxu3 %v5182_v31  ;;  %5111 = vmatmul.msk.f32.vlgmr.msra.gmra.mxu0 %vm142_vm0, %v6748_v36  ;;  %v5119_v31 = vld [vmem:[%s9944_s5 + $0x400] sm:$0xff] }
 0x380   :  { %1254 = vmatpush.msrb.mxu0 %v5149_v33  ;;  %1298 = vmatpush.msrb.mxu2 %v5142_v34  ;;  %v5155_v33 = vld [vmem:[%s9944_s5 + $0x520] sm:$0xff]  ;;  %v5153_v34 = vld [vmem:[%s9944_s5 + $0x510] sm:$0xff] }
 0x381   :  { %1315 = vmatpush.msrb.mxu3 %v5180_v35  ;;  %5116 = vmatmul.msk.f32.gmra.mxu2 %vm142_vm0, %v6762_v40  ;;  %v5151_v35 = vld [vmem:[%s9944_s5 + $0x500] sm:$0xff] }
 0x382   :  { %1255 = vmatpush.msrb.mxu0 %v5147_v37  ;;  %1299 = vmatpush.msrb.mxu2 %v5140_v38  ;;  %v1059_v44 = vpop.f32.mrf.mxu2  ;;  %v1079_v45 = vpop.f32.mrf.mxu3 }
 0x383   :  { %1316 = vmatpush.msrb.mxu3 %v5178_v39  ;;  %v1080_v47 = vadd.f32 %v1079_v45, %v1059_v44  ;;  %v1448_v39 = vld [vmem:[%s9946_s7 + $0x70] sm:$0xff] }
 0x384   :  { %1256 = vmatpush.msrb.mxu0 %v5145_v41  ;;  %1300 = vmatpush.msrb.mxu2 %v5138_v42 }
 0x385   :  { %1317 = vmatpush.msrb.mxu3 %v5176_v43  ;;  %1129 = vmatpush.msra.mxu1 %v1080_v47  ;;  %v5183_v47 = vld [vmem:[%s9945_s6 + $0x20] sm:$0xff] }
 0x386   :  { %1257 = vmatpush.msrb.mxu0 %v5143_v46  ;;  %1301 = vmatpush.msrb.mxu2 %v5136_v49 }
 0x387   :  { %1274 = vmatpush.msrb.mxu1 %v5181_v48  ;;  %1318 = vmatpush.msrb.mxu3 %v5174_v50 }
 0x388   :  { %1258 = vmatpush.msrb.mxu0 %v5141_v51  ;;  %1302 = vmatpush.msrb.mxu2 %v5134_v53  ;;  %v5184_v51 = vld [vmem:[%s9945_s6 + $0x28] sm:$0x3f]  ;;  %v1446_v53 = vld [vmem:[%s9946_s7 + $0x60] sm:$0xff] }
 0x389   :  { %1275 = vmatpush.msrb.mxu1 %v5179_v52  ;;  %1319 = vmatpush.msrb.mxu3 %v5172_v55  ;;  %v1447_v52 = vld [vmem:[%s9946_s7 + $0x68] sm:$0xff]  ;;  %v1461_v55 = vld [vmem:[%s9946_s7 + $0xd8] sm:$0xff] }
 0x38a   :  { %1259 = vmatpush.msrb.mxu0 %v5139_v56  ;;  %1303 = vmatpush.msrb.mxu2 %v5132_v58  ;;  %v1445_v56 = vld [vmem:[%s9946_s7 + $0x58] sm:$0xff]  ;;  %v1444_v58 = vld [vmem:[%s9946_s7 + $0x50] sm:$0xff] }
 0x38b   :  { %1276 = vmatpush.msrb.mxu1 %v5177_v57  ;;  %1320 = vmatpush.msrb.mxu3 %v5170_v59  ;;  %v1460_v57 = vld [vmem:[%s9946_s7 + $0xd0] sm:$0xff]  ;;  %v1459_v59 = vld [vmem:[%s9946_s7 + $0xc8] sm:$0xff] }
 0x38c   :  { %1260 = vmatpush.msrb.mxu0 %v5137_v60  ;;  %1304 = vmatpush.msrb.mxu2 %v5130_v62  ;;  %v1443_v60 = vld [vmem:[%s9946_s7 + $0x48] sm:$0xff]  ;;  %v1442_v62 = vld [vmem:[%s9946_s7 + $0x40] sm:$0xff] }
 0x38d   :  { %1277 = vmatpush.msrb.mxu1 %v5175_v61  ;;  %1321 = vmatpush.msrb.mxu3 %v5168_v63  ;;  %v1458_v61 = vld [vmem:[%s9946_s7 + $0xc0] sm:$0xff]  ;;  %v1457_v63 = vld [vmem:[%s9946_s7 + $0xb8] sm:$0xff] }
 0x38e   :  { %1261 = vmatpush.msrb.mxu0 %v5135_v0  ;;  %5117 = vmatmul.msk.f32.vlgmr.msra.gmra.mxu3 %vm142_vm0, %v6720_v22  ;;  %v5125_v22 = vld [vmem:[%s9944_s5 + $0x430] sm:$0xff]  ;;  %v1441_v0 = vld [vmem:[%s9946_s7 + $0x38] sm:$0xff] }
 0x38f   :  { %1278 = vmatpush.msrb.mxu1 %v5173_v3  ;;  %1305 = vmatpush.msrb.mxu2 %v5128_v54  ;;  %v1456_v3 = vld [vmem:[%s9946_s7 + $0xb0] sm:$0xff] }
 0x390   :  { %1322 = vmatpush.msrb.mxu3 %v5166_v4  ;;  %1262 = vmatpush.msrb.mxu0 %v5133_v5  ;;  %v1440_v54 = vld [vmem:[%s9946_s7 + $0x30] sm:$0xff]  ;;  %v1455_v4 = vld [vmem:[%s9946_s7 + $0xa8] sm:$0xff] }
 0x391   :  { %1279 = vmatpush.msrb.mxu1 %v5171_v6  ;;  %1306 = vmatpush.msrb.mxu2 %v5126_v7  ;;  %v1439_v5 = vld [vmem:[%s9946_s7 + $0x28] sm:$0xff]  ;;  %v1454_v6 = vld [vmem:[%s9946_s7 + $0xa0] sm:$0xff] }
 0x392   :  { %1323 = vmatpush.msrb.mxu3 %v5164_v8  ;;  %1263 = vmatpush.msrb.mxu0 %v5131_v9  ;;  %v1438_v7 = vld [vmem:[%s9946_s7 + $0x20] sm:$0xff]  ;;  %v1453_v8 = vld [vmem:[%s9946_s7 + $0x98] sm:$0xff] }
 0x393   :  { %1280 = vmatpush.msrb.mxu1 %v5169_v10  ;;  %1307 = vmatpush.msrb.mxu2 %v5124_v11  ;;  %v1437_v9 = vld [vmem:[%s9946_s7 + $0x18] sm:$0xff]  ;;  %v1452_v10 = vld [vmem:[%s9946_s7 + $0x90] sm:$0xff] }
 0x394   :  { %1324 = vmatpush.msrb.mxu3 %v5162_v12  ;;  %1264 = vmatpush.msrb.mxu0 %v5129_v13  ;;  %v1436_v11 = vld [vmem:[%s9946_s7 + $0x10] sm:$0xff]  ;;  %v1451_v12 = vld [vmem:[%s9946_s7 + $0x88] sm:$0xff] }
 0x395   :  { %1281 = vmatpush.msrb.mxu1 %v5167_v14  ;;  %1308 = vmatpush.msrb.mxu2 %v5122_v15  ;;  %v1435_v13 = vld [vmem:[%s9946_s7 + $0x8] sm:$0xff]  ;;  %v1450_v14 = vld [vmem:[%s9946_s7 + $0x80] sm:$0xff] }
 0x396   :  { %1325 = vmatpush.msrb.mxu3 %v5160_v16  ;;  %5113 = vmatmul.msk.f32.vlgmr.msra.gmra.mxu1 %vm142_vm0, %v6748_v36  ;;  %v1434_v15 = vld [vmem:[%s9946_s7] sm:$0xff] }
 0x397   :  { %5118 = vmatmul.msk.f32.gmra.mxu3 %vm142_vm0, %v6762_v40  ;;  %1265 = vmatpush.msrb.mxu0 %v5127_v17 }
 0x398   :  { %1282 = vmatpush.msrb.mxu1 %v5165_v1  ;;  %1309 = vmatpush.msrb.mxu2 %v5120_v2 }
 0x399   :  { %1326 = vmatpush.msrb.mxu3 %v5158_v20  ;;  %5112 = vmatmul.msk.f32.gmra.mxu0 %vm142_vm0, %v5110_v21 }
 0x39a   :  { %1310 = vmatmul.f32.vlgmr.msrb.gmra.mxu2 %v6702_v18  ;;  %1266 = vmatpush.msrb.mxu0 %v5125_v22 }
 0x39b   :  { %1283 = vmatpush.msrb.mxu1 %v5163_v23  ;;  %1327 = vmatpush.msrb.mxu3 %v5156_v24 }
 0x39c   :  { %1267 = vmatpush.msrb.mxu0 %v5123_v25 }
 0x39d   :  { %1284 = vmatpush.msrb.mxu1 %v5161_v26  ;;  %1328 = vmatpush.msrb.mxu3 %v5154_v27 }
 0x39e   :  { %1268 = vmatpush.msrb.mxu0 %v5121_v28  ;;  %5114 = vmatmul.msk.f32.gmra.mxu1 %vm142_vm0, %v5110_v21 }
 0x39f   :  { %1285 = vmatpush.msrb.mxu1 %v5159_v29  ;;  %1329 = vmatpush.msrb.mxu3 %v5152_v30 }
 0x3a0   :  { %1330 = vmatmul.f32.vlgmr.msrb.gmra.mxu3 %v6704_v19  ;;  %1269 = vmatpush.msrb.mxu0 %v5119_v31 }
 0x3a1   :  { %1286 = vmatpush.msrb.mxu1 %v5157_v32  ;;  %1270 = vmatmul.f32.vlgmr.msrb.gmra.mxu0 %v6702_v18  ;;  %v1449_v18 = vld [vmem:[%s9946_s7 + $0x78] sm:$0xff] }
 0x3a2   :  { %1465 = vmatpush.msra.mxu2 %v1449_v18  ;;  %1489 = vmatpush.msra.mxu3 %v1461_v55 }
 0x3a3   :  { %1287 = vmatpush.msrb.mxu1 %v5155_v33 }
 0x3a4   :  { %1466 = vmatpush.msra.mxu2 %v1448_v39  ;;  %1490 = vmatpush.msra.mxu3 %v1460_v57 }
 0x3a5   :  { %1288 = vmatpush.msrb.mxu1 %v5153_v34 }
 0x3a6   :  { %1467 = vmatpush.msra.mxu2 %v1447_v52  ;;  %1491 = vmatpush.msra.mxu3 %v1459_v59 }
 0x3a7   :  { %1289 = vmatpush.msrb.mxu1 %v5151_v35 }
 0x3a8   :  { %1290 = vmatmul.f32.vlgmr.msrb.gmra.mxu1 %v6704_v19  ;;  %1468 = vmatpush.msra.mxu2 %v1446_v53 }
 0x3a9   :  { %1492 = vmatpush.msra.mxu3 %v1458_v61 }
 0x3aa   :  { %1469 = vmatpush.msra.mxu2 %v1445_v56 }
 0x3ab   :  { %1493 = vmatpush.msra.mxu3 %v1457_v63 }
 0x3ac   :  { %1470 = vmatpush.msra.mxu2 %v1444_v58 }
 0x3ad   :  { %1494 = vmatpush.msra.mxu3 %v1456_v3 }
 0x3ae   :  { %1471 = vmatpush.msra.mxu2 %v1443_v60 }
 0x3af   :  { %1495 = vmatpush.msra.mxu3 %v1455_v4 }
 0x3b0   :  { %1472 = vmatpush.msra.mxu2 %v1442_v62 }
 0x3b1   :  { %1496 = vmatpush.msra.mxu3 %v1454_v6 }
 0x3b2   :  { %1473 = vmatpush.msra.mxu2 %v1441_v0 }
 0x3b3   :  { %1497 = vmatpush.msra.mxu3 %v1453_v8 }
 0x3b4   :  { %1474 = vmatpush.msra.mxu2 %v1440_v54 }
 0x3b5   :  { %1498 = vmatpush.msra.mxu3 %v1452_v10 }
 0x3b6   :  { %1475 = vmatpush.msra.mxu2 %v1439_v5 }
 0x3b7   :  { %1499 = vmatpush.msra.mxu3 %v1451_v12 }
 0x3b8   :  { %1476 = vmatpush.msra.mxu2 %v1438_v7 }
 0x3b9   :  { %1500 = vmatpush.msra.mxu3 %v1450_v14 }
 0x3ba   :  { %1477 = vmatpush.msra.mxu2 %v1437_v9 }
 0x3bc   :  { %1478 = vmatpush.msra.mxu2 %v1436_v11 }
 0x3be   :  { %1479 = vmatpush.msra.mxu2 %v1435_v13 }
 0x3c0   :  { %1480 = vmatpush.msra.mxu2 %v1434_v15 }
 0x3fa   :  { %v6942_v36 = vpop.f32.mrf.mxu2 }
 0x3fc   :  { %v6944_v37 = vpop.f32.mrf.mxu0 }
 0x3fd   :  { %v1161_v21 = vadd.f32 %v6942_v36, %v6944_v37 }
 0x404   :  { %v6956_v41 = vpop.f32.mrf.mxu2 }
 0x411   :  { %v6946_v38 = vpop.f32.mrf.mxu3 }
 0x413   :  { %v6954_v40 = vpop.f32.mrf.mxu1 }
 0x414   :  { %v1184_v1 = vadd.f32 %v6946_v38, %v6954_v40 }
 0x416   :  { %v6960_v42 = vpop.f32.mrf.mxu0 }
 0x417   :  { %v1164_v23 = vadd.f32 %v6956_v41, %v6960_v42 }
 0x41a   :  { %v6958_v19 = vpop.f32.mrf.mxu3 }
 0x41b   :  { %v6962_v43 = vpop.f32.mrf.mxu1 }
 0x41c   :  { %v1187_v20 = vadd.f32 %v6958_v19, %v6962_v43 }
 0x41d   :  { %v1311_v44 = vpop.f32.mrf.mxu2 }
 0x41e   :  { %v1271_v48 = vpop.f32.mrf.mxu0 }
 0x423   :  { %v1331_v45 = vpop.f32.mrf.mxu3 }
 0x424   :  { %v1332_v46 = vadd.f32 %v1331_v45, %v1311_v44 }
 0x425   :  { %v1291_v49 = vpop.f32.mrf.mxu1 }
 0x426   :  { %v1292_v50 = vadd.f32 %v1291_v49, %v1271_v48  ;;  %1381 = vmatpush.msra.mxu1 %v1332_v46 }
 0x427   :  { %5187 = vmatmul.msk.f32.vlgmr.msra.gmra.mxu1 %vm142_vm0, %v5183_v47 }
 0x428   :  { %1358 = vmatpush.msra.mxu0 %v1292_v50  ;;  %1533 = vmatpush.msrb.mxu1 %v1461_v55 }
 0x429   :  { %5185 = vmatmul.msk.f32.vlgmr.msra.gmra.mxu0 %vm142_vm0, %v5183_v47 }
 0x42a   :  { %1509 = vmatpush.msrb.mxu0 %v1449_v18  ;;  %1534 = vmatpush.msrb.mxu1 %v1460_v57 }
 0x42c   :  { %1510 = vmatpush.msrb.mxu0 %v1448_v39  ;;  %1535 = vmatpush.msrb.mxu1 %v1459_v59 }
 0x42e   :  { %1511 = vmatpush.msrb.mxu0 %v1447_v52  ;;  %1536 = vmatpush.msrb.mxu1 %v1458_v61 }
 0x42f   :  { %5188 = vmatmul.msk.f32.gmra.mxu1 %vm142_vm0, %v5184_v51 }
 0x430   :  { %1512 = vmatpush.msrb.mxu0 %v1446_v53  ;;  %1537 = vmatpush.msrb.mxu1 %v1457_v63 }
 0x431   :  { %5186 = vmatmul.msk.f32.gmra.mxu0 %vm142_vm0, %v5184_v51 }
 0x432   :  { %1513 = vmatpush.msrb.mxu0 %v1445_v56  ;;  %1538 = vmatpush.msrb.mxu1 %v1456_v3  ;;  %v1569_v3 = vld [vmem:[#allocation7 + $0x30] sm:$0xff] }
 0x433   :  { %1587 = vmatpush.msrb.mxu3 %v1569_v3  ;;  %1631 = vmatpush.msrb.mxu2 %v1569_v3 }
 0x434   :  { %1514 = vmatpush.msrb.mxu0 %v1444_v58  ;;  %1539 = vmatpush.msrb.mxu1 %v1455_v4  ;;  %v1567_v4 = vld [vmem:[#allocation7 + $0x20] sm:$0xff] }
 0x435   :  { %1588 = vmatpush.msrb.mxu3 %v1567_v4  ;;  %1632 = vmatpush.msrb.mxu2 %v1567_v4  ;;  %v1679_v4 = vld [vmem:[%s9948_s9 + $0x20] sm:$0xff] }
 0x436   :  { %1515 = vmatpush.msrb.mxu0 %v1443_v60  ;;  %1540 = vmatpush.msrb.mxu1 %v1454_v6  ;;  %v1565_v6 = vld [vmem:[#allocation7 + $0x10] sm:$0xff] }
 0x437   :  { %1589 = vmatpush.msrb.mxu3 %v1565_v6  ;;  %1633 = vmatpush.msrb.mxu2 %v1565_v6  ;;  %v1726_v6 = vld [vmem:[%s9948_s9 + $0x198] sm:$0xff] }
 0x438   :  { %1516 = vmatpush.msrb.mxu0 %v1442_v62  ;;  %1541 = vmatpush.msrb.mxu1 %v1453_v8  ;;  %v1563_v8 = vld [vmem:[#allocation7] sm:$0xff] }
 0x439   :  { %1590 = vmatpush.msrb.mxu3 %v1563_v8  ;;  %1634 = vmatpush.msrb.mxu2 %v1563_v8  ;;  %v1724_v8 = vld [vmem:[%s9948_s9 + $0x188] sm:$0xff] }
 0x43a   :  { %1517 = vmatpush.msrb.mxu0 %v1441_v0  ;;  %1542 = vmatpush.msrb.mxu1 %v1452_v10 }
 0x43c   :  { %1518 = vmatpush.msrb.mxu0 %v1440_v54  ;;  %1543 = vmatpush.msrb.mxu1 %v1451_v12  ;;  %v1570_v54 = vld [vmem:[#allocation7 + $0x38] sm:$0xff] }
 0x43e   :  { %1519 = vmatpush.msrb.mxu0 %v1439_v5  ;;  %1544 = vmatpush.msrb.mxu1 %v1450_v14  ;;  %v1568_v5 = vld [vmem:[#allocation7 + $0x28] sm:$0xff] }
 0x440   :  { %1520 = vmatpush.msrb.mxu0 %v1438_v7  ;;  %1607 = vmatpush.msra.mxu1 %v1570_v54  ;;  %v1566_v7 = vld [vmem:[#allocation7 + $0x18] sm:$0xff] }
 0x442   :  { %1521 = vmatpush.msrb.mxu0 %v1437_v9  ;;  %1608 = vmatpush.msra.mxu1 %v1568_v5  ;;  %v1564_v9 = vld [vmem:[#allocation7 + $0x8] sm:$0xff] }
 0x444   :  { %1522 = vmatpush.msrb.mxu0 %v1436_v11  ;;  %1609 = vmatpush.msra.mxu1 %v1566_v7 }
 0x446   :  { %1523 = vmatpush.msrb.mxu0 %v1435_v13  ;;  %1610 = vmatpush.msra.mxu1 %v1564_v9 }
 0x448   :  { %1524 = vmatpush.msrb.mxu0 %v1434_v15 }
 0x4a4   :  { %v1383_v16 = vpop.f32.mrf.mxu1 }
 0x4a5   :  { %v7054_v2 = vadd.f32 %v1383_v16, %v1184_v1 }
 0x4a6   :  { %v1360_v17 = vpop.f32.mrf.mxu0 }
 0x4a7   :  { %v1414_v24 = vmul.f32 %v7054_v2, %v7054_v2  ;;  %v7066_v26 = vadd.f32 %v1360_v17, %v1161_v21  ;;  %v1403_v28 = vsel %vm1402_vm7, %v7054_v2, 0.0  ;;  %v1703_v21 = vld [vmem:[%s9948_s9 + $0xe0] sm:$0xff] }
 0x4a9   :  { %v1425_v33 = vsel %vm1402_vm7, %v1414_v24, 0.0  ;;  %v1413_v37 = vmul.f32 %v7066_v26, %v7066_v26  ;;  %v1701_v24 = vld [vmem:[%s9948_s9 + $0xd0] sm:$0xff] }
 0x4ac   :  { %v1386_v22 = vpop.f32.mrf.mxu1 }
 0x4ad   :  { %v7064_v25 = vadd.f32 %v1386_v22, %v1187_v20  ;;  %v1705_v20 = vld [vmem:[%s9948_s9 + $0xf0] sm:$0xff]  ;;  %v1706_v22 = vld [vmem:[%s9948_s9 + $0xf8] sm:$0xff] }
 0x4ae   :  { %v1363_v27 = vpop.f32.mrf.mxu0  ;;  %1737 = vmatpush.msra.mxu0 %v1705_v20  ;;  %v5226_v20 = vld [vmem:[%s9948_s9 + $0x298] sm:$0xff] }
 0x4af   :  { %v1405_v29 = vsel %vm1404_vm8, %v7064_v25, 0.0  ;;  %v1416_v30 = vmul.f32 %v7064_v25, %v7064_v25  ;;  %v7073_v31 = vadd.f32 %v1363_v27, %v1164_v23  ;;  %v1704_v27 = vld [vmem:[%s9948_s9 + $0xe8] sm:$0xff] }
 0x4b0   :  { %v1406_v32 = vadd.f32 %v1405_v29, %v1403_v28  ;;  %1738 = vmatpush.msra.mxu0 %v1703_v21  ;;  %v1702_v28 = vld [vmem:[%s9948_s9 + $0xd8] sm:$0xff]  ;;  %v1729_v29 = vld [vmem:[%s9948_s9 + $0x1b0] sm:$0xff]  ;;  %v1707_v21 = vld [vmem:[%s9948_s9 + $0x100] sm:$0xff] }
 0x4b1   :  { %v1426_v34 = vsel %vm1404_vm8, %v1416_v30, 0.0  ;;  %v1394_v35 = vsel %vm1393_vm9, %v7073_v31, 0.0  ;;  %v1415_v36 = vmul.f32 %v7073_v31, %v7073_v31 }
 0x4b2   :  { %v1407_v38 = vrot.slane %v1406_v32, 4  ;;  %v1427_v18 = vadd.f32 %v1426_v34, %v1425_v33  ;;  %v1395_v39 = vadd.f32 %v1394_v35, %v7066_v26  ;;  %v1727_v33 = vld [vmem:[%s9948_s9 + $0x1a0] sm:$0xff]  ;;  %1739 = vmatpush.msra.mxu0 %v1701_v24  ;;  %v1700_v34 = vld [vmem:[%s9948_s9 + $0xc8] sm:$0xff]  ;;  %v1725_v35 = vld [vmem:[%s9948_s9 + $0x190] sm:$0xff] }
 0x4b3   :  { %v1417_v40 = vsel %vm1393_vm9, %v1415_v36, 0.0  ;;  %v1697_v36 = vld [vmem:[%s9948_s9 + $0xb0] sm:$0xff] }
 0x4b4   :  { %v1408_v41 = vadd.f32 %v1407_v38, %v1406_v32  ;;  %v1428_v19 = vrot.slane %v1427_v18, 4  ;;  %v1396_v42 = vrot.slane %v1395_v39, 4  ;;  %v1418_v43 = vadd.f32 %v1417_v40, %v1413_v37  ;;  %v1699_v32 = vld [vmem:[%s9948_s9 + $0xc0] sm:$0xff]  ;;  %v1698_v37 = vld [vmem:[%s9948_s9 + $0xb8] sm:$0xff]  ;;  %v1721_v40 = vld [vmem:[%s9948_s9 + $0x170] sm:$0xff] }
 0x4b5   :  { %1740 = vmatpush.msra.mxu0 %v1699_v32  ;;  %v1723_v38 = vld [vmem:[%s9948_s9 + $0x180] sm:$0xff]  ;;  %v5229_v24 = vld [vmem:[%s9948_s9 + $0x2b0] sm:$0xff]  ;;  %v5222_v32 = vld [vmem:[%s9948_s9 + $0x278] sm:$0xff] }
 0x4b6   :  { %v1409_v44 = vrot.slane %v1408_v41, 2  ;;  %v1429_v45 = vadd.f32 %v1428_v19, %v1427_v18  ;;  %v1397_v46 = vadd.f32 %v1396_v42, %v1395_v39  ;;  %v1419_v47 = vrot.slane %v1418_v43, 4  ;;  %v1695_v18 = vld [vmem:[%s9948_s9 + $0xa0] sm:$0xff]  ;;  %v1696_v39 = vld [vmem:[%s9948_s9 + $0xa8] sm:$0xff]  ;;  %v1694_v19 = vld [vmem:[%s9948_s9 + $0x98] sm:$0xff] }
 0x4b7   :  { %1741 = vmatpush.msra.mxu0 %v1697_v36  ;;  %v1719_v42 = vld [vmem:[%s9948_s9 + $0x160] sm:$0xff]  ;;  %v5220_v36 = vld [vmem:[%s9948_s9 + $0x268] sm:$0xff] }
 0x4b8   :  { %v1410_v48 = vadd.f32 %v1409_v44, %v1408_v41  ;;  %v1430_v49 = vrot.slane %v1429_v45, 2  ;;  %v1398_v50 = vrot.slane %v1397_v46, 2  ;;  %v1420_v51 = vadd.f32 %v1419_v47, %v1418_v43  ;;  %v1693_v41 = vld [vmem:[%s9948_s9 + $0x90] sm:$0xff]  ;;  %v1691_v44 = vld [vmem:[%s9948_s9 + $0x80] sm:$0xff] }
 0x4b9   :  { %1742 = vmatpush.msra.mxu0 %v1695_v18  ;;  %v1717_v47 = vld [vmem:[%s9948_s9 + $0x150] sm:$0xff]  ;;  %v5223_v18 = vld [vmem:[%s9948_s9 + $0x280] sm:$0xff] }
 0x4ba   :  { %v1411_v52 = vrot.slane %v1410_v48, 1  ;;  %v1431_v53 = vadd.f32 %v1430_v49, %v1429_v45  ;;  %v1399_v55 = vadd.f32 %v1398_v50, %v1397_v46  ;;  %v1421_v56 = vrot.slane %v1420_v51, 2  ;;  %v1692_v46 = vld [vmem:[%s9948_s9 + $0x88] sm:$0xff]  ;;  %v1690_v50 = vld [vmem:[%s9948_s9 + $0x78] sm:$0xff] }
 0x4bb   :  { %1743 = vmatpush.msra.mxu0 %v1693_v41  ;;  %v1708_v41 = vld [vmem:[%s9948_s9 + $0x108] sm:$0xff] }
 0x4bc   :  { %v1412_v57 = vadd.f32 %v1411_v52, %v1410_v48  ;;  %v1400_v58 = vrot.slane %v1399_v55, 1  ;;  %v1432_v59 = vrot.slane %v1431_v53, 1  ;;  %v1422_v60 = vadd.f32 %v1421_v56, %v1420_v51  ;;  %v1689_v48 = vld [vmem:[%s9948_s9 + $0x70] sm:$0xff]  ;;  %v1715_v51 = vld [vmem:[%s9948_s9 + $0x140] sm:$0xff] }
 0x4bd   :  { %1744 = vmatpush.msra.mxu0 %v1691_v44  ;;  %v1687_v52 = vld [vmem:[%s9948_s9 + $0x60] sm:$0xff]  ;;  %v1713_v56 = vld [vmem:[%s9948_s9 + $0x130] sm:$0xff]  ;;  %v5248_v44 = vld [vmem:[%s9948_s9 + $0x348] sm:$0xff] }
 0x4be   :  { %5189 = vmatmul.msk.f32.vlgmr.msra.gmra.mxu3 %vm1402_vm7, %v1412_v57  ;;  %v1401_v61 = vadd.f32 %v1400_v58, %v1399_v55  ;;  %v1433_v62 = vadd.f32 %v1432_v59, %v1431_v53  ;;  %v1423_v63 = vrot.slane %v1422_v60, 1  ;;  %v1688_v55 = vld [vmem:[%s9948_s9 + $0x68] sm:$0xff]  ;;  %v1685_v57 = vld [vmem:[%s9948_s9 + $0x50] sm:$0xff]  ;;  %v1686_v59 = vld [vmem:[%s9948_s9 + $0x58] sm:$0xff] }
 0x4bf   :  { %1651 = vmatpush.msra.mxu3 %v1570_v54  ;;  %1745 = vmatpush.msra.mxu0 %v1689_v48  ;;  %v1728_v54 = vld [vmem:[%s9948_s9 + $0x1a8] sm:$0xff]  ;;  %v5246_v48 = vld [vmem:[%s9948_s9 + $0x338] sm:$0xff] }
 0x4c0   :  { %1481 = vmatmul.f32.vlgmr.msra.gmra.mxu2 %v1401_v61  ;;  %5190 = vmatmul.msk.f32.vlgmr.msrb.gmra.mxu1 %vm1402_vm7, %v1433_v62  ;;  %v1424_v0 = vadd.f32 %v1423_v63, %v1422_v60  ;;  %v1683_v60 = vld [vmem:[%s9948_s9 + $0x40] sm:$0xff]  ;;  %v1730_v62 = vld [vmem:[%s9948_s9 + $0x1b8] sm:$0xff]  ;;  %v1681_v63 = vld [vmem:[%s9948_s9 + $0x30] sm:$0xff] }
 0x4c1   :  { %1652 = vmatpush.msra.mxu3 %v1568_v5  ;;  %1783 = vmatpush.msra.mxu2 %v1706_v22  ;;  %v1684_v5 = vld [vmem:[%s9948_s9 + $0x48] sm:$0xff]  ;;  %v1678_v22 = vld [vmem:[%s9948_s9 + $0x18] sm:$0xff] }
 0x4c2   :  { %1525 = vmatmul.f32.vlgmr.msrb.gmra.mxu0 %v1424_v0  ;;  %1764 = vmatpush.msrb.mxu1 %v1729_v29  ;;  %v1714_v29 = vld [vmem:[%s9948_s9 + $0x138] sm:$0xff] }
 0x4c3   :  { %1653 = vmatpush.msra.mxu3 %v1566_v7  ;;  %1784 = vmatpush.msra.mxu2 %v1704_v27  ;;  %v1677_v7 = vld [vmem:[%s9948_s9 + $0x10] sm:$0xff]  ;;  %v5224_v27 = vld [vmem:[%s9948_s9 + $0x288] sm:$0xff] }
 0x4c4   :  { %1765 = vmatpush.msrb.mxu1 %v1727_v33  ;;  %1746 = vmatpush.msra.mxu0 %v1687_v52  ;;  %v5254_v33 = vld [vmem:[%s9948_s9 + $0x378] sm:$0xff]  ;;  %v5244_v52 = vld [vmem:[%s9948_s9 + $0x328] sm:$0xff] }
 0x4c5   :  { %1654 = vmatpush.msra.mxu3 %v1564_v9  ;;  %1785 = vmatpush.msra.mxu2 %v1702_v28  ;;  %v1675_v9 = vld [vmem:[%s9948_s9] sm:$0xff]  ;;  %v1676_v28 = vld [vmem:[%s9948_s9 + $0x8] sm:$0xff] }
 0x4c6   :  { %1766 = vmatpush.msrb.mxu1 %v1725_v35  ;;  %1747 = vmatpush.msra.mxu0 %v1685_v57  ;;  %v5225_v35 = vld [vmem:[%s9948_s9 + $0x290] sm:$0xff]  ;;  %v5242_v57 = vld [vmem:[%s9948_s9 + $0x318] sm:$0xff] }
 0x4c7   :  { %1786 = vmatpush.msra.mxu2 %v1700_v34  ;;  %v1712_v34 = vld [vmem:[%s9948_s9 + $0x128] sm:$0xff] }
 0x4c8   :  { %1767 = vmatpush.msrb.mxu1 %v1723_v38  ;;  %1748 = vmatpush.msra.mxu0 %v1683_v60  ;;  %v1710_v38 = vld [vmem:[%s9948_s9 + $0x118] sm:$0xff]  ;;  %v5208_v60 = vld [vmem:[%s9948_s9 + $0x208] sm:$0xff] }
 0x4c9   :  { %1787 = vmatpush.msra.mxu2 %v1698_v37  ;;  %v5252_v37 = vld [vmem:[%s9948_s9 + $0x368] sm:$0xff] }
 0x4ca   :  { %1768 = vmatpush.msrb.mxu1 %v1721_v40  ;;  %1749 = vmatpush.msra.mxu0 %v1681_v63  ;;  %v5250_v40 = vld [vmem:[%s9948_s9 + $0x358] sm:$0xff]  ;;  %v5243_v63 = vld [vmem:[%s9948_s9 + $0x320] sm:$0xff] }
 0x4cb   :  { %1788 = vmatpush.msra.mxu2 %v1696_v39  ;;  %v5218_v39 = vld [vmem:[%s9948_s9 + $0x258] sm:$0xff] }
 0x4cc   :  { %1769 = vmatpush.msrb.mxu1 %v1719_v42  ;;  %1750 = vmatpush.msra.mxu0 %v1679_v4  ;;  %v5253_v42 = vld [vmem:[%s9948_s9 + $0x370] sm:$0xff] }
 0x4cd   :  { %1789 = vmatpush.msra.mxu2 %v1694_v19  ;;  %v5221_v19 = vld [vmem:[%s9948_s9 + $0x270] sm:$0xff] }
 0x4ce   :  { %1770 = vmatpush.msrb.mxu1 %v1717_v47  ;;  %1751 = vmatpush.msra.mxu0 %v1677_v7  ;;  %v5214_v47 = vld [vmem:[%s9948_s9 + $0x238] sm:$0xff]  ;;  %v5241_v4 = vld [vmem:[%s9948_s9 + $0x310] sm:$0xff]  ;;  %v5207_v7 = vld [vmem:[%s9948_s9 + $0x200] sm:$0xff] }
 0x4cf   :  { %1790 = vmatpush.msra.mxu2 %v1692_v46  ;;  %v5251_v46 = vld [vmem:[%s9948_s9 + $0x360] sm:$0xff] }
 0x4d0   :  { %1771 = vmatpush.msrb.mxu1 %v1715_v51  ;;  %1752 = vmatpush.msra.mxu0 %v1675_v9  ;;  %v5212_v51 = vld [vmem:[%s9948_s9 + $0x228] sm:$0xff]  ;;  %v5202_v9 = vld [vmem:[%s9948_s9 + $0x1d8] sm:$0xff] }
 0x4d1   :  { %1791 = vmatpush.msra.mxu2 %v1690_v50  ;;  %v5249_v50 = vld [vmem:[%s9948_s9 + $0x350] sm:$0xff] }
 0x4d2   :  { %1772 = vmatpush.msrb.mxu1 %v1713_v56  ;;  %v5210_v56 = vld [vmem:[%s9948_s9 + $0x218] sm:$0xff] }
 0x4d3   :  { %1792 = vmatpush.msra.mxu2 %v1688_v55  ;;  %v5247_v55 = vld [vmem:[%s9948_s9 + $0x340] sm:$0xff] }
 0x4d5   :  { %1793 = vmatpush.msra.mxu2 %v1686_v59  ;;  %v5245_v59 = vld [vmem:[%s9948_s9 + $0x330] sm:$0xff] }
 0x4d7   :  { %1794 = vmatpush.msra.mxu2 %v1684_v5  ;;  %v5204_v5 = vld [vmem:[%s9948_s9 + $0x1e8] sm:$0xff] }
 0x53d   :  { %v1546_v11 = vpop.f32.mrf.mxu1 }
 0x53f   :  { %v1526_v10 = vpop.f32.mrf.mxu0 }
 0x540   :  { %v1547_v14 = vadd.f32 %v1546_v11, %v1526_v10  ;;  %v1722_v10 = vld [vmem:[%s9948_s9 + $0x178] sm:$0xff] }
 0x541   :  { %v1502_v12 = vpop.f32.mrf.mxu3  ;;  %v5230_v11 = vld [vmem:[%s9948_s9 + $0x2b8] sm:$0xff] }
 0x542   :  { %v1549_v17 = vmul.f32 0.010204081, %v1547_v14  ;;  %1936 = vmatpush.msrb.mxu0 %v5230_v11  ;;  %v1720_v14 = vld [vmem:[%s9948_s9 + $0x168] sm:$0xff]  ;;  %v5205_v11 = vld [vmem:[%s9948_s9 + $0x1f0] sm:$0xff] }
 0x543   :  { %v1482_v13 = vpop.f32.mrf.mxu2 }
 0x544   :  { %v1503_v15 = vadd.f32 %v1502_v12, %v1482_v13  ;;  %v1711_v12 = vld [vmem:[%s9948_s9 + $0x120] sm:$0xff]  ;;  %v1682_v13 = vld [vmem:[%s9948_s9 + $0x38] sm:$0xff] }
 0x545   :  { %1773 = vmatpush.msrb.mxu1 %v1711_v12  ;;  %1795 = vmatpush.msra.mxu2 %v1682_v13  ;;  %v5237_v12 = vld [vmem:[%s9948_s9 + $0x2f0] sm:$0xff]  ;;  %v5200_v13 = vld [vmem:[%s9948_s9 + $0x1c8] sm:$0xff] }
 0x546   :  { %v7086_v16 = vmul.f32 0.010204081, %v1503_v15  ;;  %v5228_v15 = vld [vmem:[%s9948_s9 + $0x2a8] sm:$0xff] }
 0x547   :  { %1937 = vmatpush.msrb.mxu0 %v5228_v15  ;;  %v5203_v15 = vld [vmem:[%s9948_s9 + $0x1e0] sm:$0xff] }
 0x548   :  { %v1550_v1 = vmul.f32 %v7086_v16, %v7086_v16 }
 0x549   :  { %1938 = vmatpush.msrb.mxu0 %v5226_v20  ;;  %v5199_v20 = vld [vmem:[%s9948_s9 + $0x1c0] sm:$0xff] }
 0x54a   :  { %v1551_v23 = vsub.f32 %v1549_v17, %v1550_v1  ;;  %v1680_v17 = vld [vmem:[%s9948_s9 + $0x28] sm:$0xff]  ;;  %v1718_v1 = vld [vmem:[%s9948_s9 + $0x158] sm:$0xff] }
 0x54b   :  { %1796 = vmatpush.msra.mxu2 %v1680_v17  ;;  %1939 = vmatpush.msrb.mxu0 %v5224_v27  ;;  %v5201_v17 = vld [vmem:[%s9948_s9 + $0x1d0] sm:$0xff] }
 0x54c   :  { %v7111_v30 = vadd.f32 1e-05, %v1551_v23  ;;  %v1716_v23 = vld [vmem:[%s9948_s9 + $0x148] sm:$0xff] }
 0x54d   :  { %1797 = vmatpush.msra.mxu2 %v1678_v22  ;;  %1940 = vmatpush.msrb.mxu0 %v5222_v32 }
 0x54e   :  { %5852 = vrsqrt.f32 %v7111_v30  ;;  %vm1559_vm11 = vweird.f32 %v7111_v30 }
 0x54f   :  { %1798 = vmatpush.msra.mxu2 %v1676_v28  ;;  %1941 = vmatpush.msrb.mxu0 %v5220_v36 }
 0x551   :  { %1942 = vmatpush.msrb.mxu0 %v5218_v39 }
 0x554   :  { %v5853_v43 = vpop.eup %5852 }
 0x555   :  { %v1554_v45 = vmul.f32 %v5853_v43, %v7111_v30  ;;  %vm1560_vm10 = vweird.f32 %v5853_v43  ;;  %v5227_v30 = vld [vmem:[%s9948_s9 + $0x2a0] sm:$0xff] }
 0x556   :  { %vm1561_vm13 = vmor %vm1559_vm11, %vm1560_vm10 }
 0x557   :  { %v1555_v49 = vmul.f32 %v5853_v43, %v1554_v45  ;;  %v5219_v45 = vld [vmem:[%s9948_s9 + $0x260] sm:$0xff] }
 0x559   :  { %v1556_v53 = vmul.f32 0.5, %v1555_v49  ;;  %v5217_v49 = vld [vmem:[%s9948_s9 + $0x250] sm:$0xff] }
 0x55b   :  { %v1557_v58 = vsub.f32 1.5, %v1556_v53  ;;  %v5215_v53 = vld [vmem:[%s9948_s9 + $0x240] sm:$0xff] }
 0x55d   :  { %v1558_v61 = vmul.f32 %v5853_v43, %v1557_v58  ;;  %v5213_v58 = vld [vmem:[%s9948_s9 + $0x230] sm:$0xff] }
 0x55f   :  { %v1562_v0 = vsel %vm1561_vm13, %v5853_v43, %v1558_v61  ;;  %v5216_v43 = vld [vmem:[%s9948_s9 + $0x248] sm:$0xff] }
 0x560   :  { %v1615_v3 = vmul.f32 %v1562_v0, %v7086_v16  ;;  %5191 = vmatmul.msk.f32.vlgmr.msrb.gmra.mxu3 %vm1571_vm12, %v1562_v0  ;;  %5192 = vmatmul.msk.f32.vlgmr.msra.gmra.mxu1 %vm1571_vm12, %v1562_v0  ;;  %v1709_v16 = vld [vmem:[%s9948_s9 + $0x110] sm:$0xff]  ;;  %v5240_v61 = vld [vmem:[%s9948_s9 + $0x308] sm:$0xff]  ;;  %v5206_v0 = vld [vmem:[%s9948_s9 + $0x1f8] sm:$0xff] }
 0x561   :  { %1810 = vmatpush.msrb.mxu3 %v1730_v62  ;;  %1774 = vmatpush.msrb.mxu1 %v1709_v16  ;;  %v5211_v62 = vld [vmem:[%s9948_s9 + $0x220] sm:$0xff] }
 0x562   :  { %5193 = vmatmul.msk.f32.vlgmr.msrb.gmra.mxu2 %vm1571_vm12, %v1615_v3  ;;  %1943 = vmatpush.msrb.mxu0 %v5216_v43  ;;  %v5235_v16 = vld [vmem:[%s9948_s9 + $0x2e0] sm:$0xff] }
 0x563   :  { %1811 = vmatpush.msrb.mxu3 %v1728_v54  ;;  %1775 = vmatpush.msrb.mxu1 %v1707_v21  ;;  %v5209_v54 = vld [vmem:[%s9948_s9 + $0x210] sm:$0xff]  ;;  %v5231_v21 = vld [vmem:[%s9948_s9 + $0x2c0] sm:$0xff] }
 0x564   :  { %1963 = vmatpush.msrb.mxu2 %v5254_v33  ;;  %1944 = vmatpush.msrb.mxu0 %v5214_v47 }
 0x565   :  { %1812 = vmatpush.msrb.mxu3 %v1726_v6  ;;  %1890 = vmatpush.msra.mxu1 %v5229_v24  ;;  %v5236_v6 = vld [vmem:[%s9948_s9 + $0x2e8] sm:$0xff] }
 0x566   :  { %1964 = vmatpush.msrb.mxu2 %v5252_v37  ;;  %1945 = vmatpush.msrb.mxu0 %v5212_v51 }
 0x567   :  { %1813 = vmatpush.msrb.mxu3 %v1724_v8  ;;  %1891 = vmatpush.msra.mxu1 %v5227_v30  ;;  %v5239_v8 = vld [vmem:[%s9948_s9 + $0x300] sm:$0xff] }
 0x568   :  { %5194 = vmatmul.msk.f32.vlgmr.msra.gmra.mxu3 %vm1571_vm12, %v1615_v3  ;;  %1965 = vmatpush.msrb.mxu2 %v5250_v40  ;;  %v5238_v3 = vld [vmem:[%s9948_s9 + $0x2f8] sm:$0xff] }
 0x569   :  { %1814 = vmatpush.msrb.mxu3 %v1722_v10  ;;  %1892 = vmatpush.msra.mxu1 %v5225_v35  ;;  %v5234_v10 = vld [vmem:[%s9948_s9 + $0x2d8] sm:$0xff] }
 0x56a   :  { %1966 = vmatpush.msrb.mxu2 %v5248_v44  ;;  %1946 = vmatpush.msrb.mxu0 %v5210_v56  ;;  %v5310_v56 = vld [vmem:[%s9948_s9 + $0x458] sm:$0xff] }
 0x56b   :  { %1815 = vmatpush.msrb.mxu3 %v1720_v14  ;;  %1893 = vmatpush.msra.mxu1 %v5223_v18  ;;  %v5232_v14 = vld [vmem:[%s9948_s9 + $0x2c8] sm:$0xff] }
 0x56c   :  { %1967 = vmatpush.msrb.mxu2 %v5246_v48  ;;  %1947 = vmatpush.msrb.mxu0 %v5208_v60  ;;  %v1829_v48 = vld [vmem:[%s9949_s10] sm:$0xff]  ;;  %v1830_v60 = vld [vmem:[%s9949_s10 + $0x8] sm:$0xff] }
 0x56d   :  { %1816 = vmatpush.msrb.mxu3 %v1718_v1  ;;  %1894 = vmatpush.msra.mxu1 %v5221_v19  ;;  %v5233_v1 = vld [vmem:[%s9948_s9 + $0x2d0] sm:$0xff] }
 0x56e   :  { %1968 = vmatpush.msrb.mxu2 %v5244_v52  ;;  %1948 = vmatpush.msrb.mxu0 %v5206_v0  ;;  %v5312_v52 = vld [vmem:[%s9948_s9 + $0x468] sm:$0xff] }
 0x56f   :  { %1817 = vmatpush.msrb.mxu3 %v1716_v23  ;;  %1895 = vmatpush.msra.mxu1 %v5219_v45 }
 0x570   :  { %1969 = vmatpush.msrb.mxu2 %v5242_v57  ;;  %1949 = vmatpush.msrb.mxu0 %v5204_v5 }
 0x571   :  { %1818 = vmatpush.msrb.mxu3 %v1714_v29  ;;  %1896 = vmatpush.msra.mxu1 %v5217_v49  ;;  %v5314_v49 = vld [vmem:[%s9948_s9 + $0x478] sm:$0xff] }
 0x572   :  { %1970 = vmatpush.msrb.mxu2 %v5240_v61  ;;  %1950 = vmatpush.msrb.mxu0 %v5202_v9 }
 0x573   :  { %1819 = vmatpush.msrb.mxu3 %v1712_v34  ;;  %1897 = vmatpush.msra.mxu1 %v5215_v53 }
 0x574   :  { %1971 = vmatpush.msrb.mxu2 %v5238_v3  ;;  %1951 = vmatpush.msrb.mxu0 %v5200_v13  ;;  %v5304_v3 = vld [vmem:[%s9948_s9 + $0x428] sm:$0xff]  ;;  %v5330_v13 = vld [vmem:[%s9948_s9 + $0x4f8] sm:$0xff] }
 0x575   :  { %1820 = vmatpush.msrb.mxu3 %v1710_v38  ;;  %1898 = vmatpush.msra.mxu1 %v5213_v58  ;;  %v5308_v58 = vld [vmem:[%s9948_s9 + $0x448] sm:$0xff] }
 0x576   :  { %1972 = vmatpush.msrb.mxu2 %v5236_v6  ;;  %v5302_v6 = vld [vmem:[%s9948_s9 + $0x418] sm:$0xff] }
 0x577   :  { %1821 = vmatpush.msrb.mxu3 %v1708_v41  ;;  %1899 = vmatpush.msra.mxu1 %v5211_v62  ;;  %v5306_v62 = vld [vmem:[%s9948_s9 + $0x438] sm:$0xff] }
 0x578   :  { %1973 = vmatpush.msrb.mxu2 %v5234_v10  ;;  %v5300_v10 = vld [vmem:[%s9948_s9 + $0x408] sm:$0xff] }
 0x579   :  { %1917 = vmatpush.msra.mxu3 %v5253_v42  ;;  %1900 = vmatpush.msra.mxu1 %v5209_v54  ;;  %v5334_v54 = vld [vmem:[%s9948_s9 + $0x518] sm:$0xff] }
 0x57a   :  { %1974 = vmatpush.msrb.mxu2 %v5232_v14  ;;  %v5298_v14 = vld [vmem:[%s9948_s9 + $0x3f8] sm:$0xff] }
 0x57b   :  { %1918 = vmatpush.msra.mxu3 %v5251_v46  ;;  %1901 = vmatpush.msra.mxu1 %v5207_v7 }
 0x57d   :  { %1919 = vmatpush.msra.mxu3 %v5249_v50  ;;  %1902 = vmatpush.msra.mxu1 %v5205_v11  ;;  %v5259_v11 = vld [vmem:[%s9949_s10 + $0x20] sm:$0xff] }
 0x57f   :  { %1920 = vmatpush.msra.mxu3 %v5247_v55  ;;  %1903 = vmatpush.msra.mxu1 %v5203_v15  ;;  %v5337_v15 = vld [vmem:[%s9948_s9 + $0x530] sm:$0xff] }
 0x581   :  { %1921 = vmatpush.msra.mxu3 %v5245_v59  ;;  %1904 = vmatpush.msra.mxu1 %v5201_v17  ;;  %v5338_v59 = vld [vmem:[%s9948_s9 + $0x538] sm:$0xff] }
 0x583   :  { %1922 = vmatpush.msra.mxu3 %v5243_v63  ;;  %1905 = vmatpush.msra.mxu1 %v5199_v20  ;;  %v5336_v63 = vld [vmem:[%s9948_s9 + $0x528] sm:$0xff] }
 0x585   :  { %1923 = vmatpush.msra.mxu3 %v5241_v4 }
 0x587   :  { %1924 = vmatpush.msra.mxu3 %v5239_v8  ;;  %v5332_v8 = vld [vmem:[%s9948_s9 + $0x508] sm:$0xff] }
 0x589   :  { %1925 = vmatpush.msra.mxu3 %v5237_v12  ;;  %v1831_v12 = vld [vmem:[%s9949_s10 + $0x10] sm:$0xff] }
 0x58b   :  { %1926 = vmatpush.msra.mxu3 %v5235_v16 }
 0x58d   :  { %1927 = vmatpush.msra.mxu3 %v5233_v1  ;;  %v5328_v1 = vld [vmem:[%s9948_s9 + $0x4e8] sm:$0xff] }
 0x58f   :  { %1928 = vmatpush.msra.mxu3 %v5231_v21  ;;  %v5296_v21 = vld [vmem:[%s9948_s9 + $0x3e8] sm:$0xff] }
 0x5dd   :  { %v1612_v24 = vpop.f32.mrf.mxu1 }
 0x5de   :  { %v1660_v30 = vperm.slane %v1612_v24, 0 }
 0x5e0   :  { %v1662_v36 = vmul.f32 %v1660_v30, %v7054_v2 }
 0x5e3   :  { %v1592_v22 = vpop.f32.mrf.mxu3 }
 0x5e4   :  { %v1659_v23 = vperm.slane %v1592_v22, 0  ;;  %v5335_v22 = vld [vmem:[%s9948_s9 + $0x520] sm:$0xff] }
 0x5e5   :  { %v1636_v27 = vpop.f32.mrf.mxu2 }
 0x5e6   :  { %v1661_v28 = vmul.f32 %v1659_v23, %v7066_v26  ;;  %v1665_v29 = vperm.slane %v1636_v27, 0  ;;  %v1663_v33 = vmul.f32 %v1659_v23, %v7073_v31  ;;  %v1664_v26 = vmul.f32 %v1660_v30, %v7064_v25  ;;  %v5326_v23 = vld [vmem:[%s9948_s9 + $0x4d8] sm:$0xff]  ;;  %v5313_v30 = vld [vmem:[%s9948_s9 + $0x470] sm:$0xff] }
 0x5e7   :  { %v5294_v27 = vld [vmem:[%s9948_s9 + $0x3d8] sm:$0xff] }
 0x5e8   :  { %v1667_v32 = vsub.f32 %v1661_v28, %v1665_v29  ;;  %v1669_v38 = vsub.f32 %v1663_v33, %v1665_v29  ;;  %v5333_v28 = vld [vmem:[%s9948_s9 + $0x510] sm:$0xff]  ;;  %v5324_v29 = vld [vmem:[%s9948_s9 + $0x4c8] sm:$0xff] }
 0x5e9   :  { %v5260_v33 = vld [vmem:[%s9949_s10 + $0x28] sm:$0xff] }
 0x5ea   :  { %v7438_v34 = vmax.f32 %v1667_v32, 0.0  ;;  %v7446_v40 = vmax.f32 %v1669_v38, 0.0  ;;  %v5292_v32 = vld [vmem:[%s9948_s9 + $0x3c8] sm:$0xff]  ;;  %v5311_v38 = vld [vmem:[%s9948_s9 + $0x460] sm:$0xff] }
 0x5eb   :  { %v1656_v35 = vpop.f32.mrf.mxu3 }
 0x5ec   :  { %v1666_v37 = vperm.slane %v1656_v35, 0  ;;  %1753 = vmatmul.f32.vlgmr.msra.gmra.mxu0 %v7438_v34  ;;  %1799 = vmatmul.f32.vlgmr.msra.gmra.mxu2 %v7438_v34  ;;  %v1832_v35 = vld [vmem:[%s9949_s10 + $0x18] sm:$0xf] }
 0x5ee   :  { %v1668_v18 = vsub.f32 %v1662_v36, %v1666_v37  ;;  %v1670_v2 = vsub.f32 %v1664_v26, %v1666_v37  ;;  %v5331_v36 = vld [vmem:[%s9948_s9 + $0x500] sm:$0xff]  ;;  %v5322_v37 = vld [vmem:[%s9948_s9 + $0x4b8] sm:$0xff]  ;;  %v5329_v26 = vld [vmem:[%s9948_s9 + $0x4f0] sm:$0xff] }
 0x5f0   :  { %v7443_v39 = vmax.f32 %v1668_v18, 0.0  ;;  %v7454_v31 = vmax.f32 %v1670_v2, 0.0  ;;  %v5290_v18 = vld [vmem:[%s9948_s9 + $0x3b8] sm:$0xff]  ;;  %v5320_v2 = vld [vmem:[%s9948_s9 + $0x4a8] sm:$0xff] }
 0x5f2   :  { %5195 = vmatmul.msk.f32.vlgmr.msrb.gmra.mxu1 %vm1402_vm7, %v7443_v39  ;;  %5197 = vmatmul.msk.f32.vlgmr.msrb.gmra.mxu3 %vm1402_vm7, %v7443_v39 }
 0x5f4   :  { %1756 = vmatmul.f32.gmra.mxu0 %v7446_v40  ;;  %1802 = vmatmul.f32.gmra.mxu2 %v7446_v40 }
 0x5fa   :  { %5196 = vmatmul.msk.f32.gmra.mxu1 %vm1402_vm7, %v7454_v31  ;;  %5198 = vmatmul.msk.f32.gmra.mxu3 %vm1402_vm7, %v7454_v31 }
 0x5fc   :  { %1952 = vmatmul.f32.vlgmr.msrb.gmra.mxu0 %v7438_v34  ;;  %5257 = vmatmul.msk.f32.vlgmr.msrb.gmra.mxu2 %vm1402_vm7, %v7443_v39 }
 0x602   :  { %1906 = vmatmul.f32.vlgmr.msra.gmra.mxu1 %v7438_v34  ;;  %5255 = vmatmul.msk.f32.vlgmr.msra.gmra.mxu3 %vm1402_vm7, %v7443_v39 }
 0x604   :  { %1955 = vmatmul.f32.gmra.mxu0 %v7446_v40  ;;  %5258 = vmatmul.msk.f32.gmra.mxu2 %vm1402_vm7, %v7454_v31 }
 0x60a   :  { %1909 = vmatmul.f32.gmra.mxu1 %v7446_v40  ;;  %5256 = vmatmul.msk.f32.gmra.mxu3 %vm1402_vm7, %v7454_v31 }
 0x669   :  { %v1754_v25 = vpop.f32.mrf.mxu0 }
 0x66f   :  { %v1777_v41 = vpop.f32.mrf.mxu1  ;;  %v1800_v19 = vpop.f32.mrf.mxu2 }
 0x670   :  { %v1778_v47 = vadd.f32 %v1777_v41, %v1754_v25  ;;  %v5309_v25 = vld [vmem:[%s9948_s9 + $0x450] sm:$0xff]  ;;  %v5288_v41 = vld [vmem:[%s9948_s9 + $0x3a8] sm:$0xff] }
 0x671   :  { %v1757_v42 = vpop.f32.mrf.mxu0 }
 0x675   :  { %v1823_v43 = vpop.f32.mrf.mxu3 }
 0x676   :  { %v1824_v57 = vadd.f32 %v1823_v43, %v1800_v19  ;;  %v5327_v19 = vld [vmem:[%s9948_s9 + $0x4e0] sm:$0xff] }
 0x677   :  { %v1780_v44 = vpop.f32.mrf.mxu1  ;;  %v1803_v45 = vpop.f32.mrf.mxu2  ;;  %v5307_v43 = vld [vmem:[%s9948_s9 + $0x440] sm:$0xff] }
 0x678   :  { %v1781_v46 = vadd.f32 %v1780_v44, %v1757_v42  ;;  %v5318_v42 = vld [vmem:[%s9948_s9 + $0x498] sm:$0xff] }
 0x679   :  { %v1953_v50 = vpop.f32.mrf.mxu0  ;;  %v5286_v44 = vld [vmem:[%s9948_s9 + $0x398] sm:$0xff] }
 0x67a   :  { %5273 = vmatpush.msk.msra.mxu2 %vm1393_vm9, %v1781_v46  ;;  %v5316_v46 = vld [vmem:[%s9948_s9 + $0x488] sm:$0xff] }
 0x67c   :  { %2097 = vmatpush.msra.mxu2 %v1778_v47  ;;  %v5305_v47 = vld [vmem:[%s9948_s9 + $0x430] sm:$0xff] }
 0x67d   :  { %v1826_v51 = vpop.f32.mrf.mxu3  ;;  %5274 = vmatmul.msk.f32.vlgmr.msra.gmra.mxu2 %vm1987_vm14, %v1829_v48 }
 0x67e   :  { %v1827_v53 = vadd.f32 %v1826_v51, %v1803_v45  ;;  %2243 = vmatpush.msrb.mxu2 %v5314_v49  ;;  %v5325_v45 = vld [vmem:[%s9948_s9 + $0x4d0] sm:$0xff]  ;;  %v5323_v51 = vld [vmem:[%s9948_s9 + $0x4c0] sm:$0xff] }
 0x67f   :  { %v1976_v55 = vpop.f32.mrf.mxu2  ;;  %v1907_v61 = vpop.f32.mrf.mxu1  ;;  %v5411_v49 = vld [vmem:[%s9948_s9 + $0x6f0] sm:$0xff] }
 0x680   :  { %5278 = vmatpush.msk.msra.mxu0 %vm1393_vm9, %v1827_v53  ;;  %2244 = vmatpush.msrb.mxu2 %v5312_v52  ;;  %v1977_v9 = vadd.f32 %v1976_v55, %v1953_v50  ;;  %v5261_v50 = vld [vmem:[%s9949_s10 + $0x30] sm:$0xff]  ;;  %v5303_v52 = vld [vmem:[%s9948_s9 + $0x420] sm:$0xff] }
 0x681   :  { %v1956_v4 = vpop.f32.mrf.mxu0  ;;  %v5409_v53 = vld [vmem:[%s9948_s9 + $0x6e0] sm:$0xff]  ;;  %v5321_v55 = vld [vmem:[%s9948_s9 + $0x4b0] sm:$0xff] }
 0x682   :  { %2126 = vmatpush.msra.mxu0 %v1824_v57  ;;  %2245 = vmatpush.msrb.mxu2 %v5310_v56  ;;  %v5301_v56 = vld [vmem:[%s9948_s9 + $0x410] sm:$0xff] }
 0x683   :  { %5279 = vmatmul.msk.f32.vlgmr.msra.gmra.mxu0 %vm1987_vm14, %v1829_v48  ;;  %v5284_v48 = vld [vmem:[%s9948_s9 + $0x388] sm:$0xff]  ;;  %v5407_v57 = vld [vmem:[%s9948_s9 + $0x6d0] sm:$0xff] }
 0x684   :  { %2246 = vmatpush.msrb.mxu2 %v5308_v58  ;;  %2270 = vmatpush.msrb.mxu0 %v5338_v59  ;;  %v5319_v58 = vld [vmem:[%s9948_s9 + $0x4a0] sm:$0xff] }
 0x685   :  { %v1930_v0 = vpop.f32.mrf.mxu3  ;;  %5275 = vmatmul.msk.f32.gmra.mxu2 %vm1987_vm14, %v1830_v60  ;;  %v5299_v59 = vld [vmem:[%s9948_s9 + $0x400] sm:$0xff] }
 0x686   :  { %2247 = vmatpush.msrb.mxu2 %v5306_v62  ;;  %2271 = vmatpush.msrb.mxu0 %v5336_v63  ;;  %v1931_v24 = vadd.f32 %v1930_v0, %v1907_v61  ;;  %v5317_v61 = vld [vmem:[%s9948_s9 + $0x490] sm:$0xff]  ;;  %v5262_v0 = vld [vmem:[%s9949_s10 + $0x38] sm:$0xf] }
 0x687   :  { %v1979_v5 = vpop.f32.mrf.mxu2  ;;  %v1910_v16 = vpop.f32.mrf.mxu1  ;;  %v5297_v62 = vld [vmem:[%s9948_s9 + $0x3f0] sm:$0xff] }
 0x688   :  { %v1980_v7 = vadd.f32 %v1979_v5, %v1956_v4  ;;  %2248 = vmatpush.msrb.mxu2 %v5304_v3  ;;  %2272 = vmatpush.msrb.mxu0 %v5334_v54  ;;  %v5403_v63 = vld [vmem:[%s9948_s9 + $0x6b0] sm:$0xff]  ;;  %v5315_v3 = vld [vmem:[%s9948_s9 + $0x480] sm:$0xff]  ;;  %v5412_v5 = vld [vmem:[%s9948_s9 + $0x6f8] sm:$0xff] }
 0x689   :  { %v5295_v54 = vld [vmem:[%s9948_s9 + $0x3e0] sm:$0xff] }
 0x68a   :  { %5268 = vmatpush.msk.msrb.mxu1 %vm1393_vm9, %v1980_v7  ;;  %2249 = vmatpush.msrb.mxu2 %v5302_v6  ;;  %v5401_v4 = vld [vmem:[%s9948_s9 + $0x6a0] sm:$0xff]  ;;  %v5293_v6 = vld [vmem:[%s9948_s9 + $0x3d0] sm:$0xff] }
 0x68b   :  { %5280 = vmatmul.msk.f32.gmra.mxu0 %vm1987_vm14, %v1830_v60  ;;  %v5405_v60 = vld [vmem:[%s9948_s9 + $0x6c0] sm:$0xff]  ;;  %v5399_v7 = vld [vmem:[%s9948_s9 + $0x690] sm:$0xff] }
 0x68c   :  { %2273 = vmatpush.msrb.mxu0 %v5332_v8  ;;  %2050 = vmatpush.msrb.mxu1 %v1977_v9  ;;  %v5410_v8 = vld [vmem:[%s9948_s9 + $0x6e8] sm:$0xff]  ;;  %v5291_v9 = vld [vmem:[%s9948_s9 + $0x3c0] sm:$0xff] }
 0x68d   :  { %2250 = vmatpush.msrb.mxu2 %v5300_v10  ;;  %v1933_v17 = vpop.f32.mrf.mxu3  ;;  %5269 = vmatmul.msk.f32.vlgmr.msrb.gmra.mxu1 %vm1987_vm14, %v5259_v11  ;;  %v5397_v10 = vld [vmem:[%s9948_s9 + $0x680] sm:$0xff] }
 0x68e   :  { %v1934_v20 = vadd.f32 %v1933_v17, %v1910_v16  ;;  %5276 = vmatmul.msk.f32.gmra.mxu2 %vm1987_vm14, %v1831_v12  ;;  %2274 = vmatpush.msrb.mxu0 %v5330_v13  ;;  %v5395_v13 = vld [vmem:[%s9948_s9 + $0x670] sm:$0xff]  ;;  %v5393_v16 = vld [vmem:[%s9948_s9 + $0x660] sm:$0xff]  ;;  %v5404_v17 = vld [vmem:[%s9948_s9 + $0x6b8] sm:$0xff] }
 0x68f   :  { %2251 = vmatpush.msrb.mxu2 %v5298_v14  ;;  %2224 = vmatpush.msra.mxu1 %v5337_v15  ;;  %v5406_v14 = vld [vmem:[%s9948_s9 + $0x6c8] sm:$0xff]  ;;  %v5287_v15 = vld [vmem:[%s9948_s9 + $0x3a0] sm:$0xff] }
 0x690   :  { %2275 = vmatpush.msrb.mxu0 %v5328_v1  ;;  %5263 = vmatpush.msk.msrb.mxu3 %vm1393_vm9, %v1934_v20  ;;  %v5285_v1 = vld [vmem:[%s9948_s9 + $0x390] sm:$0xff] }
 0x691   :  { %2252 = vmatpush.msrb.mxu2 %v5296_v21  ;;  %2225 = vmatpush.msra.mxu1 %v5335_v22  ;;  %v5391_v20 = vld [vmem:[%s9948_s9 + $0x650] sm:$0xff]  ;;  %v5402_v21 = vld [vmem:[%s9948_s9 + $0x6a8] sm:$0xff]  ;;  %v5283_v22 = vld [vmem:[%s9948_s9 + $0x380] sm:$0xff] }
 0x692   :  { %2276 = vmatpush.msrb.mxu0 %v5326_v23  ;;  %2021 = vmatpush.msrb.mxu3 %v1931_v24  ;;  %v5389_v23 = vld [vmem:[%s9948_s9 + $0x640] sm:$0xff]  ;;  %v5400_v24 = vld [vmem:[%s9948_s9 + $0x698] sm:$0xff] }
 0x693   :  { %2253 = vmatpush.msrb.mxu2 %v5294_v27  ;;  %5264 = vmatmul.msk.f32.vlgmr.msrb.gmra.mxu3 %vm1987_vm14, %v5259_v11  ;;  %v5408_v11 = vld [vmem:[%s9948_s9 + $0x6d8] sm:$0xff]  ;;  %v5398_v27 = vld [vmem:[%s9948_s9 + $0x688] sm:$0xff] }
 0x694   :  { %5281 = vmatmul.msk.f32.gmra.mxu0 %vm1987_vm14, %v1831_v12  ;;  %2226 = vmatpush.msra.mxu1 %v5333_v28  ;;  %v5289_v12 = vld [vmem:[%s9948_s9 + $0x3b0] sm:$0xff]  ;;  %v5396_v28 = vld [vmem:[%s9948_s9 + $0x678] sm:$0xff] }
 0x695   :  { %2277 = vmatpush.msrb.mxu0 %v5324_v29  ;;  %2197 = vmatpush.msra.mxu3 %v5313_v30  ;;  %v5394_v29 = vld [vmem:[%s9948_s9 + $0x668] sm:$0xff]  ;;  %v5392_v30 = vld [vmem:[%s9948_s9 + $0x658] sm:$0xff] }
 0x696   :  { %2254 = vmatpush.msrb.mxu2 %v5292_v32  ;;  %5270 = vmatmul.msk.f32.gmra.mxu1 %vm1987_vm14, %v5260_v33  ;;  %v5390_v32 = vld [vmem:[%s9948_s9 + $0x648] sm:$0xff] }
 0x697   :  { %5277 = vmatmul.msk.f32.gmra.mxu2 %vm1987_vm14, %v1832_v35  ;;  %2227 = vmatpush.msra.mxu1 %v5331_v36 }
 0x698   :  { %2278 = vmatpush.msrb.mxu0 %v5322_v37  ;;  %2198 = vmatpush.msra.mxu3 %v5311_v38 }
 0x699   :  { %2255 = vmatpush.msrb.mxu2 %v5290_v18  ;;  %2228 = vmatpush.msra.mxu1 %v5329_v26 }
 0x69a   :  { %2279 = vmatpush.msrb.mxu0 %v5320_v2  ;;  %2199 = vmatpush.msra.mxu3 %v5309_v25 }
 0x69b   :  { %2256 = vmatpush.msrb.mxu2 %v5288_v41  ;;  %2229 = vmatpush.msra.mxu1 %v5327_v19 }
 0x69c   :  { %2280 = vmatpush.msrb.mxu0 %v5318_v42  ;;  %2200 = vmatpush.msra.mxu3 %v5307_v43 }
 0x69d   :  { %2257 = vmatpush.msrb.mxu2 %v5286_v44  ;;  %5265 = vmatmul.msk.f32.gmra.mxu3 %vm1987_vm14, %v5260_v33 }
 0x69e   :  { %5282 = vmatmul.msk.f32.gmra.mxu0 %vm1987_vm14, %v1832_v35  ;;  %2230 = vmatpush.msra.mxu1 %v5325_v45 }
 0x69f   :  { %2281 = vmatpush.msrb.mxu0 %v5316_v46  ;;  %2201 = vmatpush.msra.mxu3 %v5305_v47 }
 0x6a0   :  { %2258 = vmatpush.msrb.mxu2 %v5284_v48  ;;  %5271 = vmatmul.msk.f32.gmra.mxu1 %vm1987_vm14, %v5261_v50 }
 0x6a1   :  { %2462 = vmatpush.msra.mxu0 %v5411_v49  ;;  %2259 = vmatmul.f32.vlgmr.msrb.gmra.mxu2 %v7438_v34 }
 0x6a2   :  { %2231 = vmatpush.msra.mxu1 %v5323_v51  ;;  %2202 = vmatpush.msra.mxu3 %v5303_v52  ;;  %v5387_v51 = vld [vmem:[%s9948_s9 + $0x630] sm:$0xff] }
 0x6a3   :  { %2463 = vmatpush.msra.mxu0 %v5409_v53  ;;  %v5385_v53 = vld [vmem:[%s9948_s9 + $0x620] sm:$0xff] }
 0x6a4   :  { %2232 = vmatpush.msra.mxu1 %v5321_v55  ;;  %2203 = vmatpush.msra.mxu3 %v5301_v56  ;;  %v5383_v55 = vld [vmem:[%s9948_s9 + $0x610] sm:$0xff]  ;;  %v5381_v56 = vld [vmem:[%s9948_s9 + $0x600] sm:$0xff] }
 0x6a5   :  { %2464 = vmatpush.msra.mxu0 %v5407_v57  ;;  %5266 = vmatmul.msk.f32.gmra.mxu3 %vm1987_vm14, %v5261_v50  ;;  %v5343_v50 = vld [vmem:[%s9949_s10 + $0x40] sm:$0xff]  ;;  %v5344_v57 = vld [vmem:[%s9949_s10 + $0x48] sm:$0xff] }
 0x6a6   :  { %2233 = vmatpush.msra.mxu1 %v5319_v58  ;;  %2204 = vmatpush.msra.mxu3 %v5299_v59  ;;  %v5379_v58 = vld [vmem:[%s9948_s9 + $0x5f0] sm:$0xff] }
 0x6a7   :  { %2465 = vmatpush.msra.mxu0 %v5405_v60  ;;  %v5377_v60 = vld [vmem:[%s9948_s9 + $0x5e0] sm:$0xff] }
 0x6a8   :  { %2234 = vmatpush.msra.mxu1 %v5317_v61  ;;  %5341 = vmatmul.msk.f32.vlgmr.msrb.gmra.mxu0 %vm1402_vm7, %v7443_v39 }
 0x6a9   :  { %2205 = vmatpush.msra.mxu3 %v5297_v62  ;;  %2466 = vmatpush.msra.mxu0 %v5403_v63  ;;  %v5375_v62 = vld [vmem:[%s9948_s9 + $0x5d0] sm:$0xff]  ;;  %v5373_v63 = vld [vmem:[%s9948_s9 + $0x5c0] sm:$0xff] }
 0x6aa   :  { %5272 = vmatmul.msk.f32.gmra.mxu1 %vm1987_vm14, %v5262_v0  ;;  %2262 = vmatmul.f32.gmra.mxu2 %v7446_v40 }
 0x6ab   :  { %2235 = vmatpush.msra.mxu1 %v5315_v3  ;;  %2206 = vmatpush.msra.mxu3 %v5295_v54  ;;  %v5371_v3 = vld [vmem:[%s9948_s9 + $0x5b0] sm:$0xff]  ;;  %v5369_v54 = vld [vmem:[%s9948_s9 + $0x5a0] sm:$0xff] }
 0x6ac   :  { %2467 = vmatpush.msra.mxu0 %v5401_v4 }
 0x6ad   :  { %2508 = vmatpush.msrb.mxu1 %v5412_v5  ;;  %2207 = vmatpush.msra.mxu3 %v5293_v6 }
 0x6ae   :  { %2468 = vmatpush.msra.mxu0 %v5399_v7  ;;  %5267 = vmatmul.msk.f32.gmra.mxu3 %vm1987_vm14, %v5262_v0  ;;  %v5345_v0 = vld [vmem:[%s9949_s10 + $0x50] sm:$0xff] }
 0x6af   :  { %2509 = vmatpush.msrb.mxu1 %v5410_v8  ;;  %2208 = vmatpush.msra.mxu3 %v5291_v9  ;;  %v5367_v7 = vld [vmem:[%s9948_s9 + $0x590] sm:$0xff]  ;;  %v5365_v9 = vld [vmem:[%s9948_s9 + $0x580] sm:$0xff] }
 0x6b0   :  { %2469 = vmatpush.msra.mxu0 %v5397_v10  ;;  %v5388_v10 = vld [vmem:[%s9948_s9 + $0x638] sm:$0xff] }
 0x6b1   :  { %2510 = vmatpush.msrb.mxu1 %v5408_v11  ;;  %5342 = vmatmul.msk.f32.gmra.mxu0 %vm1402_vm7, %v7454_v31  ;;  %v5346_v11 = vld [vmem:[%s9949_s10 + $0x58] sm:$0xf] }
 0x6b2   :  { %2209 = vmatpush.msra.mxu3 %v5289_v12  ;;  %2470 = vmatpush.msra.mxu0 %v5395_v13  ;;  %v5363_v12 = vld [vmem:[%s9948_s9 + $0x570] sm:$0xff]  ;;  %v5386_v13 = vld [vmem:[%s9948_s9 + $0x628] sm:$0xff] }
 0x6b3   :  { %2511 = vmatpush.msrb.mxu1 %v5406_v14  ;;  %v5361_v14 = vld [vmem:[%s9948_s9 + $0x560] sm:$0xff] }
 0x6b4   :  { %5339 = vmatmul.msk.f32.vlgmr.msra.gmra.mxu1 %vm1402_vm7, %v7443_v39  ;;  %2210 = vmatpush.msra.mxu3 %v5287_v15  ;;  %v5384_v15 = vld [vmem:[%s9948_s9 + $0x618] sm:$0xff] }
 0x6b5   :  { %2471 = vmatpush.msra.mxu0 %v5393_v16  ;;  %2512 = vmatpush.msrb.mxu1 %v5404_v17  ;;  %v5359_v16 = vld [vmem:[%s9948_s9 + $0x550] sm:$0xff]  ;;  %v5382_v17 = vld [vmem:[%s9948_s9 + $0x608] sm:$0xff] }
 0x6b6   :  { %2211 = vmatpush.msra.mxu3 %v5285_v1  ;;  %v5357_v1 = vld [vmem:[%s9948_s9 + $0x540] sm:$0xff] }
 0x6b7   :  { %2472 = vmatpush.msra.mxu0 %v5391_v20  ;;  %2513 = vmatpush.msrb.mxu1 %v5402_v21  ;;  %v5380_v20 = vld [vmem:[%s9948_s9 + $0x5f8] sm:$0xff]  ;;  %v5378_v21 = vld [vmem:[%s9948_s9 + $0x5e8] sm:$0xff] }
 0x6b8   :  { %2212 = vmatpush.msra.mxu3 %v5283_v22  ;;  %v5376_v22 = vld [vmem:[%s9948_s9 + $0x5d8] sm:$0xff] }
 0x6b9   :  { %2473 = vmatpush.msra.mxu0 %v5389_v23  ;;  %2514 = vmatpush.msrb.mxu1 %v5400_v24  ;;  %v5374_v23 = vld [vmem:[%s9948_s9 + $0x5c8] sm:$0xff]  ;;  %v5372_v24 = vld [vmem:[%s9948_s9 + $0x5b8] sm:$0xff] }
 0x6ba   :  { %2213 = vmatmul.f32.vlgmr.msra.gmra.mxu3 %v7438_v34  ;;  %5413 = vmatmul.msk.f32.vlgmr.msra.gmra.mxu0 %vm1402_vm7, %v7443_v39 }
 0x6bb   :  { %2515 = vmatpush.msrb.mxu1 %v5398_v27  ;;  %v5370_v27 = vld [vmem:[%s9948_s9 + $0x5a8] sm:$0xff] }
 0x6bc   :  { %5340 = vmatmul.msk.f32.gmra.mxu1 %vm1402_vm7, %v7454_v31 }
 0x6bd   :  { %2516 = vmatpush.msrb.mxu1 %v5396_v28  ;;  %v5368_v28 = vld [vmem:[%s9948_s9 + $0x598] sm:$0xff] }
 0x6bf   :  { %2517 = vmatpush.msrb.mxu1 %v5394_v29  ;;  %v5366_v29 = vld [vmem:[%s9948_s9 + $0x588] sm:$0xff] }
 0x6c1   :  { %2518 = vmatpush.msrb.mxu1 %v5392_v30  ;;  %v5364_v30 = vld [vmem:[%s9948_s9 + $0x578] sm:$0xff] }
 0x6c2   :  { %2216 = vmatmul.f32.gmra.mxu3 %v7446_v40  ;;  %5414 = vmatmul.msk.f32.gmra.mxu0 %vm1402_vm7, %v7454_v31 }
 0x6c3   :  { %2519 = vmatpush.msrb.mxu1 %v5390_v32  ;;  %v5362_v32 = vld [vmem:[%s9948_s9 + $0x568] sm:$0xff] }
 0x6c4   :  { %5415 = vmatmul.msk.f32.vlgmr.msrb.gmra.mxu1 %vm1402_vm7, %v7443_v39 }
 0x6cc   :  { %5416 = vmatmul.msk.f32.gmra.mxu1 %vm1402_vm7, %v7454_v31 }
 0x700   :  { %v7776_v33 = vpop.f32.mrf.mxu2  ;;  %v7778_v35 = vpop.f32.mrf.mxu0 }
 0x708   :  { %v7780_v36 = vpop.f32.mrf.mxu2  ;;  %v7782_v37 = vpop.f32.mrf.mxu0 }
 0x70a   :  { %v7788_v26 = vpop.f32.mrf.mxu1 }
 0x711   :  { %v7784_v38 = vpop.f32.mrf.mxu2  ;;  %v7786_v18 = vpop.f32.mrf.mxu0 }
 0x713   :  { %v7796_v31 = vpop.f32.mrf.mxu1 }
 0x716   :  { %v7790_v2 = vpop.f32.mrf.mxu3 }
 0x71a   :  { %v7792_v39 = vpop.f32.mrf.mxu2 }
 0x71b   :  { %v7794_v25 = vpop.f32.mrf.mxu0 }
 0x71d   :  { %v7800_v43 = vpop.f32.mrf.mxu1 }
 0x720   :  { %v7798_v41 = vpop.f32.mrf.mxu3 }
 0x724   :  { %v2260_v19 = vpop.f32.mrf.mxu2 }
 0x725   :  { %v2283_v42 = vpop.f32.mrf.mxu0 }
 0x726   :  { %v2284_v48 = vadd.f32 %v2283_v42, %v2260_v19  ;;  %v5360_v19 = vld [vmem:[%s9948_s9 + $0x558] sm:$0xff]  ;;  %v5358_v42 = vld [vmem:[%s9948_s9 + $0x548] sm:$0xff] }
 0x727   :  { %v7804_v49 = vpop.f32.mrf.mxu1 }
 0x728   :  { %v7802_v44 = vpop.f32.mrf.mxu3 }
 0x72d   :  { %v2263_v45 = vpop.f32.mrf.mxu2 }
 0x72e   :  { %v2286_v46 = vpop.f32.mrf.mxu0 }
 0x72f   :  { %v2287_v47 = vadd.f32 %v2286_v46, %v2263_v45 }
 0x731   :  { %5352 = vmatpush.msk.msra.mxu2 %vm1393_vm9, %v2287_v47  ;;  %v7813_v52 = vpop.f32.mrf.mxu3  ;;  %v2237_v59 = vpop.f32.mrf.mxu1 }
 0x733   :  { %2356 = vmatpush.msra.mxu2 %v2284_v48 }
 0x734   :  { %5353 = vmatmul.msk.f32.vlgmr.msra.gmra.mxu2 %vm1987_vm14, %v5343_v50 }
 0x735   :  { %2435 = vmatpush.msrb.mxu2 %v5387_v51 }
 0x737   :  { %2436 = vmatpush.msrb.mxu2 %v5385_v53  ;;  %v2475_v51 = vpop.f32.mrf.mxu0 }
 0x739   :  { %2437 = vmatpush.msrb.mxu2 %v5383_v55  ;;  %v2240_v4 = vpop.f32.mrf.mxu1 }
 0x73b   :  { %2438 = vmatpush.msrb.mxu2 %v5381_v56 }
 0x73c   :  { %5354 = vmatmul.msk.f32.gmra.mxu2 %vm1987_vm14, %v5344_v57 }
 0x73d   :  { %v2214_v61 = vpop.f32.mrf.mxu3  ;;  %2439 = vmatpush.msrb.mxu2 %v5379_v58 }
 0x73e   :  { %v2238_v8 = vadd.f32 %v2237_v59, %v2214_v61  ;;  %v5417_v59 = vld [vmem:[%s9949_s10 + $0x60] sm:$0xff]  ;;  %v5418_v61 = vld [vmem:[%s9949_s10 + $0x68] sm:$0xff] }
 0x73f   :  { %2440 = vmatpush.msrb.mxu2 %v5377_v60 }
 0x741   :  { %2441 = vmatpush.msrb.mxu2 %v5375_v62  ;;  %v2521_v62 = vpop.f32.mrf.mxu1 }
 0x743   :  { %2442 = vmatpush.msrb.mxu2 %v5373_v63 }
 0x744   :  { %5355 = vmatmul.msk.f32.gmra.mxu2 %vm1987_vm14, %v5345_v0 }
 0x745   :  { %v2217_v5 = vpop.f32.mrf.mxu3  ;;  %2443 = vmatpush.msrb.mxu2 %v5371_v3 }
 0x746   :  { %v2241_v6 = vadd.f32 %v2240_v4, %v2217_v5 }
 0x747   :  { %2444 = vmatpush.msrb.mxu2 %v5369_v54 }
 0x748   :  { %5347 = vmatpush.msk.msrb.mxu3 %vm1393_vm9, %v2241_v6  ;;  %v5420_v6 = vld [vmem:[%s9949_s10 + $0x78] sm:$0xf] }
 0x749   :  { %2445 = vmatpush.msrb.mxu2 %v5367_v7  ;;  %v2524_v3 = vpop.f32.mrf.mxu1  ;;  %v2687_v7 = vld [vmem:[%s9950_s11 + $0x78] sm:$0xff] }
 0x74a   :  { %2327 = vmatpush.msrb.mxu3 %v2238_v8  ;;  %v2686_v8 = vld [vmem:[%s9950_s11 + $0x70] sm:$0xff] }
 0x74b   :  { %5348 = vmatmul.msk.f32.vlgmr.msrb.gmra.mxu3 %vm1987_vm14, %v5343_v50  ;;  %2446 = vmatpush.msrb.mxu2 %v5365_v9  ;;  %v2685_v9 = vld [vmem:[%s9950_s11 + $0x68] sm:$0xff] }
 0x74c   :  { %2481 = vmatpush.msra.mxu3 %v5388_v10  ;;  %5356 = vmatmul.msk.f32.gmra.mxu2 %vm1987_vm14, %v5346_v11  ;;  %v2684_v10 = vld [vmem:[%s9950_s11 + $0x60] sm:$0xff] }
 0x74d   :  { %2447 = vmatpush.msrb.mxu2 %v5363_v12  ;;  %v2682_v12 = vld [vmem:[%s9950_s11 + $0x50] sm:$0xff] }
 0x74e   :  { %2482 = vmatpush.msra.mxu3 %v5386_v13  ;;  %v2681_v13 = vld [vmem:[%s9950_s11 + $0x48] sm:$0xff] }
 0x74f   :  { %2448 = vmatpush.msrb.mxu2 %v5361_v14  ;;  %v2680_v14 = vld [vmem:[%s9950_s11 + $0x40] sm:$0xff] }
 0x750   :  { %2483 = vmatpush.msra.mxu3 %v5384_v15  ;;  %v2679_v15 = vld [vmem:[%s9950_s11 + $0x38] sm:$0xff] }
 0x751   :  { %2449 = vmatpush.msrb.mxu2 %v5359_v16  ;;  %v2678_v16 = vld [vmem:[%s9950_s11 + $0x30] sm:$0xff] }
 0x752   :  { %2484 = vmatpush.msra.mxu3 %v5382_v17  ;;  %v2677_v17 = vld [vmem:[%s9950_s11 + $0x28] sm:$0xff] }
 0x753   :  { %5349 = vmatmul.msk.f32.gmra.mxu3 %vm1987_vm14, %v5344_v57  ;;  %2450 = vmatpush.msrb.mxu2 %v5357_v1  ;;  %v2478_v57 = vpop.f32.mrf.mxu0 }
 0x754   :  { %2485 = vmatpush.msra.mxu3 %v5380_v20  ;;  %2451 = vmatmul.f32.vlgmr.msrb.gmra.mxu2 %v7438_v34  ;;  %v2676_v20 = vld [vmem:[%s9950_s11 + $0x20] sm:$0xff] }
 0x756   :  { %2486 = vmatpush.msra.mxu3 %v5378_v21  ;;  %v2675_v21 = vld [vmem:[%s9950_s11 + $0x18] sm:$0xff] }
 0x758   :  { %2487 = vmatpush.msra.mxu3 %v5376_v22  ;;  %v2674_v22 = vld [vmem:[%s9950_s11 + $0x10] sm:$0xff] }
 0x75a   :  { %2488 = vmatpush.msra.mxu3 %v5374_v23  ;;  %v2673_v23 = vld [vmem:[%s9950_s11 + $0x8] sm:$0xff] }
 0x75b   :  { %5350 = vmatmul.msk.f32.gmra.mxu3 %vm1987_vm14, %v5345_v0  ;;  %v5419_v0 = vld [vmem:[%s9949_s10 + $0x70] sm:$0xff] }
 0x75c   :  { %2489 = vmatpush.msra.mxu3 %v5372_v24  ;;  %2454 = vmatmul.f32.gmra.mxu2 %v7446_v40 }
 0x75e   :  { %2490 = vmatpush.msra.mxu3 %v5370_v27  ;;  %v2672_v27 = vld [vmem:[%s9950_s11] sm:$0xff] }
 0x760   :  { %2491 = vmatpush.msra.mxu3 %v5368_v28  ;;  %v2103_v28 = vadd.f32 %v7780_v36, %v7798_v41 }
 0x762   :  { %2492 = vmatpush.msra.mxu3 %v5366_v29  ;;  %v2699_v29 = vld [vmem:[%s9950_s11 + $0xd8] sm:$0xff] }
 0x763   :  { %5351 = vmatmul.msk.f32.gmra.mxu3 %vm1987_vm14, %v5346_v11  ;;  %v2683_v11 = vld [vmem:[%s9950_s11 + $0x58] sm:$0xff]  ;;  %2727 = vmatpush.msra.mxu1 %v2699_v29 }
 0x764   :  { %2493 = vmatpush.msra.mxu3 %v5364_v30  ;;  %v2100_v30 = vadd.f32 %v7776_v33, %v7790_v2  ;;  %v2697_v33 = vld [vmem:[%s9950_s11 + $0xc8] sm:$0xff] }
 0x766   :  { %2494 = vmatpush.msra.mxu3 %v5362_v32  ;;  %v2106_v32 = vadd.f32 %v7784_v38, %v7802_v44  ;;  %v2109_v44 = vadd.f32 %v7792_v39, %v7813_v52 }
 0x768   :  { %2495 = vmatpush.msra.mxu3 %v5360_v19 }
 0x76a   :  { %2496 = vmatpush.msra.mxu3 %v5358_v42 }
 0x76b   :  { %2497 = vmatmul.f32.vlgmr.msra.gmra.mxu3 %v7438_v34 }
 0x76c   :  { %2703 = vmatpush.msrb.mxu3 %v2687_v7 }
 0x76e   :  { %2704 = vmatpush.msrb.mxu3 %v2686_v8 }
 0x770   :  { %2705 = vmatpush.msrb.mxu3 %v2685_v9 }
 0x772   :  { %2706 = vmatpush.msrb.mxu3 %v2684_v10 }
 0x773   :  { %2500 = vmatmul.f32.gmra.mxu3 %v7446_v40 }
 0x774   :  { %2707 = vmatpush.msrb.mxu3 %v2683_v11 }
 0x776   :  { %2708 = vmatpush.msrb.mxu3 %v2682_v12 }
 0x778   :  { %2709 = vmatpush.msrb.mxu3 %v2681_v13 }
 0x77a   :  { %2710 = vmatpush.msrb.mxu3 %v2680_v14 }
 0x77c   :  { %2711 = vmatpush.msrb.mxu3 %v2679_v15 }
 0x77e   :  { %2712 = vmatpush.msrb.mxu3 %v2678_v16 }
 0x780   :  { %2713 = vmatpush.msrb.mxu3 %v2677_v17 }
 0x782   :  { %2714 = vmatpush.msrb.mxu3 %v2676_v20 }
 0x784   :  { %2715 = vmatpush.msrb.mxu3 %v2675_v21 }
 0x786   :  { %2716 = vmatpush.msrb.mxu3 %v2674_v22 }
 0x788   :  { %2717 = vmatpush.msrb.mxu3 %v2673_v23 }
 0x78a   :  { %2718 = vmatpush.msrb.mxu3 %v2672_v27 }
 0x7b7   :  { %v7930_v45 = vpop.f32.mrf.mxu2 }
 0x7bf   :  { %v7932_v46 = vpop.f32.mrf.mxu2 }
 0x7c7   :  { %v7934_v47 = vpop.f32.mrf.mxu2 }
 0x7ce   :  { %v7936_v48 = vpop.f32.mrf.mxu3 }
 0x7cf   :  { %v7938_v50 = vpop.f32.mrf.mxu2  ;;  %v2370_v36 = vadd.f32 %v7936_v48, %v2100_v30  ;;  %v2696_v48 = vld [vmem:[%s9950_s11 + $0xc0] sm:$0xff] }
 0x7d6   :  { %v7940_v53 = vpop.f32.mrf.mxu3 }
 0x7d7   :  { %v2452_v55 = vpop.f32.mrf.mxu2  ;;  %v2372_v19 = vadd.f32 %v7940_v53, %v2103_v28  ;;  %v2129_v28 = vadd.f32 %v7778_v35, %v7788_v26 }
 0x7d8   :  { %v2476_v40 = vadd.f32 %v2475_v51, %v2452_v55  ;;  %v2698_v51 = vld [vmem:[%s9950_s11 + $0xd0] sm:$0xff] }
 0x7d9   :  { %2728 = vmatpush.msra.mxu1 %v2698_v51 }
 0x7db   :  { %2729 = vmatpush.msra.mxu1 %v2697_v33 }
 0x7dd   :  { %2730 = vmatpush.msra.mxu1 %v2696_v48 }
 0x7de   :  { %v7942_v56 = vpop.f32.mrf.mxu3 }
 0x7df   :  { %v2455_v34 = vpop.f32.mrf.mxu2  ;;  %v2374_v41 = vadd.f32 %v7942_v56, %v2106_v32 }
 0x7e0   :  { %v2479_v58 = vadd.f32 %v2478_v57, %v2455_v34  ;;  %v2695_v57 = vld [vmem:[%s9950_s11 + $0xb8] sm:$0xff] }
 0x7e1   :  { %2731 = vmatpush.msra.mxu1 %v2695_v57 }
 0x7e2   :  { %5421 = vmatpush.msk.msrb.mxu0 %vm1393_vm9, %v2479_v58 }
 0x7e4   :  { %2565 = vmatpush.msrb.mxu0 %v2476_v40 }
 0x7e5   :  { %5422 = vmatmul.msk.f32.vlgmr.msrb.gmra.mxu0 %vm1987_vm14, %v5417_v59 }
 0x7e6   :  { %v7949_v60 = vpop.f32.mrf.mxu3  ;;  %2747 = vmatpush.msra.mxu0 %v2687_v7 }
 0x7e7   :  { %v2376_v56 = vadd.f32 %v7949_v60, %v2109_v44 }
 0x7e8   :  { %2748 = vmatpush.msra.mxu0 %v2686_v8 }
 0x7ea   :  { %2749 = vmatpush.msra.mxu0 %v2685_v9  ;;  %v2691_v9 = vld [vmem:[%s9950_s11 + $0x98] sm:$0xff] }
 0x7ec   :  { %2750 = vmatpush.msra.mxu0 %v2684_v10 }
 0x7ed   :  { %5423 = vmatmul.msk.f32.gmra.mxu0 %vm1987_vm14, %v5418_v61 }
 0x7ee   :  { %v2498_v63 = vpop.f32.mrf.mxu3  ;;  %2751 = vmatpush.msra.mxu0 %v2683_v11 }
 0x7ef   :  { %v2522_v5 = vadd.f32 %v2521_v62, %v2498_v63 }
 0x7f0   :  { %2752 = vmatpush.msra.mxu0 %v2682_v12  ;;  %v2690_v12 = vld [vmem:[%s9950_s11 + $0x90] sm:$0xff] }
 0x7f2   :  { %2753 = vmatpush.msra.mxu0 %v2681_v13 }
 0x7f4   :  { %2754 = vmatpush.msra.mxu0 %v2680_v14 }
 0x7f5   :  { %5424 = vmatmul.msk.f32.gmra.mxu0 %vm1987_vm14, %v5419_v0 }
 0x7f6   :  { %v2501_v54 = vpop.f32.mrf.mxu3  ;;  %2755 = vmatpush.msra.mxu0 %v2679_v15  ;;  %v2689_v15 = vld [vmem:[%s9950_s11 + $0x88] sm:$0xff] }
 0x7f7   :  { %v2525_v4 = vadd.f32 %v2524_v3, %v2501_v54 }
 0x7f8   :  { %2756 = vmatpush.msra.mxu0 %v2678_v16 }
 0x7f9   :  { %5426 = vmatpush.msk.msra.mxu2 %vm1393_vm9, %v2525_v4 }
 0x7fa   :  { %2757 = vmatpush.msra.mxu0 %v2677_v17 }
 0x7fb   :  { %2594 = vmatpush.msra.mxu2 %v2522_v5 }
 0x7fc   :  { %5427 = vmatmul.msk.f32.vlgmr.msra.gmra.mxu2 %vm1987_vm14, %v5417_v59  ;;  %2758 = vmatpush.msra.mxu0 %v2676_v20  ;;  %v2694_v59 = vld [vmem:[%s9950_s11 + $0xb0] sm:$0xff]  ;;  %v2688_v20 = vld [vmem:[%s9950_s11 + $0x80] sm:$0xff] }
 0x7fd   :  { %5425 = vmatmul.msk.f32.gmra.mxu0 %vm1987_vm14, %v5420_v6  ;;  %2771 = vmatpush.msrb.mxu2 %v2699_v29  ;;  %v2135_v29 = vadd.f32 %v7786_v18, %v7800_v43  ;;  %v2138_v18 = vadd.f32 %v7794_v25, %v7804_v49 }
 0x7fe   :  { %2759 = vmatpush.msra.mxu0 %v2675_v21  ;;  %2732 = vmatpush.msra.mxu1 %v2694_v59 }
 0x7ff   :  { %2772 = vmatpush.msrb.mxu2 %v2698_v51 }
 0x800   :  { %2760 = vmatpush.msra.mxu0 %v2674_v22 }
 0x801   :  { %2773 = vmatpush.msrb.mxu2 %v2697_v33 }
 0x802   :  { %2761 = vmatpush.msra.mxu0 %v2673_v23  ;;  %v2132_v23 = vadd.f32 %v7782_v37, %v7796_v31 }
 0x803   :  { %2774 = vmatpush.msrb.mxu2 %v2696_v48 }
 0x804   :  { %5428 = vmatmul.msk.f32.gmra.mxu2 %vm1987_vm14, %v5418_v61  ;;  %2762 = vmatpush.msra.mxu0 %v2672_v27  ;;  %v2373_v30 = vadd.f32 %v7932_v46, %v2132_v23  ;;  %v2377_v46 = vadd.f32 %v7938_v50, %v2138_v18  ;;  %v2951_v23 = vld [vmem:[%s9952_s13 + $0xf0] sm:$0xff] }
 0x805   :  { %2775 = vmatpush.msrb.mxu2 %v2695_v57  ;;  %v2943_v18 = vld [vmem:[%s9952_s13 + $0xb0] sm:$0xff] }
 0x807   :  { %2776 = vmatpush.msrb.mxu2 %v2694_v59 }
 0x80c   :  { %5429 = vmatmul.msk.f32.gmra.mxu2 %vm1987_vm14, %v5419_v0  ;;  %v2693_v0 = vld [vmem:[%s9950_s11 + $0xa8] sm:$0xff] }
 0x80d   :  { %2733 = vmatpush.msra.mxu1 %v2693_v0  ;;  %2777 = vmatpush.msrb.mxu2 %v2693_v0 }
 0x814   :  { %5430 = vmatmul.msk.f32.gmra.mxu2 %vm1987_vm14, %v5420_v6  ;;  %v2692_v6 = vld [vmem:[%s9950_s11 + $0xa0] sm:$0xff] }
 0x815   :  { %2734 = vmatpush.msra.mxu1 %v2692_v6  ;;  %2778 = vmatpush.msrb.mxu2 %v2692_v6 }
 0x817   :  { %2735 = vmatpush.msra.mxu1 %v2691_v9  ;;  %2779 = vmatpush.msrb.mxu2 %v2691_v9  ;;  %v2803_v9 = vld [vmem:[#allocation8 + $0x10] sm:$0xff] }
 0x818   :  { %2867 = vmatpush.msrb.mxu0 %v2803_v9 }
 0x819   :  { %2736 = vmatpush.msra.mxu1 %v2690_v12  ;;  %2780 = vmatpush.msrb.mxu2 %v2690_v12  ;;  %v2802_v12 = vld [vmem:[#allocation8 + $0x8] sm:$0xff] }
 0x81b   :  { %2737 = vmatpush.msra.mxu1 %v2689_v15  ;;  %2781 = vmatpush.msrb.mxu2 %v2689_v15 }
 0x81d   :  { %2738 = vmatpush.msra.mxu1 %v2688_v20  ;;  %2782 = vmatpush.msrb.mxu2 %v2688_v20 }
 0x81f   :  { %2823 = vmatpush.msrb.mxu1 %v2803_v9  ;;  %2989 = vmatpush.msra.mxu2 %v2951_v23  ;;  %v2968_v9 = vld [vmem:[%s9952_s13 + $0x178] sm:$0xff]  ;;  %v2921_v23 = vld [vmem:[%s9952_s13] sm:$0xff] }
 0x862   :  { %v2567_v1 = vpop.f32.mrf.mxu0 }
 0x863   :  { %v8036_v38 = vadd.f32 %v2567_v1, %v2370_v36 }
 0x865   :  { %v2641_v34 = vmul.f32 %v8036_v38, %v8036_v38 }
 0x86a   :  { %v2570_v24 = vpop.f32.mrf.mxu0 }
 0x86b   :  { %v8031_v55 = vadd.f32 %v2570_v24, %v2372_v19  ;;  %v2371_v19 = vadd.f32 %v7930_v45, %v2129_v28  ;;  %v2950_v28 = vld [vmem:[%s9952_s13 + $0xe8] sm:$0xff] }
 0x86d   :  { %v2643_v53 = vmul.f32 %v8031_v55, %v8031_v55  ;;  %v2616_v39 = vadd.f32 %v8031_v55, %v8036_v38 }
 0x86f   :  { %v2649_v60 = vadd.f32 %v2643_v53, %v2641_v34 }
 0x872   :  { %v2573_v42 = vpop.f32.mrf.mxu0 }
 0x873   :  { %v8038_v2 = vadd.f32 %v2573_v42, %v2374_v41  ;;  %v2375_v42 = vadd.f32 %v7934_v47, %v2135_v29 }
 0x875   :  { %v2645_v52 = vmul.f32 %v8038_v2, %v8038_v2  ;;  %v2617_v61 = vadd.f32 %v2616_v39, %v8038_v2 }
 0x877   :  { %v2650_v3 = vadd.f32 %v2649_v60, %v2645_v52 }
 0x87a   :  { %v2576_v58 = vpop.f32.mrf.mxu0 }
 0x87b   :  { %v8057_v40 = vadd.f32 %v2576_v58, %v2376_v56 }
 0x87d   :  { %v2619_v62 = vsel %vm2618_vm15, %v8057_v40, 0.0  ;;  %v2647_v63 = vmul.f32 %v8057_v40, %v8057_v40 }
 0x87e   :  { %v2620_v54 = vadd.f32 %v2619_v62, %v2617_v61 }
 0x87f   :  { %v2651_v4 = vsel %vm2618_vm15, %v2647_v63, 0.0  ;;  %v2596_v5 = vpop.f32.mrf.mxu2 }
 0x880   :  { %v2621_v7 = vrot.slane %v2620_v54, 4  ;;  %v2652_v8 = vadd.f32 %v2651_v4, %v2650_v3  ;;  %v8097_v31 = vadd.f32 %v2596_v5, %v2371_v19 }
 0x882   :  { %v2622_v10 = vadd.f32 %v2621_v7, %v2620_v54  ;;  %v2653_v11 = vrot.slane %v2652_v8, 4  ;;  %v2642_v26 = vmul.f32 %v8097_v31, %v8097_v31  ;;  %v2627_v47 = vsel %vm1402_vm7, %v8097_v31, 0.0 }
 0x884   :  { %v2623_v13 = vrot.slane %v2622_v10, 2  ;;  %v2654_v14 = vadd.f32 %v2653_v11, %v2652_v8  ;;  %v2659_v44 = vsel %vm1402_vm7, %v2642_v26, 0.0  ;;  %v2801_v11 = vld [vmem:[#allocation8] sm:$0xff]  ;;  %v2944_v26 = vld [vmem:[%s9952_s13 + $0xb8] sm:$0xff] }
 0x885   :  { %2824 = vmatpush.msrb.mxu1 %v2801_v11  ;;  %2868 = vmatpush.msrb.mxu0 %v2801_v11  ;;  %v2965_v11 = vld [vmem:[%s9952_s13 + $0x160] sm:$0xff] }
 0x886   :  { %v2624_v16 = vadd.f32 %v2623_v13, %v2622_v10  ;;  %v2655_v17 = vrot.slane %v2654_v14, 2  ;;  %v2804_v10 = vld [vmem:[#allocation8 + $0x18] sm:$0xff] }
 0x887   :  { %v2599_v1 = vpop.f32.mrf.mxu2  ;;  %2843 = vmatpush.msra.mxu3 %v2804_v10 }
 0x888   :  { %v2625_v21 = vrot.slane %v2624_v16, 1  ;;  %v2656_v22 = vadd.f32 %v2655_v17, %v2654_v14  ;;  %v8095_v51 = vadd.f32 %v2599_v1, %v2373_v30  ;;  %v2947_v30 = vld [vmem:[%s9952_s13 + $0xd0] sm:$0xff] }
 0x889   :  { %2844 = vmatpush.msra.mxu3 %v2802_v12 }
 0x88a   :  { %v2626_v24 = vadd.f32 %v2625_v21, %v2624_v16  ;;  %v2657_v27 = vrot.slane %v2656_v22, 1  ;;  %v2644_v35 = vmul.f32 %v8095_v51, %v8095_v51  ;;  %v2628_v43 = vsel %vm1402_vm7, %v8095_v51, 0.0 }
 0x88b   :  { %v2629_v25 = vadd.f32 %v2628_v43, %v2627_v47  ;;  %v2973_v43 = vld [vmem:[%s9952_s13 + $0x1a0] sm:$0xff]  ;;  %v2942_v47 = vld [vmem:[%s9952_s13 + $0xa8] sm:$0xff] }
 0x88c   :  { %2719 = vmatmul.f32.vlgmr.msrb.gmra.mxu3 %v2626_v24  ;;  %v2658_v32 = vadd.f32 %v2657_v27, %v2656_v22  ;;  %v2660_v41 = vsel %vm1402_vm7, %v2644_v35, 0.0  ;;  %v2952_v24 = vld [vmem:[%s9952_s13 + $0xf8] sm:$0xff]  ;;  %v2949_v27 = vld [vmem:[%s9952_s13 + $0xe0] sm:$0xff]  ;;  %v2975_v35 = vld [vmem:[%s9952_s13 + $0x1b0] sm:$0xff] }
 0x88d   :  { %v2661_v56 = vadd.f32 %v2660_v41, %v2659_v44  ;;  %2990 = vmatpush.msra.mxu2 %v2949_v27  ;;  %3022 = vmatpush.msrb.mxu3 %v2975_v35  ;;  %v2969_v41 = vld [vmem:[%s9952_s13 + $0x180] sm:$0xff]  ;;  %v2922_v27 = vld [vmem:[%s9952_s13 + $0x8] sm:$0xff] }
 0x88e   :  { %2763 = vmatmul.f32.vlgmr.msra.gmra.mxu0 %v2658_v32  ;;  %v2948_v32 = vld [vmem:[%s9952_s13 + $0xd8] sm:$0xff]  ;;  %v2937_v44 = vld [vmem:[%s9952_s13 + $0x80] sm:$0xff] }
 0x88f   :  { %v2602_v37 = vpop.f32.mrf.mxu2  ;;  %3047 = vmatpush.msra.mxu0 %v2952_v24  ;;  %2991 = vmatpush.msra.mxu2 %v2947_v30  ;;  %v2959_v24 = vld [vmem:[%s9952_s13 + $0x130] sm:$0xff]  ;;  %v2958_v30 = vld [vmem:[%s9952_s13 + $0x128] sm:$0xff]  ;;  %v2953_v35 = vld [vmem:[%s9952_s13 + $0x100] sm:$0xff] }
 0x890   :  { %v8099_v36 = vadd.f32 %v2602_v37, %v2375_v42  ;;  %v2945_v42 = vld [vmem:[%s9952_s13 + $0xc0] sm:$0xff]  ;;  %v2946_v37 = vld [vmem:[%s9952_s13 + $0xc8] sm:$0xff]  ;;  %3023 = vmatpush.msrb.mxu3 %v2973_v43  ;;  %v5475_v43 = vld [vmem:[%s9952_s13 + $0x2b0] sm:$0xff] }
 0x891   :  { %3048 = vmatpush.msra.mxu0 %v2950_v28  ;;  %2992 = vmatpush.msra.mxu2 %v2945_v42  ;;  %v2960_v28 = vld [vmem:[%s9952_s13 + $0x138] sm:$0xff] }
 0x892   :  { %v2646_v45 = vmul.f32 %v8099_v36, %v8099_v36  ;;  %v2630_v33 = vsel %vm1402_vm7, %v8099_v36, 0.0  ;;  %v2956_v42 = vld [vmem:[%s9952_s13 + $0x118] sm:$0xff] }
 0x893   :  { %v2631_v57 = vadd.f32 %v2630_v33, %v2629_v25  ;;  %3049 = vmatpush.msra.mxu0 %v2948_v32  ;;  %2993 = vmatpush.msra.mxu2 %v2943_v18  ;;  %v2939_v33 = vld [vmem:[%s9952_s13 + $0x90] sm:$0xff]  ;;  %v2940_v25 = vld [vmem:[%s9952_s13 + $0x98] sm:$0xff]  ;;  %v2954_v18 = vld [vmem:[%s9952_s13 + $0x108] sm:$0xff] }
 0x894   :  { %v2662_v48 = vsel %vm1402_vm7, %v2646_v45, 0.0  ;;  %v2971_v45 = vld [vmem:[%s9952_s13 + $0x190] sm:$0xff]  ;;  %v5476_v32 = vld [vmem:[%s9952_s13 + $0x2b8] sm:$0xff] }
 0x895   :  { %v2663_v39 = vadd.f32 %v2662_v48, %v2661_v56  ;;  %3050 = vmatpush.msra.mxu0 %v2946_v37  ;;  %3024 = vmatpush.msrb.mxu3 %v2971_v45  ;;  %v2938_v48 = vld [vmem:[%s9952_s13 + $0x88] sm:$0xff] }
 0x896   :  { %v5474_v37 = vld [vmem:[%s9952_s13 + $0x2a8] sm:$0xff] }
 0x897   :  { %v2605_v49 = vpop.f32.mrf.mxu2  ;;  %3051 = vmatpush.msra.mxu0 %v2944_v26  ;;  %3025 = vmatpush.msrb.mxu3 %v2969_v41  ;;  %v5472_v26 = vld [vmem:[%s9952_s13 + $0x298] sm:$0xff]  ;;  %v5470_v45 = vld [vmem:[%s9952_s13 + $0x288] sm:$0xff] }
 0x898   :  { %v8119_v53 = vadd.f32 %v2605_v49, %v2377_v46  ;;  %v2941_v46 = vld [vmem:[%s9952_s13 + $0xa0] sm:$0xff]  ;;  %v5500_v41 = vld [vmem:[%s9952_s13 + $0x378] sm:$0xff] }
 0x899   :  { %2994 = vmatpush.msra.mxu2 %v2941_v46  ;;  %3052 = vmatpush.msra.mxu0 %v2942_v47  ;;  %v5473_v46 = vld [vmem:[%s9952_s13 + $0x2a0] sm:$0xff]  ;;  %v5468_v47 = vld [vmem:[%s9952_s13 + $0x278] sm:$0xff] }
 0x89a   :  { %v2633_v50 = vsel %vm2632_vm1, %v8119_v53, 0.0  ;;  %v2648_v34 = vmul.f32 %v8119_v53, %v8119_v53 }
 0x89b   :  { %v2634_v52 = vadd.f32 %v2633_v50, %v2631_v57  ;;  %2995 = vmatpush.msra.mxu2 %v2939_v33  ;;  %3053 = vmatpush.msra.mxu0 %v2940_v25  ;;  %v2935_v57 = vld [vmem:[%s9952_s13 + $0x70] sm:$0xff]  ;;  %v2936_v50 = vld [vmem:[%s9952_s13 + $0x78] sm:$0xff]  ;;  %v5466_v25 = vld [vmem:[%s9952_s13 + $0x268] sm:$0xff] }
 0x89c   :  { %v2664_v58 = vsel %vm2632_vm1, %v2648_v34, 0.0  ;;  %v5471_v33 = vld [vmem:[%s9952_s13 + $0x290] sm:$0xff] }
 0x89d   :  { %v2635_v59 = vrot.slane %v2634_v52, 4  ;;  %v2665_v60 = vadd.f32 %v2664_v58, %v2663_v39  ;;  %2996 = vmatpush.msra.mxu2 %v2937_v44  ;;  %3054 = vmatpush.msra.mxu0 %v2938_v48  ;;  %v2933_v39 = vld [vmem:[%s9952_s13 + $0x60] sm:$0xff]  ;;  %v5464_v48 = vld [vmem:[%s9952_s13 + $0x258] sm:$0xff] }
 0x89e   :  { %v5469_v44 = vld [vmem:[%s9952_s13 + $0x280] sm:$0xff] }
 0x89f   :  { %v2636_v61 = vadd.f32 %v2635_v59, %v2634_v52  ;;  %v2666_v62 = vrot.slane %v2665_v60, 4  ;;  %v2934_v52 = vld [vmem:[%s9952_s13 + $0x68] sm:$0xff]  ;;  %2997 = vmatpush.msra.mxu2 %v2935_v57  ;;  %3055 = vmatpush.msra.mxu0 %v2936_v50  ;;  %v2931_v59 = vld [vmem:[%s9952_s13 + $0x50] sm:$0xff] }
 0x8a0   :  { %v5467_v57 = vld [vmem:[%s9952_s13 + $0x270] sm:$0xff] }
 0x8a1   :  { %v2637_v63 = vrot.slane %v2636_v61, 2  ;;  %v2667_v0 = vadd.f32 %v2666_v62, %v2665_v60  ;;  %v2932_v60 = vld [vmem:[%s9952_s13 + $0x58] sm:$0xff]  ;;  %2998 = vmatpush.msra.mxu2 %v2933_v39  ;;  %3056 = vmatpush.msra.mxu0 %v2934_v52  ;;  %v5499_v50 = vld [vmem:[%s9952_s13 + $0x370] sm:$0xff]  ;;  %v5494_v39 = vld [vmem:[%s9952_s13 + $0x348] sm:$0xff] }
 0x8a2   :  { %v5465_v52 = vld [vmem:[%s9952_s13 + $0x260] sm:$0xff] }
 0x8a3   :  { %v2638_v3 = vadd.f32 %v2637_v63, %v2636_v61  ;;  %v2668_v54 = vrot.slane %v2667_v0, 2  ;;  %2999 = vmatpush.msra.mxu2 %v2931_v59  ;;  %3057 = vmatpush.msra.mxu0 %v2932_v60  ;;  %v2976_v63 = vld [vmem:[%s9952_s13 + $0x1b8] sm:$0xff] }
 0x8a4   :  { %v5460_v59 = vld [vmem:[%s9952_s13 + $0x238] sm:$0xff] }
 0x8a5   :  { %v2639_v4 = vrot.slane %v2638_v3, 1  ;;  %v2669_v5 = vadd.f32 %v2668_v54, %v2667_v0  ;;  %v2974_v54 = vld [vmem:[%s9952_s13 + $0x1a8] sm:$0xff]  ;;  %v5492_v60 = vld [vmem:[%s9952_s13 + $0x338] sm:$0xff] }
 0x8a7   :  { %v2640_v6 = vadd.f32 %v2639_v4, %v2638_v3  ;;  %v2670_v7 = vrot.slane %v2669_v5, 1  ;;  %v2972_v4 = vld [vmem:[%s9952_s13 + $0x198] sm:$0xff] }
 0x8a9   :  { %v2671_v8 = vadd.f32 %v2670_v7, %v2669_v5  ;;  %5431 = vmatmul.msk.f32.vlgmr.msra.gmra.mxu1 %vm1402_vm7, %v2640_v6  ;;  %v2970_v5 = vld [vmem:[%s9952_s13 + $0x188] sm:$0xff]  ;;  %v2929_v6 = vld [vmem:[%s9952_s13 + $0x40] sm:$0xff]  ;;  %v2967_v7 = vld [vmem:[%s9952_s13 + $0x170] sm:$0xff] }
 0x8aa   :  { %2887 = vmatpush.msra.mxu1 %v2804_v10  ;;  %3000 = vmatpush.msra.mxu2 %v2929_v6  ;;  %v2927_v10 = vld [vmem:[%s9952_s13 + $0x30] sm:$0xff] }
 0x8ab   :  { %5432 = vmatmul.msk.f32.vlgmr.msrb.gmra.mxu2 %vm1402_vm7, %v2671_v8  ;;  %v2930_v8 = vld [vmem:[%s9952_s13 + $0x48] sm:$0xff]  ;;  %3026 = vmatpush.msrb.mxu3 %v2967_v7  ;;  %v5459_v7 = vld [vmem:[%s9952_s13 + $0x230] sm:$0xff] }
 0x8ac   :  { %2888 = vmatpush.msra.mxu1 %v2802_v12  ;;  %3058 = vmatpush.msra.mxu0 %v2930_v8  ;;  %v2928_v12 = vld [vmem:[%s9952_s13 + $0x38] sm:$0xff]  ;;  %v5491_v8 = vld [vmem:[%s9952_s13 + $0x330] sm:$0xff] }
 0x8ad   :  { %3001 = vmatpush.msra.mxu2 %v2927_v10  ;;  %3027 = vmatpush.msrb.mxu3 %v2965_v11  ;;  %v5486_v11 = vld [vmem:[%s9952_s13 + $0x308] sm:$0xff] }
 0x8ae   :  { %3059 = vmatpush.msra.mxu0 %v2928_v12 }
 0x90b   :  { %v2764_v17 = vpop.f32.mrf.mxu0 }
 0x90f   :  { %v2720_v14 = vpop.f32.mrf.mxu3 }
 0x926   :  { %v2740_v13 = vpop.f32.mrf.mxu1 }
 0x927   :  { %v2741_v15 = vadd.f32 %v2740_v13, %v2720_v14  ;;  %v2966_v13 = vld [vmem:[%s9952_s13 + $0x168] sm:$0xff]  ;;  %v2925_v14 = vld [vmem:[%s9952_s13 + $0x20] sm:$0xff] }
 0x928   :  { %3002 = vmatpush.msra.mxu2 %v2925_v14  ;;  %v5489_v14 = vld [vmem:[%s9952_s13 + $0x320] sm:$0xff] }
 0x929   :  { %v8126_v16 = vmul.f32 0.0025510204, %v2741_v15  ;;  %v2963_v15 = vld [vmem:[%s9952_s13 + $0x150] sm:$0xff] }
 0x92a   :  { %3028 = vmatpush.msrb.mxu3 %v2963_v15  ;;  %v5452_v15 = vld [vmem:[%s9952_s13 + $0x1f8] sm:$0xff] }
 0x92b   :  { %v2788_v21 = vmul.f32 %v8126_v16, %v8126_v16 }
 0x92e   :  { %v2784_v1 = vpop.f32.mrf.mxu2 }
 0x92f   :  { %v2785_v20 = vadd.f32 %v2784_v1, %v2764_v17  ;;  %v2964_v17 = vld [vmem:[%s9952_s13 + $0x158] sm:$0xff]  ;;  %v2923_v1 = vld [vmem:[%s9952_s13 + $0x10] sm:$0xff] }
 0x930   :  { %3003 = vmatpush.msra.mxu2 %v2923_v1  ;;  %v5455_v1 = vld [vmem:[%s9952_s13 + $0x210] sm:$0xff] }
 0x931   :  { %v2787_v22 = vmul.f32 0.0025510204, %v2785_v20  ;;  %v2961_v20 = vld [vmem:[%s9952_s13 + $0x140] sm:$0xff] }
 0x932   :  { %3029 = vmatpush.msrb.mxu3 %v2961_v20  ;;  %3004 = vmatpush.msra.mxu2 %v2921_v23  ;;  %v5487_v20 = vld [vmem:[%s9952_s13 + $0x310] sm:$0xff]  ;;  %v5453_v23 = vld [vmem:[%s9952_s13 + $0x200] sm:$0xff] }
 0x933   :  { %v2789_v29 = vsub.f32 %v2787_v22, %v2788_v21  ;;  %v2924_v21 = vld [vmem:[%s9952_s13 + $0x18] sm:$0xff]  ;;  %v2962_v22 = vld [vmem:[%s9952_s13 + $0x148] sm:$0xff] }
 0x934   :  { %3030 = vmatpush.msrb.mxu3 %v2959_v24  ;;  %3227 = vmatpush.msrb.mxu2 %v5476_v32  ;;  %v5485_v24 = vld [vmem:[%s9952_s13 + $0x300] sm:$0xff] }
 0x935   :  { %v2790_v19 = vadd.f32 1e-05, %v2789_v29  ;;  %v2957_v29 = vld [vmem:[%s9952_s13 + $0x120] sm:$0xff] }
 0x936   :  { %3031 = vmatpush.msrb.mxu3 %v2957_v29  ;;  %3228 = vmatpush.msrb.mxu2 %v5474_v37  ;;  %v5448_v29 = vld [vmem:[%s9952_s13 + $0x1d8] sm:$0xff] }
 0x937   :  { %5854 = vrsqrt.f32 %v2790_v19  ;;  %vm2797_vm3 = vweird.f32 %v2790_v19  ;;  %v5480_v37 = vld [vmem:[%s9952_s13 + $0x2d8] sm:$0xff] }
 0x938   :  { %3229 = vmatpush.msrb.mxu2 %v5472_v26 }
 0x93a   :  { %3230 = vmatpush.msrb.mxu2 %v5470_v45  ;;  %v5478_v45 = vld [vmem:[%s9952_s13 + $0x2c8] sm:$0xff] }
 0x93c   :  { %3231 = vmatpush.msrb.mxu2 %v5468_v47 }
 0x93d   :  { %v5855_v49 = vpop.eup %5854 }
 0x93e   :  { %v2792_v56 = vmul.f32 %v5855_v49, %v2790_v19  ;;  %vm2798_vm2 = vweird.f32 %v5855_v49  ;;  %v2955_v19 = vld [vmem:[%s9952_s13 + $0x110] sm:$0xff]  ;;  %3232 = vmatpush.msrb.mxu2 %v5466_v25 }
 0x93f   :  { %vm2799_vm5 = vmor %vm2797_vm3, %vm2798_vm2  ;;  %3032 = vmatpush.msrb.mxu3 %v2955_v19 }
 0x940   :  { %v2793_v34 = vmul.f32 %v5855_v49, %v2792_v56  ;;  %v5496_v56 = vld [vmem:[%s9952_s13 + $0x358] sm:$0xff]  ;;  %3233 = vmatpush.msrb.mxu2 %v5464_v48 }
 0x941   :  { %3033 = vmatpush.msrb.mxu3 %v2953_v35  ;;  %v5451_v35 = vld [vmem:[%s9952_s13 + $0x1f0] sm:$0xff] }
 0x942   :  { %v2794_v58 = vmul.f32 0.5, %v2793_v34  ;;  %v5462_v34 = vld [vmem:[%s9952_s13 + $0x248] sm:$0xff] }
 0x943   :  { %3234 = vmatpush.msrb.mxu2 %v5462_v34 }
 0x944   :  { %v2795_v61 = vsub.f32 1.5, %v2794_v58  ;;  %v5497_v58 = vld [vmem:[%s9952_s13 + $0x360] sm:$0xff] }
 0x945   :  { %3235 = vmatpush.msrb.mxu2 %v5460_v59 }
 0x946   :  { %v2796_v62 = vmul.f32 %v5855_v49, %v2795_v61  ;;  %v5463_v61 = vld [vmem:[%s9952_s13 + $0x250] sm:$0xff] }
 0x948   :  { %v2800_v0 = vsel %vm2799_vm5, %v5855_v49, %v2796_v62  ;;  %v5498_v49 = vld [vmem:[%s9952_s13 + $0x368] sm:$0xff]  ;;  %v5495_v62 = vld [vmem:[%s9952_s13 + $0x350] sm:$0xff] }
 0x949   :  { %5433 = vmatmul.msk.f32.vlgmr.msrb.gmra.mxu1 %vm2805_vm4, %v2800_v0  ;;  %v2849_v3 = vmul.f32 %v2800_v0, %v8126_v16  ;;  %5434 = vmatmul.msk.f32.vlgmr.msra.gmra.mxu3 %vm2805_vm4, %v2800_v0  ;;  %v2926_v16 = vld [vmem:[%s9952_s13 + $0x28] sm:$0xff] }
 0x94a   :  { %3080 = vmatpush.msrb.mxu1 %v2976_v63  ;;  %3060 = vmatpush.msra.mxu0 %v2926_v16  ;;  %v5458_v63 = vld [vmem:[%s9952_s13 + $0x228] sm:$0xff] }
 0x94b   :  { %5435 = vmatmul.msk.f32.vlgmr.msrb.gmra.mxu0 %vm2805_vm4, %v2849_v3  ;;  %3169 = vmatpush.msra.mxu3 %v5475_v43  ;;  %v5490_v0 = vld [vmem:[%s9952_s13 + $0x328] sm:$0xff] }
 0x94c   :  { %3081 = vmatpush.msrb.mxu1 %v2974_v54  ;;  %3061 = vmatpush.msra.mxu0 %v2924_v21  ;;  %v5493_v54 = vld [vmem:[%s9952_s13 + $0x340] sm:$0xff]  ;;  %v5446_v43 = vld [vmem:[%s9952_s13 + $0x1c8] sm:$0xff] }
 0x94d   :  { %3170 = vmatpush.msra.mxu3 %v5473_v46  ;;  %3236 = vmatpush.msrb.mxu2 %v5458_v63  ;;  %v5481_v46 = vld [vmem:[%s9952_s13 + $0x2e0] sm:$0xff] }
 0x94e   :  { %3082 = vmatpush.msrb.mxu1 %v2972_v4  ;;  %3062 = vmatpush.msra.mxu0 %v2922_v27  ;;  %v5456_v4 = vld [vmem:[%s9952_s13 + $0x218] sm:$0xff] }
 0x94f   :  { %3171 = vmatpush.msra.mxu3 %v5471_v33  ;;  %3237 = vmatpush.msrb.mxu2 %v5456_v4 }
 0x950   :  { %3083 = vmatpush.msrb.mxu1 %v2970_v5  ;;  %3260 = vmatpush.msrb.mxu0 %v5500_v41  ;;  %v5488_v5 = vld [vmem:[%s9952_s13 + $0x318] sm:$0xff] }
 0x951   :  { %5436 = vmatmul.msk.f32.vlgmr.msra.gmra.mxu1 %vm2805_vm4, %v2849_v3  ;;  %3172 = vmatpush.msra.mxu3 %v5469_v44  ;;  %v5461_v3 = vld [vmem:[%s9952_s13 + $0x240] sm:$0xff]  ;;  %v5479_v44 = vld [vmem:[%s9952_s13 + $0x2d0] sm:$0xff] }
 0x952   :  { %3084 = vmatpush.msrb.mxu1 %v2968_v9  ;;  %3261 = vmatpush.msrb.mxu0 %v5498_v49  ;;  %v5454_v9 = vld [vmem:[%s9952_s13 + $0x208] sm:$0xff]  ;;  %v5447_v49 = vld [vmem:[%s9952_s13 + $0x1d0] sm:$0xff] }
 0x953   :  { %3173 = vmatpush.msra.mxu3 %v5467_v57  ;;  %3238 = vmatpush.msrb.mxu2 %v5454_v9  ;;  %v5477_v57 = vld [vmem:[%s9952_s13 + $0x2c0] sm:$0xff] }
 0x954   :  { %3085 = vmatpush.msrb.mxu1 %v2966_v13  ;;  %3262 = vmatpush.msrb.mxu0 %v5496_v56  ;;  %v5457_v13 = vld [vmem:[%s9952_s13 + $0x220] sm:$0xff] }
 0x955   :  { %3174 = vmatpush.msra.mxu3 %v5465_v52  ;;  %3239 = vmatpush.msrb.mxu2 %v5452_v15 }
 0x956   :  { %3086 = vmatpush.msrb.mxu1 %v2964_v17  ;;  %3263 = vmatpush.msrb.mxu0 %v5494_v39  ;;  %v5484_v17 = vld [vmem:[%s9952_s13 + $0x2f8] sm:$0xff] }
 0x957   :  { %3175 = vmatpush.msra.mxu3 %v5463_v61 }
 0x958   :  { %3087 = vmatpush.msrb.mxu1 %v2962_v22  ;;  %3264 = vmatpush.msrb.mxu0 %v5492_v60  ;;  %v5482_v22 = vld [vmem:[%s9952_s13 + $0x2e8] sm:$0xff] }
 0x959   :  { %3176 = vmatpush.msra.mxu3 %v5461_v3 }
 0x95a   :  { %3088 = vmatpush.msrb.mxu1 %v2960_v28  ;;  %3265 = vmatpush.msrb.mxu0 %v5490_v0 }
 0x95b   :  { %3177 = vmatpush.msra.mxu3 %v5459_v7 }
 0x95c   :  { %3089 = vmatpush.msrb.mxu1 %v2958_v30  ;;  %3266 = vmatpush.msrb.mxu0 %v5488_v5 }
 0x95d   :  { %3178 = vmatpush.msra.mxu3 %v5457_v13 }
 0x95e   :  { %3090 = vmatpush.msrb.mxu1 %v2956_v42  ;;  %3267 = vmatpush.msrb.mxu0 %v5486_v11 }
 0x95f   :  { %3179 = vmatpush.msra.mxu3 %v5455_v1 }
 0x960   :  { %3091 = vmatpush.msrb.mxu1 %v2954_v18  ;;  %3268 = vmatpush.msrb.mxu0 %v5484_v17 }
 0x961   :  { %3180 = vmatpush.msra.mxu3 %v5453_v23 }
 0x962   :  { %3202 = vmatpush.msra.mxu1 %v5499_v50  ;;  %3269 = vmatpush.msrb.mxu0 %v5482_v22  ;;  %v3105_v22 = vld [vmem:[%s9953_s14] sm:$0xff] }
 0x963   :  { %3181 = vmatpush.msra.mxu3 %v5451_v35  ;;  %v5579_v35 = vld [vmem:[%s9952_s13 + $0x478] sm:$0xff] }
 0x964   :  { %3203 = vmatpush.msra.mxu1 %v5497_v58  ;;  %3270 = vmatpush.msrb.mxu0 %v5480_v37 }
 0x966   :  { %3204 = vmatpush.msra.mxu1 %v5495_v62  ;;  %3271 = vmatpush.msrb.mxu0 %v5478_v45  ;;  %v5597_v45 = vld [vmem:[%s9952_s13 + $0x508] sm:$0xff] }
 0x968   :  { %3205 = vmatpush.msra.mxu1 %v5493_v54 }
 0x96a   :  { %3206 = vmatpush.msra.mxu1 %v5491_v8 }
 0x96c   :  { %3207 = vmatpush.msra.mxu1 %v5489_v14 }
 0x96e   :  { %3208 = vmatpush.msra.mxu1 %v5487_v20 }
 0x970   :  { %3209 = vmatpush.msra.mxu1 %v5485_v24 }
 0x9c6   :  { %v2826_v6 = vpop.f32.mrf.mxu1 }
 0x9c7   :  { %v8402_v10 = vperm.slane %v2826_v6, 0 }
 0x9c8   :  { %v2870_v12 = vpop.f32.mrf.mxu0 }
 0x9c9   :  { %v2895_v16 = vmul.f32 %v8402_v10, %v8036_v38  ;;  %v8427_v21 = vperm.slane %v2870_v12, 0  ;;  %v5450_v38 = vld [vmem:[%s9952_s13 + $0x1e8] sm:$0xff]  ;;  %v2897_v32 = vmul.f32 %v8402_v10, %v8031_v55  ;;  %v5483_v55 = vld [vmem:[%s9952_s13 + $0x2f0] sm:$0xff]  ;;  %v2899_v48 = vmul.f32 %v8402_v10, %v8038_v2 }
 0x9ca   :  { %3240 = vmatpush.msrb.mxu2 %v5450_v38  ;;  %3210 = vmatpush.msra.mxu1 %v5483_v55  ;;  %v2901_v52 = vmul.f32 %v8402_v10, %v8057_v40  ;;  %v3106_v55 = vld [vmem:[%s9953_s14 + $0x8] sm:$0xff] }
 0x9cb   :  { %v2905_v27 = vsub.f32 %v2895_v16, %v8427_v21  ;;  %v2907_v47 = vsub.f32 %v2897_v32, %v8427_v21  ;;  %v2909_v2 = vsub.f32 %v2899_v48, %v8427_v21  ;;  %v5601_v32 = vld [vmem:[%s9952_s13 + $0x528] sm:$0xff] }
 0x9cc   :  { %v2846_v28 = vpop.f32.mrf.mxu3  ;;  %3241 = vmatpush.msrb.mxu2 %v5448_v29  ;;  %3211 = vmatpush.msra.mxu1 %v5481_v46  ;;  %v5575_v46 = vld [vmem:[%s9952_s13 + $0x458] sm:$0xff] }
 0x9cd   :  { %v2894_v30 = vperm.slane %v2846_v28, 0  ;;  %v8447_v19 = vmax.f32 %v2905_v27, 0.0  ;;  %v8485_v56 = vmax.f32 %v2907_v47, 0.0  ;;  %v8505_v58 = vmax.f32 %v2909_v2, 0.0  ;;  %v5603_v28 = vld [vmem:[%s9952_s13 + $0x538] sm:$0xff]  ;;  %v5569_v2 = vld [vmem:[%s9952_s13 + $0x428] sm:$0xff] }
 0x9ce   :  { %v2890_v42 = vpop.f32.mrf.mxu1  ;;  %3242 = vmatpush.msrb.mxu2 %v5446_v43  ;;  %3212 = vmatpush.msra.mxu1 %v5479_v44  ;;  %v5577_v43 = vld [vmem:[%s9952_s13 + $0x468] sm:$0xff]  ;;  %v5595_v47 = vld [vmem:[%s9952_s13 + $0x4f8] sm:$0xff] }
 0x9cf   :  { %v2896_v18 = vmul.f32 %v2894_v30, %v8097_v31  ;;  %v2904_v26 = vperm.slane %v2890_v42, 0  ;;  %3005 = vmatmul.f32.vlgmr.msra.gmra.mxu2 %v8447_v19  ;;  %3063 = vmatmul.f32.vlgmr.msra.gmra.mxu0 %v8447_v19  ;;  %v5449_v31 = vld [vmem:[%s9952_s13 + $0x1e0] sm:$0xff]  ;;  %v2898_v33 = vmul.f32 %v2894_v30, %v8095_v51  ;;  %v2900_v34 = vmul.f32 %v2894_v30, %v8099_v36 }
 0x9d0   :  { %3182 = vmatpush.msra.mxu3 %v5449_v31  ;;  %v5445_v51 = vld [vmem:[%s9952_s13 + $0x1c0] sm:$0xff]  ;;  %3213 = vmatpush.msra.mxu1 %v5477_v57  ;;  %v2911_v36 = vsub.f32 %v2901_v52, %v8427_v21  ;;  %v2902_v60 = vmul.f32 %v2894_v30, %v8119_v53  ;;  %v3107_v57 = vld [vmem:[%s9953_s14 + $0x10] sm:$0xff]  ;;  %v5567_v52 = vld [vmem:[%s9952_s13 + $0x418] sm:$0xff] }
 0x9d1   :  { %v2906_v41 = vsub.f32 %v2896_v18, %v2904_v26  ;;  %v2908_v50 = vsub.f32 %v2898_v33, %v2904_v26  ;;  %v2910_v59 = vsub.f32 %v2900_v34, %v2904_v26  ;;  %v5599_v18 = vld [vmem:[%s9952_s13 + $0x518] sm:$0xff]  ;;  %v5573_v33 = vld [vmem:[%s9952_s13 + $0x448] sm:$0xff] }
 0x9d2   :  { %3183 = vmatpush.msra.mxu3 %v5447_v49  ;;  %v8517_v40 = vmax.f32 %v2911_v36, 0.0  ;;  %v2912_v62 = vsub.f32 %v2902_v60, %v2904_v26  ;;  %v5591_v49 = vld [vmem:[%s9952_s13 + $0x4d8] sm:$0xff]  ;;  %v5589_v34 = vld [vmem:[%s9952_s13 + $0x4c8] sm:$0xff] }
 0x9d3   :  { %v8475_v25 = vmax.f32 %v2906_v41, 0.0  ;;  %v8501_v39 = vmax.f32 %v2908_v50, 0.0  ;;  %v8515_v61 = vmax.f32 %v2910_v59, 0.0  ;;  %v5593_v41 = vld [vmem:[%s9952_s13 + $0x4e8] sm:$0xff]  ;;  %v5587_v59 = vld [vmem:[%s9952_s13 + $0x4b8] sm:$0xff] }
 0x9d4   :  { %3184 = vmatpush.msra.mxu3 %v5445_v51  ;;  %v8525_v63 = vmax.f32 %v2912_v62, 0.0  ;;  %v5571_v51 = vld [vmem:[%s9952_s13 + $0x438] sm:$0xff]  ;;  %v5585_v36 = vld [vmem:[%s9952_s13 + $0x4a8] sm:$0xff] }
 0x9d5   :  { %5437 = vmatmul.msk.f32.vlgmr.msrb.gmra.mxu3 %vm1402_vm7, %v8475_v25  ;;  %5441 = vmatmul.msk.f32.vlgmr.msrb.gmra.mxu1 %vm1402_vm7, %v8475_v25  ;;  %v5565_v62 = vld [vmem:[%s9952_s13 + $0x408] sm:$0xff] }
 0x9d7   :  { %3008 = vmatmul.f32.gmra.mxu2 %v8485_v56  ;;  %3066 = vmatmul.f32.gmra.mxu0 %v8485_v56 }
 0x9dd   :  { %5438 = vmatmul.msk.f32.gmra.mxu3 %vm1402_vm7, %v8501_v39  ;;  %5442 = vmatmul.msk.f32.gmra.mxu1 %vm1402_vm7, %v8501_v39 }
 0x9df   :  { %3011 = vmatmul.f32.gmra.mxu2 %v8505_v58  ;;  %3069 = vmatmul.f32.gmra.mxu0 %v8505_v58 }
 0x9e5   :  { %5439 = vmatmul.msk.f32.gmra.mxu3 %vm1402_vm7, %v8515_v61  ;;  %5443 = vmatmul.msk.f32.gmra.mxu1 %vm1402_vm7, %v8515_v61 }
 0x9e7   :  { %3014 = vmatmul.f32.gmra.mxu2 %v8517_v40  ;;  %3072 = vmatmul.f32.gmra.mxu0 %v8517_v40 }
 0x9ed   :  { %5440 = vmatmul.msk.f32.gmra.mxu3 %vm1402_vm7, %v8525_v63  ;;  %5444 = vmatmul.msk.f32.gmra.mxu1 %vm1402_vm7, %v8525_v63 }
 0x9ef   :  { %3243 = vmatmul.f32.vlgmr.msrb.gmra.mxu2 %v8447_v19  ;;  %5505 = vmatmul.msk.f32.vlgmr.msrb.gmra.mxu0 %vm1402_vm7, %v8475_v25 }
 0x9f5   :  { %3185 = vmatmul.f32.vlgmr.msra.gmra.mxu3 %v8447_v19  ;;  %5501 = vmatmul.msk.f32.vlgmr.msra.gmra.mxu1 %vm1402_vm7, %v8475_v25 }
 0x9f7   :  { %3246 = vmatmul.f32.gmra.mxu2 %v8485_v56  ;;  %5506 = vmatmul.msk.f32.gmra.mxu0 %vm1402_vm7, %v8501_v39 }
 0x9fd   :  { %3188 = vmatmul.f32.gmra.mxu3 %v8485_v56  ;;  %5502 = vmatmul.msk.f32.gmra.mxu1 %vm1402_vm7, %v8501_v39 }
 0x9ff   :  { %3249 = vmatmul.f32.gmra.mxu2 %v8505_v58  ;;  %5507 = vmatmul.msk.f32.gmra.mxu0 %vm1402_vm7, %v8515_v61 }
 0xa05   :  { %3191 = vmatmul.f32.gmra.mxu3 %v8505_v58  ;;  %5503 = vmatmul.msk.f32.gmra.mxu1 %vm1402_vm7, %v8515_v61 }
 0xa07   :  { %3252 = vmatmul.f32.gmra.mxu2 %v8517_v40  ;;  %5508 = vmatmul.msk.f32.gmra.mxu0 %vm1402_vm7, %v8525_v63 }
 0xa0d   :  { %3194 = vmatmul.f32.gmra.mxu3 %v8517_v40  ;;  %5504 = vmatmul.msk.f32.gmra.mxu1 %vm1402_vm7, %v8525_v63 }
 0xa4c   :  { %v3064_v53 = vpop.f32.mrf.mxu0 }
 0xa52   :  { %v3006_v0 = vpop.f32.mrf.mxu2  ;;  %v3093_v3 = vpop.f32.mrf.mxu1 }
 0xa53   :  { %v3094_v21 = vadd.f32 %v3093_v3, %v3064_v53  ;;  %v5583_v53 = vld [vmem:[%s9952_s13 + $0x498] sm:$0xff] }
 0xa54   :  { %v3067_v54 = vpop.f32.mrf.mxu0  ;;  %v5563_v3 = vld [vmem:[%s9952_s13 + $0x3f8] sm:$0xff] }
 0xa58   :  { %v3035_v4 = vpop.f32.mrf.mxu3 }
 0xa59   :  { %v3036_v42 = vadd.f32 %v3035_v4, %v3006_v0 }
 0xa5a   :  { %v3009_v5 = vpop.f32.mrf.mxu2  ;;  %v3096_v6 = vpop.f32.mrf.mxu1 }
 0xa5b   :  { %v3097_v1 = vadd.f32 %v3096_v6, %v3067_v54  ;;  %v3108_v54 = vld [vmem:[%s9953_s14 + $0x18] sm:$0xff]  ;;  %v5561_v6 = vld [vmem:[%s9952_s13 + $0x3e8] sm:$0xff] }
 0xa5c   :  { %v3070_v7 = vpop.f32.mrf.mxu0 }
 0xa60   :  { %v3038_v8 = vpop.f32.mrf.mxu3 }
 0xa61   :  { %v3039_v29 = vadd.f32 %v3038_v8, %v3009_v5 }
 0xa62   :  { %v3012_v9 = vpop.f32.mrf.mxu2  ;;  %v3099_v10 = vpop.f32.mrf.mxu1 }
 0xa63   :  { %v3100_v17 = vadd.f32 %v3099_v10, %v3070_v7  ;;  %v5581_v7 = vld [vmem:[%s9952_s13 + $0x488] sm:$0xff] }
 0xa64   :  { %v3073_v11 = vpop.f32.mrf.mxu0 }
 0xa68   :  { %v3041_v12 = vpop.f32.mrf.mxu3 }
 0xa69   :  { %v3042_v27 = vadd.f32 %v3041_v12, %v3012_v9  ;;  %v5559_v9 = vld [vmem:[%s9952_s13 + $0x3d8] sm:$0xff] }
 0xa6a   :  { %v3015_v13 = vpop.f32.mrf.mxu2  ;;  %v3102_v14 = vpop.f32.mrf.mxu1 }
 0xa6b   :  { %v3103_v15 = vadd.f32 %v3102_v14, %v3073_v11  ;;  %v5557_v11 = vld [vmem:[%s9952_s13 + $0x3c8] sm:$0xff] }
 0xa6c   :  { %v8555_v16 = vpop.f32.mrf.mxu0 }
 0xa6d   :  { %5540 = vmatpush.msk.msra.mxu0 %vm2618_vm15, %v3103_v15 }
 0xa6f   :  { %3475 = vmatpush.msra.mxu0 %v3100_v17 }
 0xa70   :  { %v3044_v20 = vpop.f32.mrf.mxu3 }
 0xa71   :  { %v3045_v38 = vadd.f32 %v3044_v20, %v3015_v13  ;;  %3476 = vmatpush.msra.mxu0 %v3097_v1  ;;  %v5509_v1 = vld [vmem:[%s9953_s14 + $0x38] sm:$0xff]  ;;  %v3109_v20 = vld [vmem:[%s9953_s14 + $0x20] sm:$0xff] }
 0xa72   :  { %v8561_v23 = vpop.f32.mrf.mxu1  ;;  %v8563_v24 = vpop.f32.mrf.mxu2 }
 0xa73   :  { %5532 = vmatpush.msk.msra.mxu2 %vm2618_vm15, %v3045_v38  ;;  %3477 = vmatpush.msra.mxu0 %v3094_v21  ;;  %v3274_v15 = vadd.f32 %v8555_v16, %v8563_v24  ;;  %v5555_v21 = vld [vmem:[%s9952_s13 + $0x3b8] sm:$0xff]  ;;  %v5553_v16 = vld [vmem:[%s9952_s13 + $0x3a8] sm:$0xff] }
 0xa74   :  { %5541 = vmatmul.msk.f32.vlgmr.msra.gmra.mxu0 %vm3293_vm6, %v3105_v22  ;;  %v8570_v30 = vpop.f32.mrf.mxu0 }
 0xa75   :  { %3437 = vmatpush.msra.mxu2 %v3042_v27  ;;  %3648 = vmatpush.msrb.mxu0 %v5603_v28  ;;  %v5689_v27 = vld [vmem:[%s9952_s13 + $0x6f0] sm:$0xff]  ;;  %v5600_v28 = vld [vmem:[%s9952_s13 + $0x520] sm:$0xff] }
 0xa77   :  { %3438 = vmatpush.msra.mxu2 %v3039_v29  ;;  %3649 = vmatpush.msrb.mxu0 %v5601_v32  ;;  %v5551_v29 = vld [vmem:[%s9952_s13 + $0x398] sm:$0xff] }
 0xa78   :  { %v8575_v37 = vpop.f32.mrf.mxu3 }
 0xa79   :  { %3439 = vmatpush.msra.mxu2 %v3036_v42  ;;  %3650 = vmatpush.msrb.mxu0 %v5599_v18  ;;  %v3216_v32 = vadd.f32 %v8561_v23, %v8575_v37  ;;  %v5549_v42 = vld [vmem:[%s9952_s13 + $0x388] sm:$0xff]  ;;  %v5510_v18 = vld [vmem:[%s9953_s14 + $0x40] sm:$0xff]  ;;  %v5665_v37 = vld [vmem:[%s9952_s13 + $0x630] sm:$0xff] }
 0xa7a   :  { %v3247_v26 = vpop.f32.mrf.mxu2  ;;  %5533 = vmatmul.msk.f32.vlgmr.msra.gmra.mxu2 %vm3293_vm6, %v3105_v22  ;;  %v8593_v31 = vpop.f32.mrf.mxu1  ;;  %v5602_v22 = vld [vmem:[%s9952_s13 + $0x530] sm:$0xff]  ;;  %v3110_v23 = vld [vmem:[%s9953_s14 + $0x28] sm:$0xff] }
 0xa7b   :  { %3615 = vmatpush.msrb.mxu2 %v5579_v35  ;;  %3651 = vmatpush.msrb.mxu0 %v5597_v45  ;;  %v3277_v12 = vadd.f32 %v8570_v30, %v3247_v26  ;;  %v5687_v30 = vld [vmem:[%s9952_s13 + $0x6e0] sm:$0xff]  ;;  %v5578_v35 = vld [vmem:[%s9952_s13 + $0x470] sm:$0xff] }
 0xa7c   :  { %5542 = vmatmul.msk.f32.gmra.mxu0 %vm3293_vm6, %v3106_v55  ;;  %v3279_v44 = vpop.f32.mrf.mxu0  ;;  %v5598_v26 = vld [vmem:[%s9952_s13 + $0x510] sm:$0xff]  ;;  %v5663_v45 = vld [vmem:[%s9952_s13 + $0x620] sm:$0xff] }
 0xa7d   :  { %3616 = vmatpush.msrb.mxu2 %v5577_v43  ;;  %3652 = vmatpush.msrb.mxu0 %v5595_v47  ;;  %v5685_v43 = vld [vmem:[%s9952_s13 + $0x6d0] sm:$0xff]  ;;  %v5683_v47 = vld [vmem:[%s9952_s13 + $0x6c0] sm:$0xff] }
 0xa7f   :  { %3617 = vmatpush.msrb.mxu2 %v5575_v46  ;;  %3653 = vmatpush.msrb.mxu0 %v5593_v41  ;;  %v5596_v46 = vld [vmem:[%s9952_s13 + $0x500] sm:$0xff]  ;;  %v5661_v41 = vld [vmem:[%s9952_s13 + $0x610] sm:$0xff] }
 0xa80   :  { %v3189_v48 = vpop.f32.mrf.mxu3 }
 0xa81   :  { %3618 = vmatpush.msrb.mxu2 %v5573_v33  ;;  %3654 = vmatpush.msrb.mxu0 %v5591_v49  ;;  %v3219_v24 = vadd.f32 %v8593_v31, %v3189_v48  ;;  %v5574_v31 = vld [vmem:[%s9952_s13 + $0x450] sm:$0xff]  ;;  %v5572_v33 = vld [vmem:[%s9952_s13 + $0x440] sm:$0xff]  ;;  %v5511_v48 = vld [vmem:[%s9953_s14 + $0x48] sm:$0xff] }
 0xa82   :  { %v3250_v50 = vpop.f32.mrf.mxu2  ;;  %5534 = vmatmul.msk.f32.gmra.mxu2 %vm3293_vm6, %v3106_v55  ;;  %v3221_v60 = vpop.f32.mrf.mxu1  ;;  %v5576_v55 = vld [vmem:[%s9952_s13 + $0x460] sm:$0xff] }
 0xa83   :  { %3619 = vmatpush.msrb.mxu2 %v5571_v51  ;;  %3655 = vmatpush.msrb.mxu0 %v5589_v34  ;;  %v3280_v10 = vadd.f32 %v3279_v44, %v3250_v50  ;;  %v5659_v49 = vld [vmem:[%s9952_s13 + $0x600] sm:$0xff]  ;;  %v5570_v44 = vld [vmem:[%s9952_s13 + $0x430] sm:$0xff] }
 0xa84   :  { %5543 = vmatmul.msk.f32.gmra.mxu0 %vm3293_vm6, %v3107_v57  ;;  %v3282_v4 = vpop.f32.mrf.mxu0  ;;  %v3111_v51 = vld [vmem:[%s9953_s14 + $0x30] sm:$0xff]  ;;  %v5568_v50 = vld [vmem:[%s9952_s13 + $0x420] sm:$0xff] }
 0xa85   :  { %3620 = vmatpush.msrb.mxu2 %v5569_v2  ;;  %3656 = vmatpush.msrb.mxu0 %v5587_v59  ;;  %v5594_v2 = vld [vmem:[%s9952_s13 + $0x4f0] sm:$0xff] }
 0xa86   :  { %v5681_v34 = vld [vmem:[%s9952_s13 + $0x6b0] sm:$0xff] }
 0xa87   :  { %3621 = vmatpush.msrb.mxu2 %v5567_v52  ;;  %3657 = vmatpush.msrb.mxu0 %v5585_v36  ;;  %v5655_v52 = vld [vmem:[%s9952_s13 + $0x5e0] sm:$0xff]  ;;  %v5566_v59 = vld [vmem:[%s9952_s13 + $0x410] sm:$0xff] }
 0xa88   :  { %v3192_v0 = vpop.f32.mrf.mxu3  ;;  %v5592_v36 = vld [vmem:[%s9952_s13 + $0x4e0] sm:$0xff] }
 0xa89   :  { %3622 = vmatpush.msrb.mxu2 %v5565_v62  ;;  %3658 = vmatpush.msrb.mxu0 %v5583_v53  ;;  %v3222_v38 = vadd.f32 %v3221_v60, %v3192_v0  ;;  %v5679_v60 = vld [vmem:[%s9952_s13 + $0x6a0] sm:$0xff]  ;;  %v5653_v62 = vld [vmem:[%s9952_s13 + $0x5d0] sm:$0xff] }
 0xa8a   :  { %v3253_v5 = vpop.f32.mrf.mxu2  ;;  %5535 = vmatmul.msk.f32.gmra.mxu2 %vm3293_vm6, %v3107_v57  ;;  %v3224_v13 = vpop.f32.mrf.mxu1  ;;  %v5657_v57 = vld [vmem:[%s9952_s13 + $0x5f0] sm:$0xff]  ;;  %v5564_v53 = vld [vmem:[%s9952_s13 + $0x400] sm:$0xff] }
 0xa8b   :  { %v3283_v8 = vadd.f32 %v3282_v4, %v3253_v5  ;;  %3623 = vmatpush.msrb.mxu2 %v5563_v3  ;;  %3659 = vmatpush.msrb.mxu0 %v5581_v7  ;;  %v5590_v0 = vld [vmem:[%s9952_s13 + $0x4d0] sm:$0xff]  ;;  %v5651_v3 = vld [vmem:[%s9952_s13 + $0x5c0] sm:$0xff] }
 0xa8c   :  { %5544 = vmatmul.msk.f32.gmra.mxu0 %vm3293_vm6, %v3108_v54  ;;  %v5677_v4 = vld [vmem:[%s9952_s13 + $0x690] sm:$0xff] }
 0xa8d   :  { %5524 = vmatpush.msk.msrb.mxu1 %vm2618_vm15, %v3283_v8  ;;  %3624 = vmatpush.msrb.mxu2 %v5561_v6  ;;  %v5562_v5 = vld [vmem:[%s9952_s13 + $0x3f0] sm:$0xff]  ;;  %v5588_v6 = vld [vmem:[%s9952_s13 + $0x4c0] sm:$0xff] }
 0xa8e   :  { %3888 = vmatpush.msra.mxu0 %v5689_v27  ;;  %v5649_v7 = vld [vmem:[%s9952_s13 + $0x5b0] sm:$0xff]  ;;  %v5675_v8 = vld [vmem:[%s9952_s13 + $0x680] sm:$0xff] }
 0xa8f   :  { %3372 = vmatpush.msrb.mxu1 %v3280_v10  ;;  %3625 = vmatpush.msrb.mxu2 %v5559_v9  ;;  %v5560_v9 = vld [vmem:[%s9952_s13 + $0x3e0] sm:$0xff]  ;;  %v5586_v10 = vld [vmem:[%s9952_s13 + $0x4b0] sm:$0xff] }
 0xa90   :  { %v3195_v14 = vpop.f32.mrf.mxu3  ;;  %3889 = vmatpush.msra.mxu0 %v5687_v30  ;;  %v5641_v27 = vld [vmem:[%s9952_s13 + $0x570] sm:$0xff]  ;;  %v5639_v30 = vld [vmem:[%s9952_s13 + $0x560] sm:$0xff] }
 0xa91   :  { %v3225_v17 = vadd.f32 %v3224_v13, %v3195_v14  ;;  %3373 = vmatpush.msrb.mxu1 %v3277_v12  ;;  %3626 = vmatpush.msrb.mxu2 %v5557_v11  ;;  %v5647_v11 = vld [vmem:[%s9952_s13 + $0x5a0] sm:$0xff]  ;;  %v5673_v12 = vld [vmem:[%s9952_s13 + $0x670] sm:$0xff] }
 0xa92   :  { %5536 = vmatmul.msk.f32.gmra.mxu2 %vm3293_vm6, %v3108_v54  ;;  %3890 = vmatpush.msra.mxu0 %v5685_v43  ;;  %v5512_v54 = vld [vmem:[%s9953_s14 + $0x50] sm:$0xff]  ;;  %v5584_v14 = vld [vmem:[%s9952_s13 + $0x4a0] sm:$0xff]  ;;  %v5664_v43 = vld [vmem:[%s9952_s13 + $0x628] sm:$0xff] }
 0xa93   :  { %5516 = vmatpush.msk.msrb.mxu3 %vm2618_vm15, %v3225_v17  ;;  %3374 = vmatpush.msrb.mxu1 %v3274_v15  ;;  %v5558_v13 = vld [vmem:[%s9952_s13 + $0x3d0] sm:$0xff]  ;;  %v5513_v17 = vld [vmem:[%s9953_s14 + $0x58] sm:$0xff] }
 0xa94   :  { %5525 = vmatmul.msk.f32.vlgmr.msrb.gmra.mxu1 %vm3293_vm6, %v5509_v1  ;;  %5545 = vmatmul.msk.f32.gmra.mxu0 %vm3293_vm6, %v3109_v20  ;;  %v5645_v15 = vld [vmem:[%s9952_s13 + $0x590] sm:$0xff] }
 0xa95   :  { %3334 = vmatpush.msrb.mxu3 %v3222_v38  ;;  %3627 = vmatpush.msrb.mxu2 %v5555_v21  ;;  %v5582_v21 = vld [vmem:[%s9952_s13 + $0x490] sm:$0xff]  ;;  %v5643_v38 = vld [vmem:[%s9952_s13 + $0x580] sm:$0xff] }
 0xa96   :  { %3590 = vmatpush.msra.mxu1 %v5602_v22  ;;  %3891 = vmatpush.msra.mxu0 %v5683_v47  ;;  %v5554_v22 = vld [vmem:[%s9952_s13 + $0x3b0] sm:$0xff]  ;;  %v5684_v47 = vld [vmem:[%s9952_s13 + $0x6c8] sm:$0xff] }
 0xa97   :  { %3335 = vmatpush.msrb.mxu3 %v3219_v24  ;;  %3628 = vmatpush.msrb.mxu2 %v5553_v16  ;;  %v5669_v16 = vld [vmem:[%s9952_s13 + $0x650] sm:$0xff]  ;;  %v5580_v24 = vld [vmem:[%s9952_s13 + $0x480] sm:$0xff] }
 0xa98   :  { %3591 = vmatpush.msra.mxu1 %v5600_v28  ;;  %3892 = vmatpush.msra.mxu0 %v5681_v34  ;;  %v5667_v28 = vld [vmem:[%s9952_s13 + $0x640] sm:$0xff]  ;;  %v5674_v34 = vld [vmem:[%s9952_s13 + $0x678] sm:$0xff] }
 0xa99   :  { %3336 = vmatpush.msrb.mxu3 %v3216_v32  ;;  %3629 = vmatpush.msrb.mxu2 %v5551_v29  ;;  %v5552_v29 = vld [vmem:[%s9952_s13 + $0x3a0] sm:$0xff]  ;;  %v5550_v32 = vld [vmem:[%s9952_s13 + $0x390] sm:$0xff] }
 0xa9a   :  { %5517 = vmatmul.msk.f32.vlgmr.msrb.gmra.mxu3 %vm3293_vm6, %v5509_v1  ;;  %5537 = vmatmul.msk.f32.gmra.mxu2 %vm3293_vm6, %v3109_v20  ;;  %v5671_v1 = vld [vmem:[%s9952_s13 + $0x660] sm:$0xff] }
 0xa9b   :  { %3630 = vmatpush.msrb.mxu2 %v5549_v42  ;;  %3557 = vmatpush.msra.mxu3 %v5578_v35  ;;  %v5556_v20 = vld [vmem:[%s9952_s13 + $0x3c0] sm:$0xff]  ;;  %v5637_v35 = vld [vmem:[%s9952_s13 + $0x550] sm:$0xff] }
 0xa9c   :  { %5526 = vmatmul.msk.f32.gmra.mxu1 %vm3293_vm6, %v5510_v18  ;;  %5546 = vmatmul.msk.f32.gmra.mxu0 %vm3293_vm6, %v3110_v23  ;;  %v5514_v42 = vld [vmem:[%s9953_s14 + $0x60] sm:$0xff] }
 0xa9d   :  { %3855 = vmatpush.msra.mxu2 %v5665_v37  ;;  %3558 = vmatpush.msra.mxu3 %v5576_v55  ;;  %v5635_v37 = vld [vmem:[%s9952_s13 + $0x540] sm:$0xff]  ;;  %v5666_v55 = vld [vmem:[%s9952_s13 + $0x638] sm:$0xff] }
 0xa9e   :  { %3592 = vmatpush.msra.mxu1 %v5598_v26  ;;  %3893 = vmatpush.msra.mxu0 %v5679_v60  ;;  %v5688_v26 = vld [vmem:[%s9952_s13 + $0x6e8] sm:$0xff]  ;;  %v5670_v60 = vld [vmem:[%s9952_s13 + $0x658] sm:$0xff] }
 0xa9f   :  { %3856 = vmatpush.msra.mxu2 %v5663_v45  ;;  %3559 = vmatpush.msra.mxu3 %v5574_v31  ;;  %v5686_v45 = vld [vmem:[%s9952_s13 + $0x6d8] sm:$0xff]  ;;  %v5515_v31 = vld [vmem:[%s9953_s14 + $0x68] sm:$0xff] }
 0xaa0   :  { %3593 = vmatpush.msra.mxu1 %v5596_v46  ;;  %3894 = vmatpush.msra.mxu0 %v5677_v4  ;;  %v5662_v46 = vld [vmem:[%s9952_s13 + $0x618] sm:$0xff] }
 0xaa1   :  { %3857 = vmatpush.msra.mxu2 %v5661_v41  ;;  %3560 = vmatpush.msra.mxu3 %v5572_v33  ;;  %v5660_v41 = vld [vmem:[%s9952_s13 + $0x608] sm:$0xff]  ;;  %v5682_v33 = vld [vmem:[%s9952_s13 + $0x6b8] sm:$0xff] }
 0xaa2   :  { %5518 = vmatmul.msk.f32.gmra.mxu3 %vm3293_vm6, %v5510_v18  ;;  %5538 = vmatmul.msk.f32.gmra.mxu2 %vm3293_vm6, %v3110_v23  ;;  %v5548_v18 = vld [vmem:[%s9952_s13 + $0x380] sm:$0xff]  ;;  %v5690_v23 = vld [vmem:[%s9952_s13 + $0x6f8] sm:$0xff] }
 0xaa3   :  { %3858 = vmatpush.msra.mxu2 %v5659_v49  ;;  %3561 = vmatpush.msra.mxu3 %v5570_v44  ;;  %v5658_v49 = vld [vmem:[%s9952_s13 + $0x5f8] sm:$0xff]  ;;  %v5680_v44 = vld [vmem:[%s9952_s13 + $0x6a8] sm:$0xff] }
 0xaa4   :  { %5527 = vmatmul.msk.f32.gmra.mxu1 %vm3293_vm6, %v5511_v48  ;;  %5547 = vmatmul.msk.f32.gmra.mxu0 %vm3293_vm6, %v3111_v51  ;;  %v5638_v4 = vld [vmem:[%s9952_s13 + $0x558] sm:$0xff] }
 0xaa5   :  { %3859 = vmatpush.msra.mxu2 %v5657_v57  ;;  %3562 = vmatpush.msra.mxu3 %v5568_v50  ;;  %v5654_v57 = vld [vmem:[%s9952_s13 + $0x5d8] sm:$0xff]  ;;  %v5676_v50 = vld [vmem:[%s9952_s13 + $0x688] sm:$0xff] }
 0xaa6   :  { %3594 = vmatpush.msra.mxu1 %v5594_v2  ;;  %3895 = vmatpush.msra.mxu0 %v5675_v8  ;;  %v5652_v2 = vld [vmem:[%s9952_s13 + $0x5c8] sm:$0xff] }
 0xaa7   :  { %3860 = vmatpush.msra.mxu2 %v5655_v52  ;;  %3563 = vmatpush.msra.mxu3 %v5566_v59  ;;  %v5650_v52 = vld [vmem:[%s9952_s13 + $0x5b8] sm:$0xff]  ;;  %v5672_v59 = vld [vmem:[%s9952_s13 + $0x668] sm:$0xff] }
 0xaa8   :  { %3595 = vmatpush.msra.mxu1 %v5592_v36  ;;  %3896 = vmatpush.msra.mxu0 %v5673_v12  ;;  %v5648_v36 = vld [vmem:[%s9952_s13 + $0x5a8] sm:$0xff] }
 0xaa9   :  { %3861 = vmatpush.msra.mxu2 %v5653_v62  ;;  %3564 = vmatpush.msra.mxu3 %v5564_v53  ;;  %v5646_v62 = vld [vmem:[%s9952_s13 + $0x598] sm:$0xff]  ;;  %v5668_v53 = vld [vmem:[%s9952_s13 + $0x648] sm:$0xff] }
 0xaaa   :  { %5519 = vmatmul.msk.f32.gmra.mxu3 %vm3293_vm6, %v5511_v48  ;;  %5539 = vmatmul.msk.f32.gmra.mxu2 %vm3293_vm6, %v3111_v51  ;;  %v5656_v48 = vld [vmem:[%s9952_s13 + $0x5e8] sm:$0xff]  ;;  %v5678_v51 = vld [vmem:[%s9952_s13 + $0x698] sm:$0xff] }
 0xaab   :  { %3596 = vmatpush.msra.mxu1 %v5590_v0  ;;  %3862 = vmatpush.msra.mxu2 %v5651_v3  ;;  %v5644_v0 = vld [vmem:[%s9952_s13 + $0x588] sm:$0xff]  ;;  %v5642_v3 = vld [vmem:[%s9952_s13 + $0x578] sm:$0xff] }
 0xaac   :  { %5528 = vmatmul.msk.f32.gmra.mxu1 %vm3293_vm6, %v5512_v54  ;;  %5608 = vmatmul.msk.f32.vlgmr.msrb.gmra.mxu0 %vm1402_vm7, %v8475_v25 }
 0xaad   :  { %3565 = vmatpush.msra.mxu3 %v5562_v5  ;;  %3597 = vmatpush.msra.mxu1 %v5588_v6  ;;  %v5636_v5 = vld [vmem:[%s9952_s13 + $0x548] sm:$0xff] }
 0xaae   :  { %3863 = vmatpush.msra.mxu2 %v5649_v7  ;;  %3897 = vmatpush.msra.mxu0 %v5671_v1 }
 0xaaf   :  { %3566 = vmatpush.msra.mxu3 %v5560_v9  ;;  %3598 = vmatpush.msra.mxu1 %v5586_v10 }
 0xab0   :  { %3864 = vmatpush.msra.mxu2 %v5647_v11  ;;  %3898 = vmatpush.msra.mxu0 %v5669_v16 }
 0xab1   :  { %3567 = vmatpush.msra.mxu3 %v5558_v13  ;;  %3599 = vmatpush.msra.mxu1 %v5584_v14 }
 0xab2   :  { %5520 = vmatmul.msk.f32.gmra.mxu3 %vm3293_vm6, %v5512_v54  ;;  %3631 = vmatmul.f32.vlgmr.msrb.gmra.mxu2 %v8447_v19  ;;  %v5640_v54 = vld [vmem:[%s9952_s13 + $0x568] sm:$0xff] }
 0xab3   :  { %3865 = vmatpush.msra.mxu2 %v5645_v15  ;;  %3568 = vmatpush.msra.mxu3 %v5556_v20 }
 0xab4   :  { %5529 = vmatmul.msk.f32.gmra.mxu1 %vm3293_vm6, %v5513_v17  ;;  %5609 = vmatmul.msk.f32.gmra.mxu0 %vm1402_vm7, %v8501_v39 }
 0xab5   :  { %3600 = vmatpush.msra.mxu1 %v5582_v21  ;;  %3866 = vmatpush.msra.mxu2 %v5643_v38 }
 0xab6   :  { %3569 = vmatpush.msra.mxu3 %v5554_v22  ;;  %3899 = vmatpush.msra.mxu0 %v5667_v28 }
 0xab7   :  { %3601 = vmatpush.msra.mxu1 %v5580_v24  ;;  %3867 = vmatpush.msra.mxu2 %v5641_v27 }
 0xab8   :  { %3570 = vmatpush.msra.mxu3 %v5552_v29  ;;  %3946 = vmatpush.msrb.mxu0 %v5690_v23 }
 0xab9   :  { %3868 = vmatpush.msra.mxu2 %v5639_v30 }
 0xaba   :  { %5521 = vmatmul.msk.f32.gmra.mxu3 %vm3293_vm6, %v5513_v17  ;;  %3634 = vmatmul.f32.gmra.mxu2 %v8485_v56 }
 0xabb   :  { %3571 = vmatpush.msra.mxu3 %v5550_v32  ;;  %3869 = vmatpush.msra.mxu2 %v5637_v35 }
 0xabc   :  { %5530 = vmatmul.msk.f32.gmra.mxu1 %vm3293_vm6, %v5514_v42  ;;  %5610 = vmatmul.msk.f32.gmra.mxu0 %vm1402_vm7, %v8515_v61 }
 0xabd   :  { %3572 = vmatpush.msra.mxu3 %v5548_v18  ;;  %3870 = vmatpush.msra.mxu2 %v5635_v37 }
 0xabe   :  { %3947 = vmatpush.msrb.mxu0 %v5688_v26 }
 0xabf   :  { %3913 = vmatpush.msrb.mxu2 %v5666_v55 }
 0xac0   :  { %3948 = vmatpush.msrb.mxu0 %v5686_v45 }
 0xac1   :  { %3914 = vmatpush.msrb.mxu2 %v5664_v43 }
 0xac2   :  { %5522 = vmatmul.msk.f32.gmra.mxu3 %vm3293_vm6, %v5514_v42  ;;  %3637 = vmatmul.f32.gmra.mxu2 %v8505_v58 }
 0xac3   :  { %3915 = vmatpush.msrb.mxu2 %v5662_v46  ;;  %3949 = vmatpush.msrb.mxu0 %v5684_v47 }
 0xac4   :  { %5531 = vmatmul.msk.f32.gmra.mxu1 %vm3293_vm6, %v5515_v31  ;;  %5611 = vmatmul.msk.f32.gmra.mxu0 %vm1402_vm7, %v8525_v63 }
 0xac5   :  { %3916 = vmatpush.msrb.mxu2 %v5660_v41  ;;  %3950 = vmatpush.msrb.mxu0 %v5682_v33  ;;  %v5612_v41 = vld [vmem:[%s9953_s14 + $0x70] sm:$0xff] }
 0xac7   :  { %3917 = vmatpush.msrb.mxu2 %v5658_v49  ;;  %3951 = vmatpush.msrb.mxu0 %v5680_v44 }
 0xac9   :  { %3918 = vmatpush.msrb.mxu2 %v5656_v48  ;;  %3952 = vmatpush.msrb.mxu0 %v5678_v51  ;;  %v5613_v51 = vld [vmem:[%s9953_s14 + $0x78] sm:$0xff] }
 0xaca   :  { %5523 = vmatmul.msk.f32.gmra.mxu3 %vm3293_vm6, %v5515_v31  ;;  %3640 = vmatmul.f32.gmra.mxu2 %v8517_v40 }
 0xacb   :  { %3919 = vmatpush.msrb.mxu2 %v5654_v57  ;;  %3953 = vmatpush.msrb.mxu0 %v5676_v50 }
 0xacc   :  { %5604 = vmatmul.msk.f32.vlgmr.msra.gmra.mxu1 %vm1402_vm7, %v8475_v25  ;;  %5691 = vmatmul.msk.f32.vlgmr.msra.gmra.mxu0 %vm1402_vm7, %v8475_v25 }
 0xacd   :  { %3920 = vmatpush.msrb.mxu2 %v5652_v2  ;;  %3954 = vmatpush.msrb.mxu0 %v5674_v34 }
 0xacf   :  { %3921 = vmatpush.msrb.mxu2 %v5650_v52  ;;  %3955 = vmatpush.msrb.mxu0 %v5672_v59  ;;  %v5614_v52 = vld [vmem:[%s9953_s14 + $0x80] sm:$0xff] }
 0xad1   :  { %3922 = vmatpush.msrb.mxu2 %v5648_v36  ;;  %3956 = vmatpush.msrb.mxu0 %v5670_v60 }
 0xad2   :  { %3573 = vmatmul.f32.vlgmr.msra.gmra.mxu3 %v8447_v19  ;;  %3871 = vmatmul.f32.vlgmr.msra.gmra.mxu2 %v8447_v19 }
 0xad3   :  { %3923 = vmatpush.msrb.mxu2 %v5646_v62  ;;  %3957 = vmatpush.msrb.mxu0 %v5668_v53  ;;  %v5615_v62 = vld [vmem:[%s9953_s14 + $0x88] sm:$0xff] }
 0xad4   :  { %5605 = vmatmul.msk.f32.gmra.mxu1 %vm1402_vm7, %v8501_v39  ;;  %5692 = vmatmul.msk.f32.gmra.mxu0 %vm1402_vm7, %v8501_v39 }
 0xad5   :  { %3924 = vmatpush.msrb.mxu2 %v5644_v0 }
 0xad7   :  { %3925 = vmatpush.msrb.mxu2 %v5642_v3 }
 0xad9   :  { %3926 = vmatpush.msrb.mxu2 %v5640_v54 }
 0xada   :  { %3576 = vmatmul.f32.gmra.mxu3 %v8485_v56  ;;  %3874 = vmatmul.f32.gmra.mxu2 %v8485_v56 }
 0xadb   :  { %3927 = vmatpush.msrb.mxu2 %v5638_v4 }
 0xadc   :  { %5606 = vmatmul.msk.f32.gmra.mxu1 %vm1402_vm7, %v8515_v61  ;;  %5693 = vmatmul.msk.f32.gmra.mxu0 %vm1402_vm7, %v8515_v61 }
 0xadd   :  { %3928 = vmatpush.msrb.mxu2 %v5636_v5 }
 0xae2   :  { %3579 = vmatmul.f32.gmra.mxu3 %v8505_v58  ;;  %3877 = vmatmul.f32.gmra.mxu2 %v8505_v58 }
 0xae4   :  { %5607 = vmatmul.msk.f32.gmra.mxu1 %vm1402_vm7, %v8525_v63  ;;  %5694 = vmatmul.msk.f32.gmra.mxu0 %vm1402_vm7, %v8525_v63 }
 0xaea   :  { %3582 = vmatmul.f32.gmra.mxu3 %v8517_v40  ;;  %3880 = vmatmul.f32.gmra.mxu2 %v8517_v40 }
 0xaec   :  { %5695 = vmatmul.msk.f32.vlgmr.msrb.gmra.mxu0 %vm1402_vm7, %v8475_v25 }
 0xaf1   :  { %v9021_v6 = vpop.f32.mrf.mxu0 }
 0xaf2   :  { %3929 = vmatmul.f32.vlgmr.msrb.gmra.mxu2 %v8447_v19 }
 0xaf4   :  { %5696 = vmatmul.msk.f32.gmra.mxu0 %vm1402_vm7, %v8501_v39 }
 0xaf9   :  { %v9026_v7 = vpop.f32.mrf.mxu0 }
 0xafa   :  { %3932 = vmatmul.f32.gmra.mxu2 %v8485_v56 }
 0xafc   :  { %5697 = vmatmul.msk.f32.gmra.mxu0 %vm1402_vm7, %v8515_v61 }
 0xafd   :  { %v9031_v8 = vpop.f32.mrf.mxu2 }
 0xb01   :  { %v9033_v9 = vpop.f32.mrf.mxu0 }
 0xb02   :  { %3935 = vmatmul.f32.gmra.mxu2 %v8505_v58 }
 0xb04   :  { %5698 = vmatmul.msk.f32.gmra.mxu0 %vm1402_vm7, %v8525_v63 }
 0xb05   :  { %v9038_v19 = vpop.f32.mrf.mxu2 }
 0xb09   :  { %v9040_v25 = vpop.f32.mrf.mxu0 }
 0xb0a   :  { %3938 = vmatmul.f32.gmra.mxu2 %v8517_v40 }
 0xb0d   :  { %v9043_v39 = vpop.f32.mrf.mxu2 }
 0xb11   :  { %v9045_v56 = vpop.f32.mrf.mxu1  ;;  %v9047_v61 = vpop.f32.mrf.mxu0 }
 0xb15   :  { %v9049_v10 = vpop.f32.mrf.mxu2 }
 0xb19   :  { %v9051_v11 = vpop.f32.mrf.mxu1  ;;  %v9053_v58 = vpop.f32.mrf.mxu0 }
 0xb1d   :  { %v9055_v12 = vpop.f32.mrf.mxu3  ;;  %v9057_v63 = vpop.f32.mrf.mxu2 }
 0xb21   :  { %v9059_v13 = vpop.f32.mrf.mxu1  ;;  %v9061_v14 = vpop.f32.mrf.mxu0 }
 0xb25   :  { %v9063_v40 = vpop.f32.mrf.mxu3  ;;  %v9065_v15 = vpop.f32.mrf.mxu2 }
 0xb26   :  { %9970 = vst [vmem:[#allocation16_spill] sm:$0xff] %v9065_v15 }
 0xb29   :  { %v9067_v17 = vpop.f32.mrf.mxu1  ;;  %v3661_v1 = vpop.f32.mrf.mxu0 }
 0xb2d   :  { %v9069_v20 = vpop.f32.mrf.mxu3  ;;  %v9071_v21 = vpop.f32.mrf.mxu2 }
 0xb2e   :  { %9971 = vst [vmem:[#allocation17_spill] sm:$0xff] %v9071_v21  ;;  %v9278_v21 = vld [vmem:[%s9954_s15 + $0x40] sm:$0xff] }
 0xb31   :  { %v9073_v38 = vpop.f32.mrf.mxu1  ;;  %v3664_v16 = vpop.f32.mrf.mxu0 }
 0xb35   :  { %v9075_v22 = vpop.f32.mrf.mxu3  ;;  %v3632_v24 = vpop.f32.mrf.mxu2 }
 0xb36   :  { %v3662_v47 = vadd.f32 %v3661_v1, %v3632_v24 }
 0xb39   :  { %v3667_v27 = vpop.f32.mrf.mxu0  ;;  %v9077_v28 = vpop.f32.mrf.mxu1 }
 0xb3d   :  { %v9079_v29 = vpop.f32.mrf.mxu3  ;;  %v3635_v30 = vpop.f32.mrf.mxu2 }
 0xb3e   :  { %v3665_v46 = vadd.f32 %v3664_v16, %v3635_v30  ;;  %v5616_v16 = vld [vmem:[%s9953_s14 + $0x90] sm:$0xff] }
 0xb41   :  { %v3670_v32 = vpop.f32.mrf.mxu0  ;;  %v9081_v42 = vpop.f32.mrf.mxu1 }
 0xb45   :  { %v9083_v35 = vpop.f32.mrf.mxu3  ;;  %v3638_v18 = vpop.f32.mrf.mxu2 }
 0xb46   :  { %v3668_v45 = vadd.f32 %v3667_v27, %v3638_v18 }
 0xb49   :  { %v3901_v23 = vpop.f32.mrf.mxu0  ;;  %v3603_v26 = vpop.f32.mrf.mxu1 }
 0xb4d   :  { %v9085_v37 = vpop.f32.mrf.mxu3  ;;  %v3641_v55 = vpop.f32.mrf.mxu2 }
 0xb4e   :  { %9972 = vst [vmem:[#allocation18_spill] sm:$0xff] %v9085_v37  ;;  %v3671_v43 = vadd.f32 %v3670_v32, %v3641_v55 }
 0xb50   :  { %5627 = vmatpush.msk.msrb.mxu1 %vm2618_vm15, %v3671_v43 }
 0xb51   :  { %v3904_v31 = vpop.f32.mrf.mxu0  ;;  %v3606_v44 = vpop.f32.mrf.mxu1 }
 0xb52   :  { %3759 = vmatpush.msrb.mxu1 %v3668_v45 }
 0xb54   :  { %3760 = vmatpush.msrb.mxu1 %v3665_v46  ;;  %v5618_v46 = vld [vmem:[%s9953_s14 + $0xa0] sm:$0xff] }
 0xb55   :  { %v3574_v33 = vpop.f32.mrf.mxu3  ;;  %v3872_v49 = vpop.f32.mrf.mxu2 }
 0xb56   :  { %3761 = vmatpush.msrb.mxu1 %v3662_v47  ;;  %v3604_v1 = vadd.f32 %v3603_v26, %v3574_v33  ;;  %v3902_v55 = vadd.f32 %v3901_v23, %v3872_v49  ;;  %v5617_v26 = vld [vmem:[%s9953_s14 + $0x98] sm:$0xff] }
 0xb57   :  { %5628 = vmatmul.msk.f32.vlgmr.msrb.gmra.mxu1 %vm3293_vm6, %v5612_v41 }
 0xb59   :  { %v3907_v48 = vpop.f32.mrf.mxu0  ;;  %v3609_v2 = vpop.f32.mrf.mxu1 }
 0xb5d   :  { %v3577_v57 = vpop.f32.mrf.mxu3  ;;  %v3875_v50 = vpop.f32.mrf.mxu2 }
 0xb5e   :  { %v3607_v5 = vadd.f32 %v3606_v44, %v3577_v57  ;;  %v3905_v18 = vadd.f32 %v3904_v31, %v3875_v50  ;;  %v5701_v57 = vld [vmem:[%s9953_s14 + $0xb8] sm:$0xff]  ;;  %v5702_v50 = vld [vmem:[%s9953_s14 + $0xc0] sm:$0xff] }
 0xb5f   :  { %5629 = vmatmul.msk.f32.gmra.mxu1 %vm3293_vm6, %v5613_v51 }
 0xb61   :  { %v3910_v34 = vpop.f32.mrf.mxu0  ;;  %v3612_v60 = vpop.f32.mrf.mxu1 }
 0xb65   :  { %v3580_v59 = vpop.f32.mrf.mxu3  ;;  %v3878_v36 = vpop.f32.mrf.mxu2 }
 0xb66   :  { %v3610_v4 = vadd.f32 %v3609_v2, %v3580_v59  ;;  %v3908_v30 = vadd.f32 %v3907_v48, %v3878_v36  ;;  %v5699_v48 = vld [vmem:[%s9953_s14 + $0xa8] sm:$0xff] }
 0xb67   :  { %5630 = vmatmul.msk.f32.gmra.mxu1 %vm3293_vm6, %v5614_v52  ;;  %v5703_v2 = vld [vmem:[%s9953_s14 + $0xc8] sm:$0xff] }
 0xb69   :  { %v3959_v54 = vpop.f32.mrf.mxu0 }
 0xb6d   :  { %v3583_v53 = vpop.f32.mrf.mxu3  ;;  %v3881_v0 = vpop.f32.mrf.mxu2 }
 0xb6e   :  { %v3613_v3 = vadd.f32 %v3612_v60, %v3583_v53  ;;  %v3911_v27 = vadd.f32 %v3910_v34, %v3881_v0  ;;  %v5704_v34 = vld [vmem:[%s9953_s14 + $0xd0] sm:$0xff] }
 0xb6f   :  { %5631 = vmatmul.msk.f32.gmra.mxu1 %vm3293_vm6, %v5615_v62 }
 0xb70   :  { %5619 = vmatpush.msk.msrb.mxu3 %vm2618_vm15, %v3613_v3 }
 0xb71   :  { %v3962_v32 = vpop.f32.mrf.mxu0 }
 0xb72   :  { %3721 = vmatpush.msrb.mxu3 %v3610_v4 }
 0xb74   :  { %3722 = vmatpush.msrb.mxu3 %v3607_v5 }
 0xb75   :  { %v3930_v24 = vpop.f32.mrf.mxu2 }
 0xb76   :  { %3723 = vmatpush.msrb.mxu3 %v3604_v1  ;;  %v3960_v44 = vadd.f32 %v3959_v54, %v3930_v24  ;;  %v4199_v1 = vld [vmem:[%s9954_s15 + $0xd8] sm:$0xff]  ;;  %v4198_v24 = vld [vmem:[%s9954_s15 + $0xd0] sm:$0xff] }
 0xb77   :  { %5620 = vmatmul.msk.f32.vlgmr.msrb.gmra.mxu3 %vm3293_vm6, %v5612_v41  ;;  %5632 = vmatmul.msk.f32.gmra.mxu1 %vm3293_vm6, %v5616_v16 }
 0xb78   :  { %5706 = vmatpush.msk.msra.mxu3 %vm2618_vm15, %v3911_v27  ;;  %4227 = vmatpush.msra.mxu0 %v4199_v1 }
 0xb79   :  { %v3965_v45 = vpop.f32.mrf.mxu0 }
 0xb7a   :  { %4019 = vmatpush.msra.mxu3 %v3908_v30  ;;  %4228 = vmatpush.msra.mxu0 %v4198_v24  ;;  %v4197_v30 = vld [vmem:[%s9954_s15 + $0xc8] sm:$0xff] }
 0xb7c   :  { %4020 = vmatpush.msra.mxu3 %v3905_v18  ;;  %4229 = vmatpush.msra.mxu0 %v4197_v30  ;;  %v4195_v18 = vld [vmem:[%s9954_s15 + $0xb8] sm:$0xff] }
 0xb7d   :  { %v3933_v43 = vpop.f32.mrf.mxu2 }
 0xb7e   :  { %4021 = vmatpush.msra.mxu3 %v3902_v55  ;;  %v3963_v49 = vadd.f32 %v3962_v32, %v3933_v43  ;;  %v4196_v32 = vld [vmem:[%s9954_s15 + $0xc0] sm:$0xff] }
 0xb7f   :  { %5621 = vmatmul.msk.f32.gmra.mxu3 %vm3293_vm6, %v5613_v51  ;;  %5633 = vmatmul.msk.f32.gmra.mxu1 %vm3293_vm6, %v5617_v26  ;;  %v5700_v51 = vld [vmem:[%s9953_s14 + $0xb0] sm:$0xff] }
 0xb80   :  { %4230 = vmatpush.msra.mxu0 %v4196_v32 }
 0xb81   :  { %v3968_v23 = vpop.f32.mrf.mxu0 }
 0xb82   :  { %4231 = vmatpush.msra.mxu0 %v4195_v18 }
 0xb85   :  { %v3936_v47 = vpop.f32.mrf.mxu2 }
 0xb86   :  { %v3966_v33 = vadd.f32 %v3965_v45, %v3936_v47  ;;  %v4193_v45 = vld [vmem:[%s9954_s15 + $0xa8] sm:$0xff]  ;;  %v4192_v47 = vld [vmem:[%s9954_s15 + $0xa0] sm:$0xff] }
 0xb87   :  { %5622 = vmatmul.msk.f32.gmra.mxu3 %vm3293_vm6, %v5614_v52  ;;  %5634 = vmatmul.msk.f32.gmra.mxu1 %vm3293_vm6, %v5618_v46  ;;  %v5705_v52 = vld [vmem:[%s9953_s14 + $0xd8] sm:$0xff] }
 0xb8d   :  { %v3939_v31 = vpop.f32.mrf.mxu2 }
 0xb8e   :  { %v3969_v41 = vadd.f32 %v3968_v23, %v3939_v31  ;;  %v9220_v23 = vld [vmem:[%s9954_s15 + $0x70] sm:$0xff]  ;;  %v4191_v31 = vld [vmem:[%s9954_s15 + $0x98] sm:$0xff] }
 0xb8f   :  { %5623 = vmatmul.msk.f32.gmra.mxu3 %vm3293_vm6, %v5615_v62 }
 0xb90   :  { %5714 = vmatpush.msk.msra.mxu1 %vm2618_vm15, %v3969_v41  ;;  %v9229_v41 = vld [vmem:[%s9954_s15 + $0x68] sm:$0xff] }
 0xb92   :  { %4057 = vmatpush.msra.mxu1 %v3966_v33 }
 0xb94   :  { %4058 = vmatpush.msra.mxu1 %v3963_v49  ;;  %v4190_v49 = vld [vmem:[%s9954_s15 + $0x90] sm:$0xff] }
 0xb96   :  { %4059 = vmatpush.msra.mxu1 %v3960_v44  ;;  %v9240_v44 = vld [vmem:[%s9954_s15 + $0x60] sm:$0xff] }
 0xb97   :  { %5624 = vmatmul.msk.f32.gmra.mxu3 %vm3293_vm6, %v5616_v16  ;;  %5715 = vmatmul.msk.f32.vlgmr.msra.gmra.mxu1 %vm3293_vm6, %v5699_v48 }
 0xb9f   :  { %5625 = vmatmul.msk.f32.gmra.mxu3 %vm3293_vm6, %v5617_v26  ;;  %5716 = vmatmul.msk.f32.gmra.mxu1 %vm3293_vm6, %v5700_v51  ;;  %v4194_v26 = vld [vmem:[%s9954_s15 + $0xb0] sm:$0xff] }
 0xba0   :  { %4232 = vmatpush.msra.mxu0 %v4194_v26 }
 0xba2   :  { %4233 = vmatpush.msra.mxu0 %v4193_v45 }
 0xba4   :  { %4234 = vmatpush.msra.mxu0 %v4192_v47 }
 0xba6   :  { %4235 = vmatpush.msra.mxu0 %v4191_v31 }
 0xba7   :  { %5626 = vmatmul.msk.f32.gmra.mxu3 %vm3293_vm6, %v5618_v46  ;;  %5717 = vmatmul.msk.f32.gmra.mxu1 %vm3293_vm6, %v5701_v57  ;;  %v9211_v46 = vld [vmem:[%s9954_s15 + $0x78] sm:$0xff] }
 0xba8   :  { %4203 = vmatpush.msra.mxu2 %v9211_v46  ;;  %4236 = vmatpush.msra.mxu0 %v4190_v49 }
 0xbaa   :  { %4204 = vmatpush.msra.mxu2 %v9220_v23 }
 0xbac   :  { %4205 = vmatpush.msra.mxu2 %v9229_v41 }
 0xbae   :  { %4206 = vmatpush.msra.mxu2 %v9240_v44 }
 0xbaf   :  { %5707 = vmatmul.msk.f32.vlgmr.msra.gmra.mxu3 %vm3293_vm6, %v5699_v48  ;;  %5718 = vmatmul.msk.f32.gmra.mxu1 %vm3293_vm6, %v5702_v50 }
 0xbb7   :  { %5708 = vmatmul.msk.f32.gmra.mxu3 %vm3293_vm6, %v5700_v51  ;;  %5719 = vmatmul.msk.f32.gmra.mxu1 %vm3293_vm6, %v5703_v2  ;;  %v9246_v51 = vld [vmem:[%s9954_s15 + $0x88] sm:$0xff] }
 0xbb8   :  { %4237 = vmatpush.msra.mxu0 %v9246_v51 }
 0xbbf   :  { %5709 = vmatmul.msk.f32.gmra.mxu3 %vm3293_vm6, %v5701_v57  ;;  %5720 = vmatmul.msk.f32.gmra.mxu1 %vm3293_vm6, %v5704_v34  ;;  %v9252_v57 = vld [vmem:[%s9954_s15 + $0x58] sm:$0xff] }
 0xbc0   :  { %4207 = vmatpush.msra.mxu2 %v9252_v57 }
 0xbc7   :  { %5710 = vmatmul.msk.f32.gmra.mxu3 %vm3293_vm6, %v5702_v50  ;;  %5721 = vmatmul.msk.f32.gmra.mxu1 %vm3293_vm6, %v5705_v52  ;;  %v9258_v50 = vld [vmem:[%s9954_s15 + $0x80] sm:$0xff] }
 0xbc8   :  { %4238 = vmatpush.msra.mxu0 %v9258_v50 }
 0xbca   :  { %4271 = vmatpush.msrb.mxu0 %v4199_v1  ;;  %v9284_v1 = vld [vmem:[%s9954_s15 + $0x38] sm:$0xff] }
 0xbcc   :  { %4272 = vmatpush.msrb.mxu0 %v4198_v24  ;;  %v9290_v24 = vld [vmem:[%s9954_s15 + $0x30] sm:$0xff] }
 0xbce   :  { %4273 = vmatpush.msrb.mxu0 %v4197_v30  ;;  %v9298_v30 = vld [vmem:[%s9954_s15 + $0x28] sm:$0xff] }
 0xbcf   :  { %5711 = vmatmul.msk.f32.gmra.mxu3 %vm3293_vm6, %v5703_v2  ;;  %v9264_v2 = vld [vmem:[%s9954_s15 + $0x50] sm:$0xff] }
 0xbd0   :  { %4208 = vmatpush.msra.mxu2 %v9264_v2  ;;  %4274 = vmatpush.msrb.mxu0 %v4196_v32  ;;  %v3480_v32 = vadd.f32 %v9021_v6, %v9045_v56 }
 0xbd2   :  { %4275 = vmatpush.msrb.mxu0 %v4195_v18 }
 0xbd4   :  { %v9159_v59 = vpop.f32.mrf.mxu1  ;;  %4276 = vmatpush.msrb.mxu0 %v4194_v26  ;;  %v3489_v26 = vadd.f32 %v9040_v25, %v9067_v17 }
 0xbd5   :  { %v3785_v15 = vadd.f32 %v9159_v59, %v3480_v32  ;;  %v9337_v59 = vld [vmem:[%s9954_s15 + $0x10] sm:$0xff] }
 0xbd6   :  { %4277 = vmatpush.msrb.mxu0 %v4193_v45 }
 0xbd7   :  { %5712 = vmatmul.msk.f32.gmra.mxu3 %vm3293_vm6, %v5704_v34  ;;  %v9270_v34 = vld [vmem:[%s9954_s15 + $0x48] sm:$0xff] }
 0xbd8   :  { %4209 = vmatpush.msra.mxu2 %v9270_v34  ;;  %4278 = vmatpush.msrb.mxu0 %v4192_v47 }
 0xbda   :  { %4210 = vmatpush.msra.mxu2 %v9278_v21  ;;  %4279 = vmatpush.msrb.mxu0 %v4191_v31 }
 0xbdc   :  { %v9162_v36 = vpop.f32.mrf.mxu1  ;;  %4211 = vmatpush.msra.mxu2 %v9284_v1  ;;  %4280 = vmatpush.msrb.mxu0 %v4190_v49 }
 0xbde   :  { %4212 = vmatpush.msra.mxu2 %v9290_v24  ;;  %4281 = vmatpush.msrb.mxu0 %v9246_v51 }
 0xbdf   :  { %5713 = vmatmul.msk.f32.gmra.mxu3 %vm3293_vm6, %v5705_v52 }
 0xbe0   :  { %4213 = vmatpush.msra.mxu2 %v9298_v30  ;;  %4282 = vmatpush.msrb.mxu0 %v9258_v50 }
 0xbe4   :  { %v9165_v60 = vpop.f32.mrf.mxu1 }
 0xbec   :  { %v9167_v62 = vpop.f32.mrf.mxu1 }
 0xbf4   :  { %v9169_v53 = vpop.f32.mrf.mxu1 }
 0xbfa   :  { %v9171_v0 = vpop.f32.mrf.mxu3 }
 0xbfc   :  { %v9173_v3 = vpop.f32.mrf.mxu1 }
 0xc02   :  { %v9175_v54 = vpop.f32.mrf.mxu3 }
 0xc04   :  { %v9179_v5 = vpop.f32.mrf.mxu1 }
 0xc0a   :  { %v9177_v4 = vpop.f32.mrf.mxu3 }
 0xc12   :  { %v9184_v16 = vpop.f32.mrf.mxu3 }
 0xc14   :  { %v9189_v27 = vpop.f32.mrf.mxu1 }
 0xc15   :  { %v9330_v25 = vadd.f32 %v9189_v27, %v3785_v15 }
 0xc1a   :  { %v9200_v55 = vpop.f32.mrf.mxu3 }
 0xc1b   :  { %9973 = vst [vmem:[#allocation19_spill] sm:$0xff] %v9200_v55  ;;  %v3486_v55 = vadd.f32 %v9033_v9, %v9059_v13  ;;  %v9323_v9 = vld [vmem:[%s9954_s15 + $0x18] sm:$0xff]  ;;  %v3492_v13 = vadd.f32 %v9047_v61, %v9073_v38  ;;  %v3495_v61 = vadd.f32 %v9053_v58, %v9077_v28  ;;  %v4128_v58 = vmul.f32 %v9330_v25, %v9330_v25 }
 0xc1c   :  { %v4064_v43 = vpop.f32.mrf.mxu1 }
 0xc1d   :  { %v3789_v6 = vadd.f32 %v9165_v60, %v3486_v55  ;;  %v9342_v60 = vld [vmem:[%s9954_s15 + $0x8] sm:$0xff]  ;;  %v3793_v15 = vadd.f32 %v9169_v53, %v3492_v13  ;;  %v3795_v27 = vadd.f32 %v9173_v3, %v3495_v61  ;;  %v4108_v3 = vsel %vm1402_vm7, %v9330_v25, 0.0 }
 0xc1e   :  { %v4153_v32 = vsel %vm1402_vm7, %v4128_v58, 0.0 }
 0xc22   :  { %v9231_v33 = vpop.f32.mrf.mxu3 }
 0xc23   :  { %9974 = vst [vmem:[#allocation20_spill] sm:$0xff] %v9231_v33 }
 0xc24   :  { %v4067_v48 = vpop.f32.mrf.mxu1 }
 0xc25   :  { %v9332_v17 = vadd.f32 %v4067_v48, %v3789_v6 }
 0xc27   :  { %v4132_v53 = vmul.f32 %v9332_v17, %v9332_v17  ;;  %v4111_v31 = vsel %vm1402_vm7, %v9332_v17, 0.0 }
 0xc2a   :  { %v9272_v52 = vpop.f32.mrf.mxu3 }
 0xc2b   :  { %9975 = vst [vmem:[#allocation21_spill] sm:$0xff] %v9272_v52  ;;  %v3483_v52 = vadd.f32 %v9026_v7, %v9051_v11  ;;  %v9311_v7 = vld [vmem:[%s9954_s15 + $0x20] sm:$0xff] }
 0xc2c   :  { %v4070_v37 = vpop.f32.mrf.mxu1  ;;  %4214 = vmatpush.msra.mxu2 %v9311_v7 }
 0xc2d   :  { %v3787_v18 = vadd.f32 %v9162_v36, %v3483_v52  ;;  %v3791_v36 = vadd.f32 %v9167_v62, %v3489_v26 }
 0xc2e   :  { %4215 = vmatpush.msra.mxu2 %v9323_v9 }
 0xc2f   :  { %v9318_v56 = vadd.f32 %v4064_v43, %v3787_v18  ;;  %v9350_v62 = vadd.f32 %v4070_v37, %v3791_v36  ;;  %v9367_v37 = vld [vmem:[%s9954_s15] sm:$0xff]  ;;  %v4156_v18 = vsel %vm1402_vm7, %v4132_v53, 0.0 }
 0xc30   :  { %4216 = vmatpush.msra.mxu2 %v9337_v59 }
 0xc31   :  { %v4130_v38 = vmul.f32 %v9318_v56, %v9318_v56  ;;  %v4109_v28 = vsel %vm1402_vm7, %v9318_v56, 0.0  ;;  %v4134_v49 = vmul.f32 %v9350_v62, %v9350_v62  ;;  %v4113_v51 = vsel %vm1402_vm7, %v9350_v62, 0.0 }
 0xc32   :  { %v9300_v33 = vpop.f32.mrf.mxu3  ;;  %4217 = vmatpush.msra.mxu2 %v9342_v60  ;;  %v4110_v52 = vadd.f32 %v4109_v28, %v4108_v3 }
 0xc33   :  { %v4154_v47 = vsel %vm1402_vm7, %v4130_v38, 0.0  ;;  %v4158_v13 = vsel %vm1402_vm7, %v4134_v49, 0.0 }
 0xc34   :  { %v4073_v11 = vpop.f32.mrf.mxu1  ;;  %4218 = vmatpush.msra.mxu2 %v9367_v37  ;;  %v4155_v26 = vadd.f32 %v4154_v47, %v4153_v32  ;;  %v4112_v6 = vadd.f32 %v4111_v31, %v4110_v52 }
 0xc35   :  { %v9362_v43 = vadd.f32 %v4073_v11, %v3793_v15 }
 0xc36   :  { %4247 = vmatpush.msrb.mxu2 %v9211_v46  ;;  %v3498_v46 = vadd.f32 %v9061_v14, %v9081_v42  ;;  %v4157_v61 = vadd.f32 %v4156_v18, %v4155_v26  ;;  %v4114_v15 = vadd.f32 %v4113_v51, %v4112_v6 }
 0xc37   :  { %v4136_v11 = vmul.f32 %v9362_v43, %v9362_v43  ;;  %v4115_v50 = vsel %vm1402_vm7, %v9362_v43, 0.0 }
 0xc38   :  { %4248 = vmatpush.msrb.mxu2 %v9220_v23  ;;  %v3797_v23 = vadd.f32 %v9179_v5, %v3498_v46  ;;  %v4159_v42 = vadd.f32 %v4158_v13, %v4157_v61  ;;  %v4116_v58 = vadd.f32 %v4115_v50, %v4114_v15  ;;  %v3445_v46 = vadd.f32 %v9038_v19, %v9063_v40 }
 0xc39   :  { %v3448_v50 = vadd.f32 %v9043_v39, %v9069_v20  ;;  %v3451_v61 = vadd.f32 %v9049_v10, %v9075_v22  ;;  %v9976_v20 = vld [vmem:[#allocation16_spill] sm:$0xff] }
 0xc3a   :  { %v9353_v55 = vpop.f32.mrf.mxu3  ;;  %4249 = vmatpush.msrb.mxu2 %v9229_v41  ;;  %v3457_v22 = vadd.f32 %v9976_v20, %v9083_v35 }
 0xc3b   :  { %v3788_v40 = vadd.f32 %v9177_v4, %v3448_v50  ;;  %v3790_v39 = vadd.f32 %v9184_v16, %v3451_v61 }
 0xc3c   :  { %v4076_v45 = vpop.f32.mrf.mxu1  ;;  %4250 = vmatpush.msrb.mxu2 %v9240_v44 }
 0xc3d   :  { %v9378_v48 = vadd.f32 %v4076_v45, %v3795_v27  ;;  %v4160_v27 = vsel %vm1402_vm7, %v4136_v11, 0.0 }
 0xc3e   :  { %4251 = vmatpush.msrb.mxu2 %v9252_v57  ;;  %v4161_v41 = vadd.f32 %v4160_v27, %v4159_v42  ;;  %v9980_v42 = vld [vmem:[#allocation17_spill] sm:$0xff] }
 0xc3f   :  { %v4138_v36 = vmul.f32 %v9378_v48, %v9378_v48  ;;  %v4117_v14 = vsel %vm1402_vm7, %v9378_v48, 0.0 }
 0xc40   :  { %v4118_v45 = vadd.f32 %v4117_v14, %v4116_v58  ;;  %4252 = vmatpush.msrb.mxu2 %v9264_v2  ;;  %v9979_v14 = vld [vmem:[#allocation18_spill] sm:$0xff] }
 0xc41   :  { %v4162_v53 = vsel %vm1402_vm7, %v4138_v36, 0.0  ;;  %v3460_v58 = vadd.f32 %v9980_v42, %v9979_v14  ;;  %v4448_v14 = vld [vmem:[%s9956_s17 + $0x60] sm:$0xff] }
 0xc42   :  { %v4029_v38 = vpop.f32.mrf.mxu3  ;;  %v4163_v44 = vadd.f32 %v4162_v53, %v4161_v41  ;;  %4253 = vmatpush.msrb.mxu2 %v9270_v34  ;;  %v9981_v41 = vld [vmem:[#allocation21_spill] sm:$0xff]  ;;  %v5747_v42 = vld [vmem:[%s9956_s17 + $0x140] sm:$0xff] }
 0xc43   :  { %v9440_v10 = vadd.f32 %v4029_v38, %v3788_v40  ;;  %v4301_v40 = vld [vmem:[#allocation10] sm:$0xff] }
 0xc44   :  { %v4079_v28 = vpop.f32.mrf.mxu1  ;;  %4254 = vmatpush.msrb.mxu2 %v9278_v21  ;;  %v3442_v21 = vadd.f32 %v9031_v8, %v9055_v12  ;;  %v3454_v8 = vadd.f32 %v9057_v63, %v9079_v29  ;;  %v9978_v63 = vld [vmem:[#allocation20_spill] sm:$0xff]  ;;  %4365 = vmatpush.msrb.mxu3 %v4301_v40 }
 0xc45   :  { %v9403_v3 = vadd.f32 %v4079_v28, %v3797_v23  ;;  %v3794_v29 = vadd.f32 %v9978_v63, %v3457_v22  ;;  %v4131_v35 = vmul.f32 %v9440_v10, %v9440_v10 }
 0xc46   :  { %4255 = vmatpush.msrb.mxu2 %v9284_v1  ;;  %v3786_v1 = vadd.f32 %v9175_v54, %v3445_v46  ;;  %v3784_v19 = vadd.f32 %v9171_v0, %v3442_v21  ;;  %v9977_v54 = vld [vmem:[#allocation19_spill] sm:$0xff] }
 0xc47   :  { %v4119_v5 = vsel %vm1402_vm7, %v9403_v3, 0.0  ;;  %v4140_v47 = vmul.f32 %v9403_v3, %v9403_v3  ;;  %v3792_v4 = vadd.f32 %v9977_v54, %v3454_v8  ;;  %v4302_v8 = vld [vmem:[#allocation10 + $0x8] sm:$0xff] }
 0xc48   :  { %v4120_v31 = vadd.f32 %v4119_v5, %v4118_v45  ;;  %4256 = vmatpush.msrb.mxu2 %v9290_v24  ;;  %v9438_v12 = vadd.f32 %v9300_v33, %v3784_v19  ;;  %v3796_v45 = vadd.f32 %v9981_v41, %v3460_v58  ;;  %v4462_v58 = vld [vmem:[%s9956_s17 + $0xd0] sm:$0xff]  ;;  %v4460_v41 = vld [vmem:[%s9956_s17 + $0xc0] sm:$0xff] }
 0xc49   :  { %v4164_v49 = vsel %vm1402_vm7, %v4140_v47, 0.0 }
 0xc4a   :  { %v4121_v52 = vrot.slane %v4120_v31, 4  ;;  %v4165_v32 = vadd.f32 %v4164_v49, %v4163_v44  ;;  %v4032_v18 = vpop.f32.mrf.mxu3  ;;  %4257 = vmatpush.msrb.mxu2 %v9298_v30  ;;  %v9430_v30 = vadd.f32 %v9353_v55, %v3786_v1  ;;  %v4127_v33 = vmul.f32 %v9438_v12, %v9438_v12 }
 0xc4c   :  { %v4122_v57 = vadd.f32 %v4121_v52, %v4120_v31  ;;  %v4166_v51 = vrot.slane %v4165_v32, 4  ;;  %4258 = vmatpush.msrb.mxu2 %v9311_v7  ;;  %v4129_v7 = vmul.f32 %v9430_v30, %v9430_v30 }
 0xc4e   :  { %v4123_v11 = vrot.slane %v4122_v57, 2  ;;  %v4167_v26 = vadd.f32 %v4166_v51, %v4165_v32  ;;  %4259 = vmatpush.msrb.mxu2 %v9323_v9  ;;  %v9448_v9 = vadd.f32 %v4032_v18, %v3790_v39  ;;  %v4141_v38 = vadd.f32 %v4129_v7, %v4127_v33  ;;  %v4450_v33 = vld [vmem:[%s9956_s17 + $0x70] sm:$0xff] }
 0xc50   :  { %v4124_v2 = vadd.f32 %v4123_v11, %v4122_v57  ;;  %v4168_v6 = vrot.slane %v4167_v26, 2  ;;  %4260 = vmatpush.msrb.mxu2 %v9337_v59  ;;  %v4096_v59 = vadd.f32 %v9430_v30, %v9438_v12  ;;  %v4133_v23 = vmul.f32 %v9448_v9, %v9448_v9 }
 0xc51   :  { %v4142_v28 = vadd.f32 %v4141_v38, %v4131_v35  ;;  %v5748_v38 = vld [vmem:[%s9956_s17 + $0x148] sm:$0xff] }
 0xc52   :  { %v4125_v34 = vrot.slane %v4124_v2, 1  ;;  %v4035_v13 = vpop.f32.mrf.mxu3  ;;  %v4169_v36 = vadd.f32 %v4168_v6, %v4167_v26  ;;  %4261 = vmatpush.msrb.mxu2 %v9342_v60  ;;  %v4097_v60 = vadd.f32 %v4096_v59, %v9440_v10  ;;  %v5749_v59 = vld [vmem:[%s9956_s17 + $0x150] sm:$0xff] }
 0xc53   :  { %v9458_v55 = vadd.f32 %v4035_v13, %v3792_v4  ;;  %v4143_v5 = vadd.f32 %v4142_v28, %v4133_v23  ;;  %v4461_v28 = vld [vmem:[%s9956_s17 + $0xc8] sm:$0xff] }
 0xc54   :  { %v4126_v24 = vadd.f32 %v4125_v34, %v4124_v2  ;;  %v4170_v0 = vrot.slane %v4169_v36, 1  ;;  %4262 = vmatpush.msrb.mxu2 %v9367_v37  ;;  %v4098_v53 = vadd.f32 %v4097_v60, %v9448_v9  ;;  %v4463_v60 = vld [vmem:[%s9956_s17 + $0xd8] sm:$0xff] }
 0xc55   :  { %v4135_v37 = vmul.f32 %v9458_v55, %v9458_v55 }
 0xc56   :  { %5722 = vmatmul.msk.f32.vlgmr.msra.gmra.mxu0 %vm1402_vm7, %v4126_v24  ;;  %v4171_v15 = vadd.f32 %v4170_v0, %v4169_v36  ;;  %v4099_v47 = vadd.f32 %v4098_v53, %v9458_v55  ;;  %v4447_v53 = vld [vmem:[%s9956_s17 + $0x58] sm:$0xff] }
 0xc57   :  { %v4144_v49 = vadd.f32 %v4143_v5, %v4135_v37  ;;  %4321 = vmatpush.msra.mxu0 %v4301_v40  ;;  %v5746_v37 = vld [vmem:[%s9956_s17 + $0x138] sm:$0xff]  ;;  %v5745_v5 = vld [vmem:[%s9956_s17 + $0x130] sm:$0xff] }
 0xc58   :  { %v5741_v40 = vld [vmem:[%s9956_s17 + $0x110] sm:$0xff] }
 0xc5a   :  { %v4038_v16 = vpop.f32.mrf.mxu3 }
 0xc5b   :  { %v9464_v27 = vadd.f32 %v4038_v16, %v3794_v29  ;;  %v4451_v29 = vld [vmem:[%s9956_s17 + $0x78] sm:$0xff] }
 0xc5c   :  { %v5750_v16 = vld [vmem:[%s9956_s17 + $0x158] sm:$0xff]  ;;  %4485 = vmatpush.msrb.mxu1 %v4451_v29 }
 0xc5d   :  { %v4137_v44 = vmul.f32 %v9464_v27, %v9464_v27  ;;  %v4100_v52 = vadd.f32 %v4099_v47, %v9464_v27  ;;  %4597 = vmatpush.msra.mxu3 %v5750_v16  ;;  %v4445_v47 = vld [vmem:[%s9956_s17 + $0x48] sm:$0xff]  ;;  %v4439_v29 = vld [vmem:[%s9956_s17 + $0x18] sm:$0xff] }
 0xc5e   :  { %5723 = vmatmul.msk.f32.vlgmr.msrb.gmra.mxu0 %vm1402_vm7, %v4171_v15  ;;  %v4449_v15 = vld [vmem:[%s9956_s17 + $0x68] sm:$0xff]  ;;  %4486 = vmatpush.msrb.mxu1 %v4450_v33  ;;  %v4455_v16 = vld [vmem:[%s9956_s17 + $0x98] sm:$0xff] }
 0xc5f   :  { %v4145_v18 = vadd.f32 %v4144_v49, %v4137_v44  ;;  %4385 = vmatpush.msrb.mxu0 %v4302_v8  ;;  %4598 = vmatpush.msra.mxu3 %v5749_v59  ;;  %v5744_v44 = vld [vmem:[%s9956_s17 + $0x128] sm:$0xff]  ;;  %v4444_v49 = vld [vmem:[%s9956_s17 + $0x40] sm:$0xff]  ;;  %v5738_v33 = vld [vmem:[%s9956_s17 + $0xf8] sm:$0xff] }
 0xc60   :  { %4487 = vmatpush.msrb.mxu1 %v4449_v15  ;;  %v5754_v59 = vld [vmem:[%s9956_s17 + $0x178] sm:$0xff]  ;;  %v4454_v15 = vld [vmem:[%s9956_s17 + $0x90] sm:$0xff] }
 0xc61   :  { %4599 = vmatpush.msra.mxu3 %v5748_v38  ;;  %v5737_v38 = vld [vmem:[%s9956_s17 + $0xf0] sm:$0xff] }
 0xc62   :  { %v4041_v31 = vpop.f32.mrf.mxu3  ;;  %4488 = vmatpush.msrb.mxu1 %v4448_v14  ;;  %v4453_v14 = vld [vmem:[%s9956_s17 + $0x88] sm:$0xff] }
 0xc63   :  { %v9477_v32 = vadd.f32 %v4041_v31, %v3796_v45  ;;  %4600 = vmatpush.msra.mxu3 %v5747_v42  ;;  %v4446_v45 = vld [vmem:[%s9956_s17 + $0x50] sm:$0xff]  ;;  %v5736_v42 = vld [vmem:[%s9956_s17 + $0xe8] sm:$0xff] }
 0xc64   :  { %4489 = vmatpush.msrb.mxu1 %v4447_v53  ;;  %v4452_v53 = vld [vmem:[%s9956_s17 + $0x80] sm:$0xff] }
 0xc65   :  { %v4101_v57 = vadd.f32 %v4100_v52, %v9477_v32  ;;  %v4139_v51 = vmul.f32 %v9477_v32, %v9477_v32  ;;  %4601 = vmatpush.msra.mxu3 %v5746_v37  ;;  %v5743_v52 = vld [vmem:[%s9956_s17 + $0x120] sm:$0xff] }
 0xc66   :  { %4490 = vmatpush.msrb.mxu1 %v4446_v45  ;;  %v5735_v37 = vld [vmem:[%s9956_s17 + $0xe0] sm:$0xff] }
 0xc67   :  { %v4102_v11 = vrot.slane %v4101_v57, 4  ;;  %v4146_v26 = vadd.f32 %v4145_v18, %v4139_v51  ;;  %4602 = vmatpush.msra.mxu3 %v5745_v5 }
 0xc68   :  { %4491 = vmatpush.msrb.mxu1 %v4445_v47 }
 0xc69   :  { %v4103_v2 = vadd.f32 %v4102_v11, %v4101_v57  ;;  %v4147_v6 = vrot.slane %v4146_v26, 4  ;;  %4603 = vmatpush.msra.mxu3 %v5744_v44 }
 0xc6a   :  { %4492 = vmatpush.msrb.mxu1 %v4444_v49 }
 0xc6b   :  { %v4104_v46 = vrot.slane %v4103_v2, 2  ;;  %v4148_v34 = vadd.f32 %v4147_v6, %v4146_v26  ;;  %4604 = vmatpush.msra.mxu3 %v5743_v52  ;;  %v5806_v52 = vld [vmem:[%s9956_s17 + $0x238] sm:$0xff] }
 0xc6d   :  { %v4105_v13 = vadd.f32 %v4104_v46, %v4103_v2  ;;  %v4149_v21 = vrot.slane %v4148_v34, 2  ;;  %v5762_v2 = vld [vmem:[%s9956_s17 + $0x1b8] sm:$0xff] }
 0xc6f   :  { %v4106_v50 = vrot.slane %v4105_v13, 1  ;;  %v4150_v24 = vadd.f32 %v4149_v21, %v4148_v34  ;;  %v5761_v34 = vld [vmem:[%s9956_s17 + $0x1b0] sm:$0xff]  ;;  %v5759_v21 = vld [vmem:[%s9956_s17 + $0x1a0] sm:$0xff] }
 0xc71   :  { %v4107_v1 = vadd.f32 %v4106_v50, %v4105_v13  ;;  %v4151_v36 = vrot.slane %v4150_v24, 1  ;;  %v5760_v13 = vld [vmem:[%s9956_s17 + $0x1a8] sm:$0xff]  ;;  %v4443_v50 = vld [vmem:[%s9956_s17 + $0x38] sm:$0xff] }
 0xc72   :  { %4493 = vmatpush.msrb.mxu1 %v4443_v50  ;;  %v5818_v50 = vld [vmem:[%s9956_s17 + $0x298] sm:$0xff] }
 0xc73   :  { %4219 = vmatmul.f32.vlgmr.msra.gmra.mxu2 %v4107_v1  ;;  %v4152_v61 = vadd.f32 %v4151_v36, %v4150_v24  ;;  %v4459_v1 = vld [vmem:[%s9956_s17 + $0xb8] sm:$0xff] }
 0xc74   :  { %4341 = vmatpush.msra.mxu2 %v4302_v8  ;;  %v5742_v24 = vld [vmem:[%s9956_s17 + $0x118] sm:$0xff]  ;;  %v5757_v8 = vld [vmem:[%s9956_s17 + $0x190] sm:$0xff] }
 0xc75   :  { %v5758_v36 = vld [vmem:[%s9956_s17 + $0x198] sm:$0xff]  ;;  %4605 = vmatpush.msra.mxu3 %v5742_v24 }
 0xc77   :  { %4606 = vmatpush.msra.mxu3 %v5741_v40 }
 0xc7b   :  { %4263 = vmatmul.f32.vlgmr.msrb.gmra.mxu2 %v4152_v61  ;;  %v4442_v61 = vld [vmem:[%s9956_s17 + $0x30] sm:$0xff] }
 0xc7c   :  { %4527 = vmatpush.msrb.mxu2 %v4463_v60  ;;  %4494 = vmatpush.msrb.mxu1 %v4442_v61  ;;  %v5753_v60 = vld [vmem:[%s9956_s17 + $0x170] sm:$0xff]  ;;  %v5816_v61 = vld [vmem:[%s9956_s17 + $0x288] sm:$0xff] }
 0xc7e   :  { %4528 = vmatpush.msrb.mxu2 %v4462_v58  ;;  %v5752_v58 = vld [vmem:[%s9956_s17 + $0x168] sm:$0xff] }
 0xc80   :  { %4529 = vmatpush.msrb.mxu2 %v4461_v28  ;;  %v4436_v28 = vld [vmem:[%s9956_s17] sm:$0xff] }
 0xc82   :  { %4530 = vmatpush.msrb.mxu2 %v4460_v41  ;;  %v5751_v41 = vld [vmem:[%s9956_s17 + $0x160] sm:$0xff] }
 0xc84   :  { %4531 = vmatpush.msrb.mxu2 %v4459_v1 }
 0xcd3   :  { %v4240_v19 = vpop.f32.mrf.mxu0 }
 0xcdb   :  { %v4284_v0 = vpop.f32.mrf.mxu0 }
 0xcf6   :  { %v4220_v39 = vpop.f32.mrf.mxu2 }
 0xcf7   :  { %v4241_v20 = vadd.f32 %v4240_v19, %v4220_v39  ;;  %v4458_v19 = vld [vmem:[%s9956_s17 + $0xb0] sm:$0xff]  ;;  %v4441_v39 = vld [vmem:[%s9956_s17 + $0x28] sm:$0xff] }
 0xcf8   :  { %4532 = vmatpush.msrb.mxu2 %v4458_v19  ;;  %4495 = vmatpush.msrb.mxu1 %v4441_v39  ;;  %v5800_v39 = vld [vmem:[%s9956_s17 + $0x208] sm:$0xff] }
 0xcf9   :  { %v4243_v22 = vmul.f32 0.0006377551, %v4241_v20  ;;  %v4457_v20 = vld [vmem:[%s9956_s17 + $0xa8] sm:$0xff] }
 0xcfa   :  { %4533 = vmatpush.msrb.mxu2 %v4457_v20  ;;  %v5815_v20 = vld [vmem:[%s9956_s17 + $0x280] sm:$0xff] }
 0xcfb   :  { %v4288_v7 = vmul.f32 %v4243_v22, %v4243_v22 }
 0xcfe   :  { %v4264_v54 = vpop.f32.mrf.mxu2 }
 0xcff   :  { %v4285_v4 = vadd.f32 %v4284_v0, %v4264_v54  ;;  %v5756_v0 = vld [vmem:[%s9956_s17 + $0x188] sm:$0xff]  ;;  %v4440_v54 = vld [vmem:[%s9956_s17 + $0x20] sm:$0xff] }
 0xd00   :  { %4496 = vmatpush.msrb.mxu1 %v4440_v54 }
 0xd01   :  { %v4287_v63 = vmul.f32 0.0006377551, %v4285_v4  ;;  %v4456_v4 = vld [vmem:[%s9956_s17 + $0xa0] sm:$0xff] }
 0xd02   :  { %4534 = vmatpush.msrb.mxu2 %v4456_v4  ;;  %4497 = vmatpush.msrb.mxu1 %v4439_v29 }
 0xd03   :  { %v4289_v35 = vsub.f32 %v4287_v63, %v4288_v7  ;;  %v5739_v7 = vld [vmem:[%s9956_s17 + $0x100] sm:$0xff] }
 0xd04   :  { %v5755_v63 = vld [vmem:[%s9956_s17 + $0x180] sm:$0xff]  ;;  %4535 = vmatpush.msrb.mxu2 %v4455_v16 }
 0xd05   :  { %v4290_v23 = vadd.f32 1e-05, %v4289_v35  ;;  %v4438_v35 = vld [vmem:[%s9956_s17 + $0x10] sm:$0xff] }
 0xd06   :  { %4498 = vmatpush.msrb.mxu1 %v4438_v35  ;;  %4536 = vmatpush.msrb.mxu2 %v4454_v15  ;;  %v5811_v15 = vld [vmem:[%s9956_s17 + $0x260] sm:$0xff] }
 0xd07   :  { %5856 = vrsqrt.f32 %v4290_v23  ;;  %vm4297_vm9 = vweird.f32 %v4290_v23 }
 0xd08   :  { %4537 = vmatpush.msrb.mxu2 %v4453_v14 }
 0xd0a   :  { %4538 = vmatpush.msrb.mxu2 %v4452_v53  ;;  %v5809_v53 = vld [vmem:[%s9956_s17 + $0x250] sm:$0xff] }
 0xd0d   :  { %v5857_v31 = vpop.eup %5856 }
 0xd0e   :  { %v4292_v18 = vmul.f32 %v5857_v31, %v4290_v23  ;;  %vm4298_vm8 = vweird.f32 %v5857_v31  ;;  %v4437_v23 = vld [vmem:[%s9956_s17 + $0x8] sm:$0xff] }
 0xd0f   :  { %vm4299_vm10 = vmor %vm4297_vm9, %vm4298_vm8  ;;  %4499 = vmatpush.msrb.mxu1 %v4437_v23  ;;  %v5810_v23 = vld [vmem:[%s9956_s17 + $0x258] sm:$0xff] }
 0xd10   :  { %v4293_v57 = vmul.f32 %v5857_v31, %v4292_v18  ;;  %v5805_v18 = vld [vmem:[%s9956_s17 + $0x230] sm:$0xff] }
 0xd11   :  { %4500 = vmatpush.msrb.mxu1 %v4436_v28  ;;  %v5794_v28 = vld [vmem:[%s9956_s17 + $0x1d8] sm:$0xff] }
 0xd12   :  { %v4294_v51 = vmul.f32 0.5, %v4293_v57 }
 0xd14   :  { %v4295_v11 = vsub.f32 1.5, %v4294_v51 }
 0xd16   :  { %v4296_v26 = vmul.f32 %v5857_v31, %v4295_v11 }
 0xd18   :  { %v4300_v6 = vsel %vm4299_vm10, %v5857_v31, %v4296_v26 }
 0xd19   :  { %5724 = vmatmul.msk.f32.vlgmr.msra.gmra.mxu0 %vm142_vm0, %v4300_v6  ;;  %v4346_v46 = vmul.f32 %v4300_v6, %v4243_v22  ;;  %5725 = vmatmul.msk.f32.vlgmr.msra.gmra.mxu2 %vm142_vm0, %v4300_v6  ;;  %v5740_v22 = vld [vmem:[%s9956_s17 + $0x108] sm:$0xff] }
 0xd1a   :  { %4639 = vmatpush.msra.mxu0 %v5762_v2  ;;  %4607 = vmatpush.msra.mxu3 %v5740_v22  ;;  %v5804_v2 = vld [vmem:[%s9956_s17 + $0x228] sm:$0xff] }
 0xd1b   :  { %5726 = vmatmul.msk.f32.vlgmr.msrb.gmra.mxu3 %vm142_vm0, %v4346_v46 }
 0xd1c   :  { %4640 = vmatpush.msra.mxu0 %v5761_v34  ;;  %4608 = vmatpush.msra.mxu3 %v5739_v7  ;;  %v5813_v7 = vld [vmem:[%s9956_s17 + $0x270] sm:$0xff] }
 0xd1e   :  { %4641 = vmatpush.msra.mxu0 %v5760_v13  ;;  %4609 = vmatpush.msra.mxu3 %v5738_v33  ;;  %v5797_v33 = vld [vmem:[%s9956_s17 + $0x1f0] sm:$0xff] }
 0xd20   :  { %4642 = vmatpush.msra.mxu0 %v5759_v21  ;;  %4610 = vmatpush.msra.mxu3 %v5737_v38 }
 0xd21   :  { %5727 = vmatmul.msk.f32.vlgmr.msrb.gmra.mxu0 %vm142_vm0, %v4346_v46  ;;  %vm4681_vm0 = vcmask 457728  }
 0xd22   :  { %4643 = vmatpush.msra.mxu0 %v5758_v36  ;;  %4611 = vmatpush.msra.mxu3 %v5736_v42  ;;  %v5801_v36 = vld [vmem:[%s9956_s17 + $0x210] sm:$0xff] }
 0xd24   :  { %4644 = vmatpush.msra.mxu0 %v5757_v8  ;;  %4612 = vmatpush.msra.mxu3 %v5735_v37 }
 0xd26   :  { %4645 = vmatpush.msra.mxu0 %v5756_v0  ;;  %4871 = vmatpush.msrb.mxu3 %v5818_v50  ;;  %v5814_v0 = vld [vmem:[%s9956_s17 + $0x278] sm:$0xff] }
 0xd28   :  { %4646 = vmatpush.msra.mxu0 %v5755_v63 }
 0xd2a   :  { %4647 = vmatpush.msra.mxu0 %v5754_v59  ;;  %v5812_v59 = vld [vmem:[%s9956_s17 + $0x268] sm:$0xff] }
 0xd2c   :  { %4648 = vmatpush.msra.mxu0 %v5753_v60 }
 0xd2e   :  { %4649 = vmatpush.msra.mxu0 %v5752_v58 }
 0xd30   :  { %4650 = vmatpush.msra.mxu0 %v5751_v41  ;;  %v5808_v41 = vld [vmem:[%s9956_s17 + $0x248] sm:$0xff] }
 0xd32   :  { %4829 = vmatpush.msrb.mxu0 %v5806_v52 }
 0xd34   :  { %4830 = vmatpush.msrb.mxu0 %v5805_v18 }
 0xd36   :  { %4831 = vmatpush.msrb.mxu0 %v5804_v2 }
 0xd96   :  { %v4323_v45 = vpop.f32.mrf.mxu0 }
 0xd97   :  { %v9654_v5 = vperm.slane %v4323_v45, 0 }
 0xd99   :  { %v4392_v11 = vmul.f32 %v9654_v5, %v9438_v12  ;;  %v4394_v21 = vmul.f32 %v9654_v5, %v9430_v30  ;;  %v5817_v30 = vld [vmem:[%s9956_s17 + $0x290] sm:$0xff]  ;;  %v4396_v22 = vmul.f32 %v9654_v5, %v9440_v10  ;;  %v5798_v10 = vld [vmem:[%s9956_s17 + $0x1f8] sm:$0xff]  ;;  %v4398_v35 = vmul.f32 %v9654_v5, %v9448_v9  ;;  %v5795_v9 = vld [vmem:[%s9956_s17 + $0x1e0] sm:$0xff] }
 0xd9a   :  { %4872 = vmatpush.msrb.mxu3 %v5817_v30  ;;  %v4400_v37 = vmul.f32 %v9654_v5, %v9458_v55  ;;  %v5792_v55 = vld [vmem:[%s9956_s17 + $0x1c8] sm:$0xff] }
 0xd9c   :  { %v4343_v47 = vpop.f32.mrf.mxu2  ;;  %4873 = vmatpush.msrb.mxu3 %v5816_v61 }
 0xd9d   :  { %v9656_v44 = vperm.slane %v4343_v47, 0 }
 0xd9e   :  { %v4367_v31 = vpop.f32.mrf.mxu3  ;;  %v4387_v49 = vpop.f32.mrf.mxu0  ;;  %4874 = vmatpush.msrb.mxu3 %v5815_v20 }
 0xd9f   :  { %v9664_v57 = vperm.slane %v4367_v31, 0  ;;  %v9666_v51 = vperm.slane %v4387_v49, 0  ;;  %v4393_v26 = vmul.f32 %v9656_v44, %v9330_v25  ;;  %v4395_v12 = vmul.f32 %v9656_v44, %v9318_v56  ;;  %v5803_v25 = vld [vmem:[%s9956_s17 + $0x220] sm:$0xff]  ;;  %v5802_v56 = vld [vmem:[%s9956_s17 + $0x218] sm:$0xff] }
 0xda0   :  { %4832 = vmatpush.msrb.mxu0 %v5803_v25  ;;  %v4397_v8 = vmul.f32 %v9656_v44, %v9332_v17  ;;  %v5799_v17 = vld [vmem:[%s9956_s17 + $0x200] sm:$0xff]  ;;  %4875 = vmatpush.msrb.mxu3 %v5814_v0  ;;  %v4399_v16 = vmul.f32 %v9656_v44, %v9350_v62  ;;  %v5796_v62 = vld [vmem:[%s9956_s17 + $0x1e8] sm:$0xff]  ;;  %v4401_v58 = vmul.f32 %v9656_v44, %v9362_v43  ;;  %v5793_v43 = vld [vmem:[%s9956_s17 + $0x1d0] sm:$0xff] }
 0xda1   :  { %v4408_v6 = vsub.f32 %v4392_v11, %v9664_v57  ;;  %v4409_v46 = vsub.f32 %v4393_v26, %v9666_v51  ;;  %v4410_v1 = vsub.f32 %v4394_v21, %v9664_v57  ;;  %v4411_v24 = vsub.f32 %v4395_v12, %v9666_v51  ;;  %v5807_v31 = vld [vmem:[%s9956_s17 + $0x240] sm:$0xff] }
 0xda2   :  { %4833 = vmatpush.msrb.mxu0 %v5802_v56  ;;  %v4412_v54 = vsub.f32 %v4396_v22, %v9664_v57  ;;  %v4413_v4 = vsub.f32 %v4397_v8, %v9666_v51  ;;  %4876 = vmatpush.msrb.mxu3 %v5813_v7  ;;  %v4414_v38 = vsub.f32 %v4398_v35, %v9664_v57  ;;  %v5791_v11 = vld [vmem:[%s9956_s17 + $0x1c0] sm:$0xff] }
 0xda3   :  { %v9677_v34 = vmax.f32 %v4408_v6, 0.0  ;;  %v9679_v13 = vmax.f32 %v4409_v46, 0.0  ;;  %v9711_v19 = vmax.f32 %v4410_v1, 0.0  ;;  %v9713_v40 = vmax.f32 %v4411_v24, 0.0 }
 0xda4   :  { %4834 = vmatpush.msrb.mxu0 %v5801_v36  ;;  %v9745_v63 = vmax.f32 %v4412_v54, 0.0  ;;  %v9747_v29 = vmax.f32 %v4413_v4, 0.0  ;;  %v4415_v60 = vsub.f32 %v4399_v16, %v9666_v51  ;;  %4877 = vmatpush.msrb.mxu3 %v5812_v59  ;;  %v4428_v14 = vmax.f32 %v4414_v38, 0.0 }
 0xda5   :  { %4501 = vmatmul.f32.vlgmr.msrb.gmra.mxu1 %v9677_v34  ;;  %5728 = vmatmul.msk.f32.vlgmr.msrb.gmra.mxu2 %vm1402_vm7, %v9679_v13  ;;  %v4416_v45 = vsub.f32 %v4400_v37, %v9664_v57  ;;  %v4417_v47 = vsub.f32 %v4401_v58, %v9666_v51  ;;  %v4403_v18 = vmul.f32 %v9656_v44, %v9378_v48 }
 0xda6   :  { %4613 = vmatmul.f32.vlgmr.msra.gmra.mxu3 %v9677_v34  ;;  %5763 = vmatmul.msk.f32.vlgmr.msra.gmra.mxu0 %vm1402_vm7, %v9679_v13  ;;  %v4429_v42 = vmax.f32 %v4415_v60, 0.0  ;;  %v4402_v26 = vmul.f32 %v9654_v5, %v9464_v27  ;;  %v4405_v12 = vmul.f32 %v9656_v44, %v9403_v3  ;;  %v4404_v25 = vmul.f32 %v9654_v5, %v9477_v32 }
 0xda7   :  { %4835 = vmatpush.msrb.mxu0 %v5800_v39  ;;  %4878 = vmatpush.msrb.mxu3 %v5811_v15  ;;  %v4430_v49 = vmax.f32 %v4416_v45, 0.0  ;;  %v4431_v52 = vmax.f32 %v4417_v47, 0.0  ;;  %v4419_v6 = vsub.f32 %v4403_v18, %v9666_v51  ;;  %v5770_v47 = vld [vmem:[%s9957_s18 + $0x38] sm:$0xff] }
 0xda8   :  { %v4418_v2 = vsub.f32 %v4402_v26, %v9664_v57  ;;  %v4420_v27 = vsub.f32 %v4404_v25, %v9664_v57  ;;  %v4421_v21 = vsub.f32 %v4405_v12, %v9666_v51  ;;  %v4563_v26 = vld [vmem:[%s9957_s18 + $0x10] sm:$0xff] }
 0xda9   :  { %4836 = vmatpush.msrb.mxu0 %v5799_v17  ;;  %4879 = vmatpush.msrb.mxu3 %v5810_v23  ;;  %v4433_v46 = vmax.f32 %v4419_v6, 0.0  ;;  %v5773_v12 = vld [vmem:[%s9957_s18 + $0x50] sm:$0xff] }
 0xdaa   :  { %v4432_v48 = vmax.f32 %v4418_v2, 0.0  ;;  %v4434_v56 = vmax.f32 %v4420_v27, 0.0  ;;  %v4435_v50 = vmax.f32 %v4421_v21, 0.0  ;;  %v5772_v2 = vld [vmem:[%s9957_s18 + $0x48] sm:$0xff]  ;;  %v4565_v27 = vld [vmem:[%s9957_s18 + $0x20] sm:$0xff]  ;;  %v5774_v21 = vld [vmem:[%s9957_s18 + $0x58] sm:$0xff] }
 0xdab   :  { %4837 = vmatpush.msrb.mxu0 %v5798_v10  ;;  %4880 = vmatpush.msrb.mxu3 %v5809_v53 }
 0xdad   :  { %4504 = vmatmul.f32.gmra.mxu1 %v9711_v19  ;;  %5729 = vmatmul.msk.f32.gmra.mxu2 %vm1402_vm7, %v9713_v40 }
 0xdae   :  { %4616 = vmatmul.f32.gmra.mxu3 %v9711_v19  ;;  %5764 = vmatmul.msk.f32.gmra.mxu0 %vm1402_vm7, %v9713_v40 }
 0xdaf   :  { %4838 = vmatpush.msrb.mxu0 %v5797_v33  ;;  %4881 = vmatpush.msrb.mxu3 %v5808_v41  ;;  %v4561_v41 = vld [vmem:[%s9957_s18] sm:$0xff] }
 0xdb1   :  { %4839 = vmatpush.msrb.mxu0 %v5796_v62  ;;  %4882 = vmatpush.msrb.mxu3 %v5807_v31 }
 0xdb3   :  { %4840 = vmatpush.msrb.mxu0 %v5795_v9 }
 0xdb5   :  { %4507 = vmatmul.f32.gmra.mxu1 %v9745_v63  ;;  %5730 = vmatmul.msk.f32.gmra.mxu2 %vm1402_vm7, %v9747_v29 }
 0xdb6   :  { %4619 = vmatmul.f32.gmra.mxu3 %v9745_v63  ;;  %5765 = vmatmul.msk.f32.gmra.mxu0 %vm1402_vm7, %v9747_v29 }
 0xdb7   :  { %4841 = vmatpush.msrb.mxu0 %v5794_v28 }
 0xdb9   :  { %4842 = vmatpush.msrb.mxu0 %v5793_v43 }
 0xdbb   :  { %4843 = vmatpush.msrb.mxu0 %v5792_v55 }
 0xdbd   :  { %4510 = vmatmul.f32.gmra.mxu1 %v4428_v14  ;;  %5731 = vmatmul.msk.f32.gmra.mxu2 %vm1402_vm7, %v4429_v42 }
 0xdbe   :  { %4622 = vmatmul.f32.gmra.mxu3 %v4428_v14  ;;  %5766 = vmatmul.msk.f32.gmra.mxu0 %vm1402_vm7, %v4429_v42 }
 0xdbf   :  { %4844 = vmatpush.msrb.mxu0 %v5791_v11 }
 0xdc5   :  { %4513 = vmatmul.f32.gmra.mxu1 %v4430_v49  ;;  %5732 = vmatmul.msk.f32.gmra.mxu2 %vm1402_vm7, %v4431_v52 }
 0xdc6   :  { %4625 = vmatmul.f32.gmra.mxu3 %v4430_v49  ;;  %5767 = vmatmul.msk.f32.gmra.mxu0 %vm1402_vm7, %v4431_v52 }
 0xdcd   :  { %4516 = vmatmul.f32.gmra.mxu1 %v4432_v48  ;;  %5733 = vmatmul.msk.f32.gmra.mxu2 %vm1402_vm7, %v4433_v46 }
 0xdce   :  { %4628 = vmatmul.f32.gmra.mxu3 %v4432_v48  ;;  %5768 = vmatmul.msk.f32.gmra.mxu0 %vm1402_vm7, %v4433_v46 }
 0xdd5   :  { %4519 = vmatmul.f32.gmra.mxu1 %v4434_v56  ;;  %5734 = vmatmul.msk.f32.gmra.mxu2 %vm1402_vm7, %v4435_v50 }
 0xdd6   :  { %4631 = vmatmul.f32.gmra.mxu3 %v4434_v56  ;;  %5769 = vmatmul.msk.f32.gmra.mxu0 %vm1402_vm7, %v4435_v50 }
 0xdde   :  { %4845 = vmatmul.f32.vlgmr.msrb.gmra.mxu0 %v9677_v34  ;;  %5819 = vmatmul.msk.f32.vlgmr.msrb.gmra.mxu3 %vm1402_vm7, %v9679_v13 }
 0xde6   :  { %4848 = vmatmul.f32.gmra.mxu0 %v9711_v19  ;;  %5820 = vmatmul.msk.f32.gmra.mxu3 %vm1402_vm7, %v9713_v40 }
 0xdee   :  { %4851 = vmatmul.f32.gmra.mxu0 %v9745_v63  ;;  %5821 = vmatmul.msk.f32.gmra.mxu3 %vm1402_vm7, %v9747_v29 }
 0xdf6   :  { %4854 = vmatmul.f32.gmra.mxu0 %v4428_v14  ;;  %5822 = vmatmul.msk.f32.gmra.mxu3 %vm1402_vm7, %v4429_v42 }
 0xdfe   :  { %4857 = vmatmul.f32.gmra.mxu0 %v4430_v49  ;;  %5823 = vmatmul.msk.f32.gmra.mxu3 %vm1402_vm7, %v4431_v52  ;;  %v4562_v49 = vld [vmem:[%s9957_s18 + $0x8] sm:$0xff]  ;;  %v5771_v52 = vld [vmem:[%s9957_s18 + $0x40] sm:$0xff] }
 0xe06   :  { %4860 = vmatmul.f32.gmra.mxu0 %v4432_v48  ;;  %5824 = vmatmul.msk.f32.gmra.mxu3 %vm1402_vm7, %v4433_v46  ;;  %v4564_v46 = vld [vmem:[%s9957_s18 + $0x18] sm:$0xff] }
 0xe0e   :  { %4863 = vmatmul.f32.gmra.mxu0 %v4434_v56  ;;  %5825 = vmatmul.msk.f32.gmra.mxu3 %vm1402_vm7, %v4435_v50 }
 0xe22   :  { %v4502_v3 = vpop.f32.mrf.mxu1 }
 0xe23   :  { %v4652_v32 = vpop.f32.mrf.mxu0 }
 0xe28   :  { %v4540_v5 = vpop.f32.mrf.mxu2 }
 0xe29   :  { %v4614_v44 = vpop.f32.mrf.mxu3  ;;  %v4541_v43 = vadd.f32 %v4540_v5, %v4502_v3  ;;  %v4566_v3 = vld [vmem:[%s9957_s18 + $0x28] sm:$0xff] }
 0xe2a   :  { %v4505_v57 = vpop.f32.mrf.mxu1  ;;  %v4653_v45 = vadd.f32 %v4652_v32, %v4614_v44  ;;  %v5775_v32 = vld [vmem:[%s9957_s18 + $0x60] sm:$0xff] }
 0xe2b   :  { %v4655_v51 = vpop.f32.mrf.mxu0 }
 0xe30   :  { %v4543_v34 = vpop.f32.mrf.mxu2 }
 0xe31   :  { %v4617_v13 = vpop.f32.mrf.mxu3  ;;  %v4544_v28 = vadd.f32 %v4543_v34, %v4505_v57  ;;  %v4567_v34 = vld [vmem:[%s9957_s18 + $0x30] sm:$0xff] }
 0xe32   :  { %v4508_v1 = vpop.f32.mrf.mxu1  ;;  %v4656_v37 = vadd.f32 %v4655_v51, %v4617_v13 }
 0xe33   :  { %v4658_v24 = vpop.f32.mrf.mxu0 }
 0xe38   :  { %v4546_v30 = vpop.f32.mrf.mxu2 }
 0xe39   :  { %v4620_v36 = vpop.f32.mrf.mxu3  ;;  %v4547_v14 = vadd.f32 %v4546_v30, %v4508_v1  ;;  %v5776_v1 = vld [vmem:[%s9957_s18 + $0x68] sm:$0xff] }
 0xe3a   :  { %v4511_v61 = vpop.f32.mrf.mxu1  ;;  %v4659_v58 = vadd.f32 %v4658_v24, %v4620_v36 }
 0xe3b   :  { %v4661_v19 = vpop.f32.mrf.mxu0 }
 0xe40   :  { %v4549_v40 = vpop.f32.mrf.mxu2 }
 0xe41   :  { %v4623_v8 = vpop.f32.mrf.mxu3  ;;  %v4550_v9 = vadd.f32 %v4549_v40, %v4511_v61  ;;  %v5827_v40 = vld [vmem:[%s9957_s18 + $0x78] sm:$0xff] }
 0xe42   :  { %v4514_v20 = vpop.f32.mrf.mxu1  ;;  %v4662_v23 = vadd.f32 %v4661_v19, %v4623_v8  ;;  %v5826_v19 = vld [vmem:[%s9957_s18 + $0x70] sm:$0xff]  ;;  %v5828_v8 = vld [vmem:[%s9957_s18 + $0x80] sm:$0xff] }
 0xe43   :  { %v4664_v39 = vpop.f32.mrf.mxu0 }
 0xe48   :  { %v4552_v22 = vpop.f32.mrf.mxu2 }
 0xe49   :  { %v4626_v17 = vpop.f32.mrf.mxu3  ;;  %v4553_v38 = vadd.f32 %v4552_v22, %v4514_v20  ;;  %v5830_v20 = vld [vmem:[%s9957_s18 + $0x90] sm:$0xff]  ;;  %v5831_v22 = vld [vmem:[%s9957_s18 + $0x98] sm:$0xff] }
 0xe4a   :  { %v4517_v54 = vpop.f32.mrf.mxu1  ;;  %v4665_v60 = vadd.f32 %v4664_v39, %v4626_v17  ;;  %v5829_v39 = vld [vmem:[%s9957_s18 + $0x88] sm:$0xff]  ;;  %v5832_v17 = vld [vmem:[%s9957_s18 + $0xa0] sm:$0xff]  ;;  %s6031_s18 = smov [#allocation11]  }
 0xe4b   :  { %v4667_v0 = vpop.f32.mrf.mxu0  ;;  %s4997_s5 = sshll.u32 %s6031_s18, 4  ;;  %s4998_s5 = int_to_ptr.vmem [resolvable:$true] %s4997_s5 }
 0xe50   :  { %v4555_v4 = vpop.f32.mrf.mxu2 }
 0xe51   :  { %v4629_v10 = vpop.f32.mrf.mxu3  ;;  %v4556_v35 = vadd.f32 %v4555_v4, %v4517_v54 }
 0xe52   :  { %v4520_v63 = vpop.f32.mrf.mxu1  ;;  %v4668_v15 = vadd.f32 %v4667_v0, %v4629_v10 }
 0xe53   :  { %v4670_v7 = vpop.f32.mrf.mxu0 }
 0xe58   :  { %v4558_v29 = vpop.f32.mrf.mxu2 }
 0xe59   :  { %v4559_v16 = vadd.f32 %v4558_v29, %v4520_v63  ;;  %v4632_v33 = vpop.f32.mrf.mxu3 }
 0xe5a   :  { %v4671_v59 = vadd.f32 %v4670_v7, %v4632_v33 }
 0xe5b   :  { %v9839_v62 = vpop.f32.mrf.mxu0  ;;  %4771 = vmatpush.msra.mxu2 %v4559_v16 }
 0xe5c   :  { %4712 = vmatpush.msra.mxu1 %v4671_v59 }
 0xe5d   :  { %4772 = vmatpush.msra.mxu2 %v4556_v35 }
 0xe5e   :  { %4713 = vmatpush.msra.mxu1 %v4668_v15 }
 0xe5f   :  { %4773 = vmatpush.msra.mxu2 %v4553_v38 }
 0xe60   :  { %4714 = vmatpush.msra.mxu1 %v4665_v60 }
 0xe61   :  { %v9841_v42 = vpop.f32.mrf.mxu3  ;;  %4774 = vmatpush.msra.mxu2 %v4550_v9 }
 0xe62   :  { %4715 = vmatpush.msra.mxu1 %v4662_v23  ;;  %v4885_v61 = vadd.f32 %v9841_v42, %v9839_v62 }
 0xe63   :  { %v4849_v53 = vpop.f32.mrf.mxu0  ;;  %4775 = vmatpush.msra.mxu2 %v4547_v14 }
 0xe64   :  { %4716 = vmatpush.msra.mxu1 %v4659_v58 }
 0xe65   :  { %4776 = vmatpush.msra.mxu2 %v4544_v28 }
 0xe66   :  { %4717 = vmatpush.msra.mxu1 %v4656_v37 }
 0xe67   :  { %4777 = vmatpush.msra.mxu2 %v4541_v43 }
 0xe68   :  { %4718 = vmatpush.msra.mxu1 %v4653_v45  ;;  %5784 = vmatmul.msk.f32.vlgmr.msra.gmra.mxu2 %vm4681_vm0, %v4561_v41 }
 0xe69   :  { %5777 = vmatmul.msk.f32.vlgmr.msra.gmra.mxu1 %vm4681_vm0, %v5770_v47  ;;  %v4887_v55 = vpop.f32.mrf.mxu3 }
 0xe6a   :  { %v4888_v36 = vadd.f32 %v4887_v55, %v4849_v53 }
 0xe6b   :  { %v4852_v31 = vpop.f32.mrf.mxu0 }
 0xe70   :  { %5785 = vmatmul.msk.f32.gmra.mxu2 %vm4681_vm0, %v4562_v49 }
 0xe71   :  { %5778 = vmatmul.msk.f32.gmra.mxu1 %vm4681_vm0, %v5771_v52  ;;  %v4890_v18 = vpop.f32.mrf.mxu3 }
 0xe72   :  { %v4891_v30 = vadd.f32 %v4890_v18, %v4852_v31 }
 0xe73   :  { %v4855_v11 = vpop.f32.mrf.mxu0 }
 0xe78   :  { %5786 = vmatmul.msk.f32.gmra.mxu2 %vm4681_vm0, %v4563_v26 }
 0xe79   :  { %5779 = vmatmul.msk.f32.gmra.mxu1 %vm4681_vm0, %v5772_v2  ;;  %v4893_v6 = vpop.f32.mrf.mxu3 }
 0xe7a   :  { %v4894_v24 = vadd.f32 %v4893_v6, %v4855_v11 }
 0xe7b   :  { %v4858_v48 = vpop.f32.mrf.mxu0 }
 0xe80   :  { %5787 = vmatmul.msk.f32.gmra.mxu2 %vm4681_vm0, %v4564_v46 }
 0xe81   :  { %5780 = vmatmul.msk.f32.gmra.mxu1 %vm4681_vm0, %v5773_v12  ;;  %v4896_v25 = vpop.f32.mrf.mxu3 }
 0xe82   :  { %v4897_v13 = vadd.f32 %v4896_v25, %v4858_v48 }
 0xe83   :  { %v4861_v56 = vpop.f32.mrf.mxu0 }
 0xe88   :  { %5788 = vmatmul.msk.f32.gmra.mxu2 %vm4681_vm0, %v4565_v27 }
 0xe89   :  { %5781 = vmatmul.msk.f32.gmra.mxu1 %vm4681_vm0, %v5774_v21  ;;  %v4899_v50 = vpop.f32.mrf.mxu3 }
 0xe8a   :  { %v4900_v51 = vadd.f32 %v4899_v50, %v4861_v56 }
 0xe8b   :  { %v4864_v5 = vpop.f32.mrf.mxu0 }
 0xe90   :  { %5789 = vmatmul.msk.f32.gmra.mxu2 %vm4681_vm0, %v4566_v3 }
 0xe91   :  { %5782 = vmatmul.msk.f32.gmra.mxu1 %vm4681_vm0, %v5775_v32  ;;  %v4902_v44 = vpop.f32.mrf.mxu3 }
 0xe92   :  { %v4903_v57 = vadd.f32 %v4902_v44, %v4864_v5 }
 0xe94   :  { %4943 = vmatpush.msrb.mxu1 %v4903_v57 }
 0xe96   :  { %4944 = vmatpush.msrb.mxu1 %v4900_v51 }
 0xe98   :  { %4945 = vmatpush.msrb.mxu1 %v4897_v13  ;;  %5790 = vmatmul.msk.f32.gmra.mxu2 %vm4681_vm0, %v4567_v34 }
 0xe99   :  { %5783 = vmatmul.msk.f32.gmra.mxu1 %vm4681_vm0, %v5776_v1 }
 0xe9a   :  { %4946 = vmatpush.msrb.mxu1 %v4894_v24 }
 0xe9c   :  { %4947 = vmatpush.msrb.mxu1 %v4891_v30 }
 0xe9e   :  { %4948 = vmatpush.msrb.mxu1 %v4888_v36 }
 0xea0   :  { %4949 = vmatpush.msrb.mxu1 %v4885_v61 }
 0xea1   :  { %5833 = vmatmul.msk.f32.vlgmr.msrb.gmra.mxu1 %vm4681_vm0, %v5826_v19 }
 0xea9   :  { %5834 = vmatmul.msk.f32.gmra.mxu1 %vm4681_vm0, %v5827_v40 }
 0xeb1   :  { %5835 = vmatmul.msk.f32.gmra.mxu1 %vm4681_vm0, %v5828_v8 }
 0xeb9   :  { %5836 = vmatmul.msk.f32.gmra.mxu1 %vm4681_vm0, %v5829_v39 }
 0xec1   :  { %5837 = vmatmul.msk.f32.gmra.mxu1 %vm4681_vm0, %v5830_v20 }
 0xec9   :  { %5838 = vmatmul.msk.f32.gmra.mxu1 %vm4681_vm0, %v5831_v22 }
 0xed1   :  { %5839 = vmatmul.msk.f32.gmra.mxu1 %vm4681_vm0, %v5832_v17 }
 0xee6   :  { %v4720_v0 = vpop.f32.mrf.mxu1 }
 0xeeb   :  { %v4779_v29 = vpop.f32.mrf.mxu2 }
 0xeec   :  { %v4780_v59 = vadd.f32 %v4779_v29, %v4720_v0 }
 0xeee   :  { %v4723_v54 = vpop.f32.mrf.mxu1 }
 0xef3   :  { %v4782_v33 = vpop.f32.mrf.mxu2 }
 0xef4   :  { %v4783_v38 = vadd.f32 %v4782_v33, %v4723_v54 }
 0xef6   :  { %v4726_v4 = vpop.f32.mrf.mxu1 }
 0xefb   :  { %v4785_v15 = vpop.f32.mrf.mxu2 }
 0xefc   :  { %v4786_v42 = vadd.f32 %v4785_v15, %v4726_v4 }
 0xefe   :  { %v4729_v10 = vpop.f32.mrf.mxu1 }
 0xf03   :  { %v4788_v14 = vpop.f32.mrf.mxu2 }
 0xf04   :  { %v4789_v37 = vadd.f32 %v4788_v14, %v4729_v10 }
 0xf06   :  { %v4732_v7 = vpop.f32.mrf.mxu1 }
 0xf0b   :  { %v4791_v43 = vpop.f32.mrf.mxu2 }
 0xf0c   :  { %v4792_v55 = vadd.f32 %v4791_v43, %v4732_v7 }
 0xf0e   :  { %v4735_v63 = vpop.f32.mrf.mxu1 }
 0xf13   :  { %v4794_v18 = vpop.f32.mrf.mxu2 }
 0xf14   :  { %v4795_v11 = vadd.f32 %v4794_v18, %v4735_v63 }
 0xf16   :  { %v4738_v16 = vpop.f32.mrf.mxu1 }
 0xf1b   :  { %v4797_v48 = vpop.f32.mrf.mxu2 }
 0xf1c   :  { %v4798_v46 = vadd.f32 %v4797_v48, %v4738_v16 }
 0xf1e   :  { %v4951_v35 = vpop.f32.mrf.mxu1 }
 0xf1f   :  { %v4972_v62 = vadd.f32 %v4951_v35, %v4780_v59 }
 0xf21   :  { %5858 = vtanh.f32 %v4972_v62 }
 0xf26   :  { %v4954_v60 = vpop.f32.mrf.mxu1 }
 0xf27   :  { %v5859_v9 = vpop.eup %5858  ;;  %v4973_v23 = vadd.f32 %v4954_v60, %v4783_v38 }
 0xf28   :  { %4986 = vst.msk [vmem:[#allocation11] sm:$0xff] %vm3293_vm6, %v5859_v9 }
 0xf29   :  { %5860 = vtanh.f32 %v4973_v23 }
 0xf2e   :  { %v4957_v58 = vpop.f32.mrf.mxu1 }
 0xf2f   :  { %v5861_v28 = vpop.eup %5860  ;;  %v4974_v53 = vadd.f32 %v4957_v58, %v4786_v42 }
 0xf30   :  { %4987 = vst.msk [vmem:[#allocation11 + $0x8] sm:$0xff] %vm3293_vm6, %v5861_v28 }
 0xf31   :  { %5862 = vtanh.f32 %v4974_v53 }
 0xf36   :  { %v4960_v41 = vpop.f32.mrf.mxu1 }
 0xf37   :  { %v5863_v45 = vpop.eup %5862  ;;  %v4975_v47 = vadd.f32 %v4960_v41, %v4789_v37 }
 0xf38   :  { %4988 = vst.msk [vmem:[#allocation11 + $0x10] sm:$0xff] %vm3293_vm6, %v5863_v45 }
 0xf39   :  { %5864 = vtanh.f32 %v4975_v47 }
 0xf3e   :  { %v4963_v31 = vpop.f32.mrf.mxu1 }
 0xf3f   :  { %v5865_v49 = vpop.eup %5864  ;;  %v4976_v52 = vadd.f32 %v4963_v31, %v4792_v55 }
 0xf40   :  { %4989 = vst.msk [vmem:[#allocation11 + $0x18] sm:$0xff] %vm3293_vm6, %v5865_v49 }
 0xf41   :  { %5866 = vtanh.f32 %v4976_v52 }
 0xf46   :  { %v4966_v26 = vpop.f32.mrf.mxu1 }
 0xf47   :  { %v5867_v2 = vpop.eup %5866  ;;  %v4977_v6 = vadd.f32 %v4966_v26, %v4795_v11 }
 0xf48   :  { %4990 = vst.msk [vmem:[#allocation11 + $0x20] sm:$0xff] %vm3293_vm6, %v5867_v2 }
 0xf49   :  { %5868 = vtanh.f32 %v4977_v6 }
 0xf4e   :  { %v4969_v12 = vpop.f32.mrf.mxu1 }
 0xf4f   :  { %v5869_v25 = vpop.eup %5868  ;;  %v4978_v27 = vadd.f32 %v4969_v12, %v4798_v46 }
 0xf50   :  { %4991 = vst.msk [vmem:[#allocation11 + $0x28] sm:$0xff] %vm3293_vm6, %v5869_v25 }
 0xf51   :  { %5870 = vtanh.f32 %v4978_v27 }
 0xf57   :  { %v5871_v21 = vpop.eup %5870 }
 0xf58   :  { %4992 = vst.msk [vmem:[#allocation11 + $0x30] sm:$0xff] %vm3293_vm6, %v5871_v21 }
 0xf59   :  { %5005 = dma.vmem_to_hbm [thread:$0]  %s4998_s5, 896, %s5000_s27, [#allocation4], %s6032_s23, %s6032_s23, %s6033_s30  }
 0xf5a   :  { %6022 = dma.done.wait [#allocation4], 896  }
 0xf5b   :  { %6023 = vsyncadd [#allocation4], 4294966400 }
 0xf5c   :  { %5010 = vsyncpa [#allocation3], 1 }
 0xf5d   :  { %5011 = vsyncpa [#allocation6], 1 }
 0xf5e   :  { %5012 = vsyncpa [#allocation9], 1 }
 0xf5f   :  { %5013 = vsyncpa [#allocation4], 1 }

</bundles_post_ra>
